<compile_context>
chip_gen: v5e
topology: v5e:2x2
jax: 0.10.0
libtpu: 0.0.40
codegen_flags: <defaults>
</compile_context>

<pallas_src>
import functools

import jax
import jax.numpy as jnp
from jax.experimental import pallas as pl
from jax.experimental.pallas import tpu as pltpu

EPS = 1e-5
VMEM_LIMIT = 32 * 1024 * 1024
VMEM_SPEC = pl.BlockSpec(memory_space=pltpu.MemorySpace.VMEM)


# ---------------------------------------------------------------------------
# stage 1 / 2 kernel: (affine [+ReLU]) -> pointwise conv -> z out + BN stats
# ---------------------------------------------------------------------------

def _affine_conv_stats_kernel(x_ref, sc_ref, w_ref, b_ref, z_ref, st_ref, *,
                              relu, inv_count, mm_dtype):
    bi = pl.program_id(0)
    ti = pl.program_id(1)

    # previous layer's BN folded into an affine (scale, shift), plus optional ReLU
    sc = sc_ref[...]
    h = x_ref[...].astype(jnp.float32) * sc[0:1, :] + sc[1:2, :]
    if relu:
        h = jnp.maximum(h, 0.0)
    if mm_dtype is not None:
        h = h.astype(mm_dtype)

    # pointwise Conv1d == per-point matmul on the MXU, f32 accumulation
    z = jnp.dot(h, w_ref[...], preferred_element_type=jnp.float32) + b_ref[...]
    z_ref[...] = z.astype(z_ref.dtype)

    # accumulate per-channel sum / sum-of-squares for this layer's BatchNorm
    @pl.when((bi == 0) & (ti == 0))
    def _init():
        st_ref[...] = jnp.zeros_like(st_ref)

    st_ref[0:1, :] += jnp.sum(z, axis=0, keepdims=True)
    st_ref[1:2, :] += jnp.sum(z * z, axis=0, keepdims=True)

    @pl.when((bi == pl.num_programs(0) - 1) & (ti == pl.num_programs(1) - 1))
    def _finalize():
        s = st_ref[0:1, :]
        ss = st_ref[1:2, :]
        mean = s * inv_count
        var = ss * inv_count - mean * mean      # biased variance (training-mode BN)
        st_ref[0:1, :] = mean
        st_ref[1:2, :] = var


def _conv_stage(x, scale, w, b, *, relu, tn, z_dtype, mm_dtype):
    """x: (B, N, Cin) -> (z (B, N, Cout), bn stats (2, Cout) = [mean; var])."""
    B, N, Cin = x.shape
    Cout = w.shape[1]
    assert N % tn == 0
    kern = functools.partial(_affine_conv_stats_kernel, relu=relu,
                             inv_count=1.0 / float(B * N), mm_dtype=mm_dtype)
    z, stats = pl.pallas_call(
        kern,
        grid=(B, N // tn),
        in_specs=[
            pl.BlockSpec((None, tn, Cin), lambda bi, ti: (bi, ti, 0)),
            pl.BlockSpec((2, Cin), lambda bi, ti: (0, 0)),
            pl.BlockSpec((Cin, Cout), lambda bi, ti: (0, 0)),   # weights stay resident
            pl.BlockSpec((1, Cout), lambda bi, ti: (0, 0)),
        ],
        out_specs=[
            pl.BlockSpec((None, tn, Cout), lambda bi, ti: (bi, ti, 0)),
            pl.BlockSpec((2, Cout), lambda bi, ti: (0, 0)),     # resident accumulator
        ],
        out_shape=[
            jax.ShapeDtypeStruct((B, N, Cout), z_dtype),
            jax.ShapeDtypeStruct((2, Cout), jnp.float32),
        ],
        compiler_params=pltpu.CompilerParams(
            dimension_semantics=("arbitrary", "arbitrary"),   # full-grid BN reduction
            vmem_limit_bytes=VMEM_LIMIT),
    )(x, scale, w, b.reshape(1, -1))
    return z, stats


# ---------------------------------------------------------------------------
# stage 3 kernel: bn2+ReLU fused into conv3; bn3 stats + per-batch max/min.
# The (B, N, 1024) conv3 activation is never written to HBM.
# ---------------------------------------------------------------------------

def _conv_pool_stats_kernel(z_ref, sc_ref, w_ref, b_ref,
                            st_ref, zmax_ref, zmin_ref, *, inv_count, mm_dtype):
    bi = pl.program_id(0)
    ti = pl.program_id(1)

    sc = sc_ref[...]
    h = jnp.maximum(z_ref[...].astype(jnp.float32) * sc[0:1, :] + sc[1:2, :], 0.0)
    if mm_dtype is not None:
        h = h.astype(mm_dtype)
    z = jnp.dot(h, w_ref[...], preferred_element_type=jnp.float32) + b_ref[...]

    # bn3 batch statistics over all B*N points
    @pl.when((bi == 0) & (ti == 0))
    def _init():
        st_ref[...] = jnp.zeros_like(st_ref)

    st_ref[0:1, :] += jnp.sum(z, axis=0, keepdims=True)
    st_ref[1:2, :] += jnp.sum(z * z, axis=0, keepdims=True)

    # per-batch max/min of raw conv3 output (fused max-pool epilogue)
    tile_max = jnp.max(z, axis=0, keepdims=True)
    tile_min = jnp.min(z, axis=0, keepdims=True)

    @pl.when(ti == 0)
    def _first_tile():
        zmax_ref[...] = tile_max
        zmin_ref[...] = tile_min

    @pl.when(ti > 0)
    def _acc_tile():
        zmax_ref[...] = jnp.maximum(zmax_ref[...], tile_max)
        zmin_ref[...] = jnp.minimum(zmin_ref[...], tile_min)

    @pl.when((bi == pl.num_programs(0) - 1) & (ti == pl.num_programs(1) - 1))
    def _finalize():
        s = st_ref[0:1, :]
        ss = st_ref[1:2, :]
        mean = s * inv_count
        var = ss * inv_count - mean * mean
        st_ref[0:1, :] = mean
        st_ref[1:2, :] = var


def _conv_pool_stage(z_in, scale, w, b, *, tn, mm_dtype):
    B, N, Cin = z_in.shape
    Cout = w.shape[1]
    assert N % tn == 0
    kern = functools.partial(_conv_pool_stats_kernel,
                             inv_count=1.0 / float(B * N), mm_dtype=mm_dtype)
    stats, zmax, zmin = pl.pallas_call(
        kern,
        grid=(B, N // tn),
        in_specs=[
            pl.BlockSpec((None, tn, Cin), lambda bi, ti: (bi, ti, 0)),
            pl.BlockSpec((2, Cin), lambda bi, ti: (0, 0)),
            pl.BlockSpec((Cin, Cout), lambda bi, ti: (0, 0)),
            pl.BlockSpec((1, Cout), lambda bi, ti: (0, 0)),
        ],
        out_specs=[
            pl.BlockSpec((2, Cout), lambda bi, ti: (0, 0)),          # bn3 stats
            pl.BlockSpec((None, 1, Cout), lambda bi, ti: (bi, 0, 0)),  # per-batch max
            pl.BlockSpec((None, 1, Cout), lambda bi, ti: (bi, 0, 0)),  # per-batch min
        ],
        out_shape=[
            jax.ShapeDtypeStruct((2, Cout), jnp.float32),
            jax.ShapeDtypeStruct((B, 1, Cout), jnp.float32),
            jax.ShapeDtypeStruct((B, 1, Cout), jnp.float32),
        ],
        compiler_params=pltpu.CompilerParams(
            dimension_semantics=("arbitrary", "arbitrary"),
            vmem_limit_bytes=VMEM_LIMIT),
    )(z_in, scale, w, b.reshape(1, -1))
    return stats, zmax, zmin


# ---------------------------------------------------------------------------
# stage 4 kernel: fused FC head
#   bn3 finalize + ReLU + max-pool -> fc1+bn4+ReLU -> fc2+bn5+ReLU -> fc3 (+I)
# ---------------------------------------------------------------------------

def _fc_head_kernel(zmax_ref, zmin_ref, st3_ref, bn3_ref, w4_ref, p4_ref,
                    w5_ref, p5_ref, w6_ref, b6_ref, o_ref, *, mm_dtype):
    st3 = st3_ref[...]
    bn3 = bn3_ref[...]
    a3 = bn3[0:1, :] * jax.lax.rsqrt(st3[1:2, :] + EPS)     # gamma / sqrt(var+eps)
    c3 = bn3[1:2, :] - a3 * st3[0:1, :]                     # beta - a*mean
    zmax = zmax_ref[...][:, 0, :]
    zmin = zmin_ref[...][:, 0, :]
    # max over points of relu(a*z + c): pick max_z where a>=0 else min_z
    pooled = jnp.maximum(jnp.where(a3 >= 0.0, a3 * zmax + c3, a3 * zmin + c3), 0.0)

    def fc_bn_relu(x, w_ref, p_ref):
        p = p_ref[...]                                      # [bias; gamma; beta]
        xm = x.astype(mm_dtype) if mm_dtype is not None else x
        z = jnp.dot(xm, w_ref[...], preferred_element_type=jnp.float32) + p[0:1, :]
        mean = jnp.mean(z, axis=0, keepdims=True)
        var = jnp.mean(jnp.square(z - mean), axis=0, keepdims=True)
        zn = (z - mean) * jax.lax.rsqrt(var + EPS)
        return jnp.maximum(zn * p[1:2, :] + p[2:3, :], 0.0)

    h = fc_bn_relu(pooled, w4_ref, p4_ref)                  # fc1 + bn4 + relu
    h = fc_bn_relu(h, w5_ref, p5_ref)                       # fc2 + bn5 + relu
    # fc3; the 3x3 identity is pre-folded into the bias by the wrapper
    o_ref[...] = jnp.dot(h, w6_ref[...], preferred_element_type=jnp.float32) + b6_ref[...]


def _fc_head(zmax, zmin, st3, bn3, w4, p4, w5, p5, w6, b6, *, mm_dtype):
    B = zmax.shape[0]
    Kout = w6.shape[1]
    return pl.pallas_call(
        functools.partial(_fc_head_kernel, mm_dtype=mm_dtype),
        out_shape=jax.ShapeDtypeStruct((B, Kout), jnp.float32),
        in_specs=[VMEM_SPEC] * 10,
        out_specs=VMEM_SPEC,
        compiler_params=pltpu.CompilerParams(vmem_limit_bytes=VMEM_LIMIT),
    )(zmax, zmin, st3, bn3, w4, p4, w5, p5, w6, b6)


# ---------------------------------------------------------------------------
# wrapper
# ---------------------------------------------------------------------------

def _bn_scale_shift(stats, gamma, beta):
    """Fold BN (mean, var, gamma, beta) into a (2, C) affine [scale; shift]."""
    mean, var = stats[0], stats[1]
    a = gamma * jax.lax.rsqrt(var + EPS)
    return jnp.stack([a, beta - a * mean], axis=0)


def _pick_tn(n, bytes_per_point, budget=4 << 20):
    """Largest point-tile (multiple of 8, dividing n) within a VMEM budget."""
    cap = max(8, budget // max(bytes_per_point, 1))
    if n <= cap:
        return n
    t = (cap // 8) * 8
    while t >= 8:
        if n % t == 0:
            return t
        t -= 8
    return n


def stn3d_forward(x_b3n, p):
    """STN3d forward: x (B, 3, N) float32 -> (B, 3, 3) transform."""
    B, _, N = x_b3n.shape
    x = jnp.transpose(x_b3n, (0, 2, 1))              # channels-last (B, N, 3)

    mm = jnp.bfloat16                                # MXU dtype for the wide layers
    w2 = p["conv2"]["w"].astype(mm)
    w3 = p["conv3"]["w"].astype(mm)
    w4 = p["fc1"]["w"].astype(mm)
    w5 = p["fc2"]["w"].astype(mm)

    # identity affine for conv1's raw input (no preceding BN)
    sc0 = jnp.stack([jnp.ones((3,), jnp.float32), jnp.zeros((3,), jnp.float32)], 0)

    # stage 1: conv1 -> z1 + bn1 stats
    tn1 = _pick_tn(N, 4 * (3 + 2 * 64))
    z1, st1 = _conv_stage(x, sc0, p["conv1"]["w"], p["conv1"]["b"],
                          relu=False, tn=tn1, z_dtype=jnp.bfloat16, mm_dtype=None)

    # stage 2: bn1+relu fused into conv2 -> z2 + bn2 stats
    sc1 = _bn_scale_shift(st1, p["bn1"]["g"], p["bn1"]["b"])
    tn2 = _pick_tn(N, 2 * 64 + 2 * 128 + 4 * 128)
    z2, st2 = _conv_stage(z1, sc1, w2, p["conv2"]["b"],
                          relu=True, tn=tn2, z_dtype=jnp.bfloat16, mm_dtype=mm)

    # stage 3: bn2+relu fused into conv3 + bn3 stats + per-batch max/min
    sc2 = _bn_scale_shift(st2, p["bn2"]["g"], p["bn2"]["b"])
    tn3 = _pick_tn(N, 2 * 128 + 4 * 1024)
    st3, zmax, zmin = _conv_pool_stage(z2, sc2, w3, p["conv3"]["b"],
                                       tn=tn3, mm_dtype=mm)

    # stage 4: fused FC head
    bn3 = jnp.stack([p["bn3"]["g"], p["bn3"]["b"]], 0)
    p4 = jnp.stack([p["fc1"]["b"], p["bn4"]["g"], p["bn4"]["b"]], 0)
    p5 = jnp.stack([p["fc2"]["b"], p["bn5"]["g"], p["bn5"]["b"]], 0)
    iden = jnp.eye(3, dtype=jnp.float32).reshape(-1)
    b6 = (p["fc3"]["b"] + iden).reshape(1, -1)       # fold identity into fc3 bias
    out = _fc_head(zmax, zmin, st3, bn3, w4, p4, w5, p5, p["fc3"]["w"], b6,
                   mm_dtype=mm)
    return out.reshape(B, 3, 3)


# ---------------------------------------------------------------------------
# synthetic parameters (PyTorch BatchNorm defaults: weight=1, bias=0)
# ---------------------------------------------------------------------------

def init_stn3d_params(key, scale=0.1):
    ks = jax.random.split(key, 6)

    def lin(k, cin, cout):
        kw, kb = jax.random.split(k)
        return {"w": jax.random.normal(kw, (cin, cout), jnp.float32) * scale,
                "b": jax.random.normal(kb, (cout,), jnp.float32) * scale}

    def bn(c):
        return {"g": jnp.ones((c,), jnp.float32), "b": jnp.zeros((c,), jnp.float32)}

    return {
        "conv1": lin(ks[0], 3, 64), "conv2": lin(ks[1], 64, 128),
        "conv3": lin(ks[2], 128, 1024),
        "fc1": lin(ks[3], 1024, 512), "fc2": lin(ks[4], 512, 256),
        "fc3": lin(ks[5], 256, 9),
        "bn1": bn(64), "bn2": bn(128), "bn3": bn(1024),
        "bn4": bn(512), "bn5": bn(256),
    }


if __name__ == "__main__":
    key = jax.random.PRNGKey(0)
    k_x, k_p = jax.random.split(key)

    B, N = 2, 16
    x = jax.random.normal(k_x, (B, 3, N), jnp.float32)   # PyTorch layout (B, C=3, N)
    params = init_stn3d_params(k_p)

    fwd = jax.jit(stn3d_forward)
    out = jax.block_until_ready(fwd(x, params))

    assert out.shape == (B, 3, 3), out.shape
    assert out.dtype == jnp.float32
    assert bool(jnp.all(jnp.isfinite(out)))
    print("KERNEL_OK")
</pallas_src>

<mosaic_0001>
module attributes {stable_mosaic.version = 11 : i64} {
  func.func @_affine_conv_stats_kernel(%arg0: i32, %arg1: i32, %arg2: memref<1x16x3xf32, #tpu.memory_space<vmem>>, %arg3: memref<2x3xf32, #tpu.memory_space<vmem>>, %arg4: memref<3x64xf32, #tpu.memory_space<vmem>>, %arg5: memref<1x64xf32, #tpu.memory_space<vmem>>, %arg6: memref<1x16x64xbf16, #tpu.memory_space<vmem>>, %arg7: memref<2x64xf32, #tpu.memory_space<vmem>>) attributes {dimension_semantics = [#tpu.dimension_semantics<arbitrary>, #tpu.dimension_semantics<arbitrary>], iteration_bounds = array<i64: 2, 1>, scalar_prefetch = 0 : i64, scratch_operands = 0 : i64, tpu.core_type = #tpu.core_type<tc>, window_params = [{transform_indices = @transform_0, window_bounds = array<i64: 1, 16, 3>}, {pipeline_mode = #tpu.pipeline_mode<synchronous>, transform_indices = @transform_1, window_bounds = array<i64: 2, 3>}, {pipeline_mode = #tpu.pipeline_mode<synchronous>, transform_indices = @transform_2, window_bounds = array<i64: 3, 64>}, {pipeline_mode = #tpu.pipeline_mode<synchronous>, transform_indices = @transform_3, window_bounds = array<i64: 1, 64>}, {transform_indices = @transform_4, window_bounds = array<i64: 1, 16, 64>}, {pipeline_mode = #tpu.pipeline_mode<synchronous>, transform_indices = @transform_5, window_bounds = array<i64: 2, 64>}]} {
    %c0 = arith.constant 0 : index
    %c0_0 = arith.constant 0 : index
    %0 = vector.load %arg3[%c0, %c0_0] : memref<2x3xf32, #tpu.memory_space<vmem>>, vector<2x3xf32>
    %c0_1 = arith.constant 0 : index
    %c0_2 = arith.constant 0 : index
    %c0_3 = arith.constant 0 : index
    %1 = vector.load %arg2[%c0_1, %c0_2, %c0_3] : memref<1x16x3xf32, #tpu.memory_space<vmem>>, vector<1x16x3xf32>
    %2 = vector.shape_cast %1 : vector<1x16x3xf32> to vector<16x3xf32>
    %3 = vector.extract_strided_slice %0 {offsets = [0, 0], sizes = [1, 3], strides = [1, 1]} : vector<2x3xf32> to vector<1x3xf32>
    %4 = vector.broadcast %3 : vector<1x3xf32> to vector<16x3xf32>
    %5 = arith.mulf %2, %4 : vector<16x3xf32>
    %6 = vector.extract_strided_slice %0 {offsets = [1, 0], sizes = [1, 3], strides = [1, 1]} : vector<2x3xf32> to vector<1x3xf32>
    %7 = vector.broadcast %6 : vector<1x3xf32> to vector<16x3xf32>
    %8 = arith.addf %5, %7 : vector<16x3xf32>
    %c0_4 = arith.constant 0 : index
    %c0_5 = arith.constant 0 : index
    %9 = vector.load %arg4[%c0_4, %c0_5] : memref<3x64xf32, #tpu.memory_space<vmem>>, vector<3x64xf32>
    %cst = arith.constant dense<0.000000e+00> : vector<16x64xf32>
    %10 = tpu.matmul %8, %9, %cst {dimension_numbers = #tpu.dot_dimension_numbers<[1], [0], [0], [1], [0, 0, 1, 1], [], []>} : vector<16x3xf32>, vector<3x64xf32>, vector<16x64xf32> -> vector<16x64xf32>
    %c0_6 = arith.constant 0 : index
    %c0_7 = arith.constant 0 : index
    %11 = vector.load %arg5[%c0_6, %c0_7] : memref<1x64xf32, #tpu.memory_space<vmem>>, vector<1x64xf32>
    %12 = vector.broadcast %11 : vector<1x64xf32> to vector<16x64xf32>
    %13 = arith.addf %10, %12 : vector<16x64xf32>
    %14 = arith.truncf %13 : vector<16x64xf32> to vector<16x64xbf16>
    %c0_8 = arith.constant 0 : index
    %c0_9 = arith.constant 0 : index
    %c0_10 = arith.constant 0 : index
    %15 = vector.load %arg6[%c0_8, %c0_9, %c0_10] : memref<1x16x64xbf16, #tpu.memory_space<vmem>>, vector<1x16x64xbf16>
    %16 = vector.shape_cast %15 : vector<1x16x64xbf16> to vector<16x64xbf16>
    %17 = vector.shape_cast %14 : vector<16x64xbf16> to vector<1x16x64xbf16>
    tpu.vector_store %arg6[%c0_8, %c0_9, %c0_10], %17 {strides = array<i32>} : memref<1x16x64xbf16, #tpu.memory_space<vmem>>, vector<1x16x64xbf16>,
    %c0_i32 = arith.constant 0 : i32
    %18 = arith.cmpi eq, %arg0, %c0_i32 : i32
    %c0_i32_11 = arith.constant 0 : i32
    %19 = arith.cmpi eq, %arg1, %c0_i32_11 : i32
    %20 = arith.andi %18, %19 : i1
    %21 = arith.extui %20 : i1 to i32
    %c0_i32_12 = arith.constant 0 : i32
    %22 = arith.cmpi ne, %21, %c0_i32_12 : i32
    scf.if %22 {
      %cst_24 = arith.constant 0.000000e+00 : f32
      %39 = vector.broadcast %cst_24 : f32 to vector<2x64xf32>
      %c0_25 = arith.constant 0 : index
      %c0_26 = arith.constant 0 : index
      %40 = vector.load %arg7[%c0_25, %c0_26] : memref<2x64xf32, #tpu.memory_space<vmem>>, vector<2x64xf32>
      tpu.vector_store %arg7[%c0_25, %c0_26], %39 {strides = array<i32>} : memref<2x64xf32, #tpu.memory_space<vmem>>, vector<2x64xf32>,
    } else {
    }
    %c0_13 = arith.constant 0 : index
    %c0_14 = arith.constant 0 : index
    %23 = vector.load %arg7[%c0_13, %c0_14] : memref<2x64xf32, #tpu.memory_space<vmem>>, vector<1x64xf32>
    %cst_15 = arith.constant dense<0.000000e+00> : vector<64xf32>
    %24 = vector.multi_reduction <add>, %13, %cst_15 [0] : vector<16x64xf32> to vector<64xf32>
    %25 = vector.shape_cast %24 : vector<64xf32> to vector<1x64xf32>
    %26 = arith.addf %23, %25 : vector<1x64xf32>
    %c0_16 = arith.constant 0 : index
    %c0_17 = arith.constant 0 : index
    %27 = vector.load %arg7[%c0_16, %c0_17] : memref<2x64xf32, #tpu.memory_space<vmem>>, vector<1x64xf32>
    tpu.vector_store %arg7[%c0_16, %c0_17], %26 {strides = array<i32>} : memref<2x64xf32, #tpu.memory_space<vmem>>, vector<1x64xf32>,
    %c1 = arith.constant 1 : index
    %c0_18 = arith.constant 0 : index
    %28 = vector.load %arg7[%c1, %c0_18] : memref<2x64xf32, #tpu.memory_space<vmem>>, vector<1x64xf32>
    %29 = arith.mulf %13, %13 : vector<16x64xf32>
    %cst_19 = arith.constant dense<0.000000e+00> : vector<64xf32>
    %30 = vector.multi_reduction <add>, %29, %cst_19 [0] : vector<16x64xf32> to vector<64xf32>
    %31 = vector.shape_cast %30 : vector<64xf32> to vector<1x64xf32>
    %32 = arith.addf %28, %31 : vector<1x64xf32>
    %c1_20 = arith.constant 1 : index
    %c0_21 = arith.constant 0 : index
    %33 = vector.load %arg7[%c1_20, %c0_21] : memref<2x64xf32, #tpu.memory_space<vmem>>, vector<1x64xf32>
    tpu.vector_store %arg7[%c1_20, %c0_21], %32 {strides = array<i32>} : memref<2x64xf32, #tpu.memory_space<vmem>>, vector<1x64xf32>,
    %c1_i32 = arith.constant 1 : i32
    %34 = arith.cmpi eq, %arg0, %c1_i32 : i32
    %c0_i32_22 = arith.constant 0 : i32
    %35 = arith.cmpi eq, %arg1, %c0_i32_22 : i32
    %36 = arith.andi %34, %35 : i1
    %37 = arith.extui %36 : i1 to i32
    %c0_i32_23 = arith.constant 0 : i32
    %38 = arith.cmpi ne, %37, %c0_i32_23 : i32
    scf.if %38 {
      %c0_24 = arith.constant 0 : index
      %c0_25 = arith.constant 0 : index
      %39 = vector.load %arg7[%c0_24, %c0_25] : memref<2x64xf32, #tpu.memory_space<vmem>>, vector<1x64xf32>
      %c1_26 = arith.constant 1 : index
      %c0_27 = arith.constant 0 : index
      %40 = vector.load %arg7[%c1_26, %c0_27] : memref<2x64xf32, #tpu.memory_space<vmem>>, vector<1x64xf32>
      %cst_28 = arith.constant 3.125000e-02 : f32
      %41 = vector.broadcast %cst_28 : f32 to vector<1x64xf32>
      %42 = arith.mulf %39, %41 : vector<1x64xf32>
      %cst_29 = arith.constant 3.125000e-02 : f32
      %43 = vector.broadcast %cst_29 : f32 to vector<1x64xf32>
      %44 = arith.mulf %40, %43 : vector<1x64xf32>
      %45 = arith.mulf %42, %42 : vector<1x64xf32>
      %46 = arith.subf %44, %45 : vector<1x64xf32>
      %c0_30 = arith.constant 0 : index
      %c0_31 = arith.constant 0 : index
      %47 = vector.load %arg7[%c0_30, %c0_31] : memref<2x64xf32, #tpu.memory_space<vmem>>, vector<1x64xf32>
      tpu.vector_store %arg7[%c0_30, %c0_31], %42 {strides = array<i32>} : memref<2x64xf32, #tpu.memory_space<vmem>>, vector<1x64xf32>,
      %c1_32 = arith.constant 1 : index
      %c0_33 = arith.constant 0 : index
      %48 = vector.load %arg7[%c1_32, %c0_33] : memref<2x64xf32, #tpu.memory_space<vmem>>, vector<1x64xf32>
      tpu.vector_store %arg7[%c1_32, %c0_33], %46 {strides = array<i32>} : memref<2x64xf32, #tpu.memory_space<vmem>>, vector<1x64xf32>,
    } else {
    }
    return
  }
  func.func @transform_0(%arg0: i32, %arg1: i32) -> (i32, i32, i32) {
    %c0_i32 = arith.constant 0 : i32
    %c0_i32_0 = arith.constant 0 : i32
    return %arg0, %arg1, %c0_i32 : i32, i32, i32
  }
  func.func @transform_1(%arg0: i32, %arg1: i32) -> (i32, i32) {
    %c0_i32 = arith.constant 0 : i32
    %c0_i32_0 = arith.constant 0 : i32
    %c0_i32_1 = arith.constant 0 : i32
    return %c0_i32, %c0_i32_0 : i32, i32
  }
  func.func @transform_2(%arg0: i32, %arg1: i32) -> (i32, i32) {
    %c0_i32 = arith.constant 0 : i32
    %c0_i32_0 = arith.constant 0 : i32
    %c0_i32_1 = arith.constant 0 : i32
    return %c0_i32, %c0_i32_0 : i32, i32
  }
  func.func @transform_3(%arg0: i32, %arg1: i32) -> (i32, i32) {
    %c0_i32 = arith.constant 0 : i32
    %c0_i32_0 = arith.constant 0 : i32
    %c0_i32_1 = arith.constant 0 : i32
    return %c0_i32, %c0_i32_0 : i32, i32
  }
  func.func @transform_4(%arg0: i32, %arg1: i32) -> (i32, i32, i32) {
    %c0_i32 = arith.constant 0 : i32
    %c0_i32_0 = arith.constant 0 : i32
    return %arg0, %arg1, %c0_i32 : i32, i32, i32
  }
  func.func @transform_5(%arg0: i32, %arg1: i32) -> (i32, i32) {
    %c0_i32 = arith.constant 0 : i32
    %c0_i32_0 = arith.constant 0 : i32
    %c0_i32_1 = arith.constant 0 : i32
    return %c0_i32, %c0_i32_0 : i32, i32
  }
}

module attributes {stable_mosaic.version = 11 : i64} {
  func.func @_affine_conv_stats_kernel(%arg0: i32, %arg1: i32, %arg2: memref<1x16x64xbf16, #tpu.memory_space<vmem>>, %arg3: memref<2x64xf32, #tpu.memory_space<vmem>>, %arg4: memref<64x128xbf16, #tpu.memory_space<vmem>>, %arg5: memref<1x128xf32, #tpu.memory_space<vmem>>, %arg6: memref<1x16x128xbf16, #tpu.memory_space<vmem>>, %arg7: memref<2x128xf32, #tpu.memory_space<vmem>>) attributes {dimension_semantics = [#tpu.dimension_semantics<arbitrary>, #tpu.dimension_semantics<arbitrary>], iteration_bounds = array<i64: 2, 1>, scalar_prefetch = 0 : i64, scratch_operands = 0 : i64, tpu.core_type = #tpu.core_type<tc>, window_params = [{transform_indices = @transform_0, window_bounds = array<i64: 1, 16, 64>}, {pipeline_mode = #tpu.pipeline_mode<synchronous>, transform_indices = @transform_1, window_bounds = array<i64: 2, 64>}, {pipeline_mode = #tpu.pipeline_mode<synchronous>, transform_indices = @transform_2, window_bounds = array<i64: 64, 128>}, {pipeline_mode = #tpu.pipeline_mode<synchronous>, transform_indices = @transform_3, window_bounds = array<i64: 1, 128>}, {transform_indices = @transform_4, window_bounds = array<i64: 1, 16, 128>}, {pipeline_mode = #tpu.pipeline_mode<synchronous>, transform_indices = @transform_5, window_bounds = array<i64: 2, 128>}]} {
    %c0 = arith.constant 0 : index
    %c0_0 = arith.constant 0 : index
    %0 = vector.load %arg3[%c0, %c0_0] : memref<2x64xf32, #tpu.memory_space<vmem>>, vector<2x64xf32>
    %c0_1 = arith.constant 0 : index
    %c0_2 = arith.constant 0 : index
    %c0_3 = arith.constant 0 : index
    %1 = vector.load %arg2[%c0_1, %c0_2, %c0_3] : memref<1x16x64xbf16, #tpu.memory_space<vmem>>, vector<1x16x64xbf16>
    %2 = vector.shape_cast %1 : vector<1x16x64xbf16> to vector<16x64xbf16>
    %3 = arith.extf %2 : vector<16x64xbf16> to vector<16x64xf32>
    %4 = vector.extract_strided_slice %0 {offsets = [0, 0], sizes = [1, 64], strides = [1, 1]} : vector<2x64xf32> to vector<1x64xf32>
    %5 = vector.broadcast %4 : vector<1x64xf32> to vector<16x64xf32>
    %6 = arith.mulf %3, %5 : vector<16x64xf32>
    %7 = vector.extract_strided_slice %0 {offsets = [1, 0], sizes = [1, 64], strides = [1, 1]} : vector<2x64xf32> to vector<1x64xf32>
    %8 = vector.broadcast %7 : vector<1x64xf32> to vector<16x64xf32>
    %9 = arith.addf %6, %8 : vector<16x64xf32>
    %cst = arith.constant 0.000000e+00 : f32
    %10 = vector.broadcast %cst : f32 to vector<16x64xf32>
    %11 = arith.maximumf %9, %10 : vector<16x64xf32>
    %12 = arith.truncf %11 : vector<16x64xf32> to vector<16x64xbf16>
    %c0_4 = arith.constant 0 : index
    %c0_5 = arith.constant 0 : index
    %13 = vector.load %arg4[%c0_4, %c0_5] : memref<64x128xbf16, #tpu.memory_space<vmem>>, vector<64x128xbf16>
    %cst_6 = arith.constant dense<0.000000e+00> : vector<16x128xf32>
    %14 = tpu.matmul %12, %13, %cst_6 {dimension_numbers = #tpu.dot_dimension_numbers<[1], [0], [0], [1], [0, 0, 1, 1], [], []>} : vector<16x64xbf16>, vector<64x128xbf16>, vector<16x128xf32> -> vector<16x128xf32>
    %c0_7 = arith.constant 0 : index
    %c0_8 = arith.constant 0 : index
    %15 = vector.load %arg5[%c0_7, %c0_8] : memref<1x128xf32, #tpu.memory_space<vmem>>, vector<1x128xf32>
    %16 = vector.broadcast %15 : vector<1x128xf32> to vector<16x128xf32>
    %17 = arith.addf %14, %16 : vector<16x128xf32>
    %18 = arith.truncf %17 : vector<16x128xf32> to vector<16x128xbf16>
    %c0_9 = arith.constant 0 : index
    %c0_10 = arith.constant 0 : index
    %c0_11 = arith.constant 0 : index
    %19 = vector.load %arg6[%c0_9, %c0_10, %c0_11] : memref<1x16x128xbf16, #tpu.memory_space<vmem>>, vector<1x16x128xbf16>
    %20 = vector.shape_cast %19 : vector<1x16x128xbf16> to vector<16x128xbf16>
    %21 = vector.shape_cast %18 : vector<16x128xbf16> to vector<1x16x128xbf16>
    tpu.vector_store %arg6[%c0_9, %c0_10, %c0_11], %21 {strides = array<i32>} : memref<1x16x128xbf16, #tpu.memory_space<vmem>>, vector<1x16x128xbf16>,
    %c0_i32 = arith.constant 0 : i32
    %22 = arith.cmpi eq, %arg0, %c0_i32 : i32
    %c0_i32_12 = arith.constant 0 : i32
    %23 = arith.cmpi eq, %arg1, %c0_i32_12 : i32
    %24 = arith.andi %22, %23 : i1
    %25 = arith.extui %24 : i1 to i32
    %c0_i32_13 = arith.constant 0 : i32
    %26 = arith.cmpi ne, %25, %c0_i32_13 : i32
    scf.if %26 {
      %cst_25 = arith.constant 0.000000e+00 : f32
      %43 = vector.broadcast %cst_25 : f32 to vector<2x128xf32>
      %c0_26 = arith.constant 0 : index
      %c0_27 = arith.constant 0 : index
      %44 = vector.load %arg7[%c0_26, %c0_27] : memref<2x128xf32, #tpu.memory_space<vmem>>, vector<2x128xf32>
      tpu.vector_store %arg7[%c0_26, %c0_27], %43 {strides = array<i32>} : memref<2x128xf32, #tpu.memory_space<vmem>>, vector<2x128xf32>,
    } else {
    }
    %c0_14 = arith.constant 0 : index
    %c0_15 = arith.constant 0 : index
    %27 = vector.load %arg7[%c0_14, %c0_15] : memref<2x128xf32, #tpu.memory_space<vmem>>, vector<1x128xf32>
    %cst_16 = arith.constant dense<0.000000e+00> : vector<128xf32>
    %28 = vector.multi_reduction <add>, %17, %cst_16 [0] : vector<16x128xf32> to vector<128xf32>
    %29 = vector.shape_cast %28 : vector<128xf32> to vector<1x128xf32>
    %30 = arith.addf %27, %29 : vector<1x128xf32>
    %c0_17 = arith.constant 0 : index
    %c0_18 = arith.constant 0 : index
    %31 = vector.load %arg7[%c0_17, %c0_18] : memref<2x128xf32, #tpu.memory_space<vmem>>, vector<1x128xf32>
    tpu.vector_store %arg7[%c0_17, %c0_18], %30 {strides = array<i32>} : memref<2x128xf32, #tpu.memory_space<vmem>>, vector<1x128xf32>,
    %c1 = arith.constant 1 : index
    %c0_19 = arith.constant 0 : index
    %32 = vector.load %arg7[%c1, %c0_19] : memref<2x128xf32, #tpu.memory_space<vmem>>, vector<1x128xf32>
    %33 = arith.mulf %17, %17 : vector<16x128xf32>
    %cst_20 = arith.constant dense<0.000000e+00> : vector<128xf32>
    %34 = vector.multi_reduction <add>, %33, %cst_20 [0] : vector<16x128xf32> to vector<128xf32>
    %35 = vector.shape_cast %34 : vector<128xf32> to vector<1x128xf32>
    %36 = arith.addf %32, %35 : vector<1x128xf32>
    %c1_21 = arith.constant 1 : index
    %c0_22 = arith.constant 0 : index
    %37 = vector.load %arg7[%c1_21, %c0_22] : memref<2x128xf32, #tpu.memory_space<vmem>>, vector<1x128xf32>
    tpu.vector_store %arg7[%c1_21, %c0_22], %36 {strides = array<i32>} : memref<2x128xf32, #tpu.memory_space<vmem>>, vector<1x128xf32>,
    %c1_i32 = arith.constant 1 : i32
    %38 = arith.cmpi eq, %arg0, %c1_i32 : i32
    %c0_i32_23 = arith.constant 0 : i32
    %39 = arith.cmpi eq, %arg1, %c0_i32_23 : i32
    %40 = arith.andi %38, %39 : i1
    %41 = arith.extui %40 : i1 to i32
    %c0_i32_24 = arith.constant 0 : i32
    %42 = arith.cmpi ne, %41, %c0_i32_24 : i32
    scf.if %42 {
      %c0_25 = arith.constant 0 : index
      %c0_26 = arith.constant 0 : index
      %43 = vector.load %arg7[%c0_25, %c0_26] : memref<2x128xf32, #tpu.memory_space<vmem>>, vector<1x128xf32>
      %c1_27 = arith.constant 1 : index
      %c0_28 = arith.constant 0 : index
      %44 = vector.load %arg7[%c1_27, %c0_28] : memref<2x128xf32, #tpu.memory_space<vmem>>, vector<1x128xf32>
      %cst_29 = arith.constant 3.125000e-02 : f32
      %45 = vector.broadcast %cst_29 : f32 to vector<1x128xf32>
      %46 = arith.mulf %43, %45 : vector<1x128xf32>
      %cst_30 = arith.constant 3.125000e-02 : f32
      %47 = vector.broadcast %cst_30 : f32 to vector<1x128xf32>
      %48 = arith.mulf %44, %47 : vector<1x128xf32>
      %49 = arith.mulf %46, %46 : vector<1x128xf32>
      %50 = arith.subf %48, %49 : vector<1x128xf32>
      %c0_31 = arith.constant 0 : index
      %c0_32 = arith.constant 0 : index
      %51 = vector.load %arg7[%c0_31, %c0_32] : memref<2x128xf32, #tpu.memory_space<vmem>>, vector<1x128xf32>
      tpu.vector_store %arg7[%c0_31, %c0_32], %46 {strides = array<i32>} : memref<2x128xf32, #tpu.memory_space<vmem>>, vector<1x128xf32>,
      %c1_33 = arith.constant 1 : index
      %c0_34 = arith.constant 0 : index
      %52 = vector.load %arg7[%c1_33, %c0_34] : memref<2x128xf32, #tpu.memory_space<vmem>>, vector<1x128xf32>
      tpu.vector_store %arg7[%c1_33, %c0_34], %50 {strides = array<i32>} : memref<2x128xf32, #tpu.memory_space<vmem>>, vector<1x128xf32>,
    } else {
    }
    return
  }
  func.func @transform_0(%arg0: i32, %arg1: i32) -> (i32, i32, i32) {
    %c0_i32 = arith.constant 0 : i32
    %c0_i32_0 = arith.constant 0 : i32
    return %arg0, %arg1, %c0_i32 : i32, i32, i32
  }
  func.func @transform_1(%arg0: i32, %arg1: i32) -> (i32, i32) {
    %c0_i32 = arith.constant 0 : i32
    %c0_i32_0 = arith.constant 0 : i32
    %c0_i32_1 = arith.constant 0 : i32
    return %c0_i32, %c0_i32_0 : i32, i32
  }
  func.func @transform_2(%arg0: i32, %arg1: i32) -> (i32, i32) {
    %c0_i32 = arith.constant 0 : i32
    %c0_i32_0 = arith.constant 0 : i32
    %c0_i32_1 = arith.constant 0 : i32
    return %c0_i32, %c0_i32_0 : i32, i32
  }
  func.func @transform_3(%arg0: i32, %arg1: i32) -> (i32, i32) {
    %c0_i32 = arith.constant 0 : i32
    %c0_i32_0 = arith.constant 0 : i32
    %c0_i32_1 = arith.constant 0 : i32
    return %c0_i32, %c0_i32_0 : i32, i32
  }
  func.func @transform_4(%arg0: i32, %arg1: i32) -> (i32, i32, i32) {
    %c0_i32 = arith.constant 0 : i32
    %c0_i32_0 = arith.constant 0 : i32
    return %arg0, %arg1, %c0_i32 : i32, i32, i32
  }
  func.func @transform_5(%arg0: i32, %arg1: i32) -> (i32, i32) {
    %c0_i32 = arith.constant 0 : i32
    %c0_i32_0 = arith.constant 0 : i32
    %c0_i32_1 = arith.constant 0 : i32
    return %c0_i32, %c0_i32_0 : i32, i32
  }
}

module attributes {stable_mosaic.version = 11 : i64} {
  func.func @_conv_pool_stats_kernel(%arg0: i32, %arg1: i32, %arg2: memref<1x16x128xbf16, #tpu.memory_space<vmem>>, %arg3: memref<2x128xf32, #tpu.memory_space<vmem>>, %arg4: memref<128x1024xbf16, #tpu.memory_space<vmem>>, %arg5: memref<1x1024xf32, #tpu.memory_space<vmem>>, %arg6: memref<2x1024xf32, #tpu.memory_space<vmem>>, %arg7: memref<1x1x1024xf32, #tpu.memory_space<vmem>>, %arg8: memref<1x1x1024xf32, #tpu.memory_space<vmem>>) attributes {dimension_semantics = [#tpu.dimension_semantics<arbitrary>, #tpu.dimension_semantics<arbitrary>], iteration_bounds = array<i64: 2, 1>, scalar_prefetch = 0 : i64, scratch_operands = 0 : i64, tpu.core_type = #tpu.core_type<tc>, window_params = [{transform_indices = @transform_0, window_bounds = array<i64: 1, 16, 128>}, {pipeline_mode = #tpu.pipeline_mode<synchronous>, transform_indices = @transform_1, window_bounds = array<i64: 2, 128>}, {pipeline_mode = #tpu.pipeline_mode<synchronous>, transform_indices = @transform_2, window_bounds = array<i64: 128, 1024>}, {pipeline_mode = #tpu.pipeline_mode<synchronous>, transform_indices = @transform_3, window_bounds = array<i64: 1, 1024>}, {pipeline_mode = #tpu.pipeline_mode<synchronous>, transform_indices = @transform_4, window_bounds = array<i64: 2, 1024>}, {transform_indices = @transform_5, window_bounds = array<i64: 1, 1, 1024>}, {transform_indices = @transform_6, window_bounds = array<i64: 1, 1, 1024>}]} {
    %c0 = arith.constant 0 : index
    %c0_0 = arith.constant 0 : index
    %0 = vector.load %arg3[%c0, %c0_0] : memref<2x128xf32, #tpu.memory_space<vmem>>, vector<2x128xf32>
    %c0_1 = arith.constant 0 : index
    %c0_2 = arith.constant 0 : index
    %c0_3 = arith.constant 0 : index
    %1 = vector.load %arg2[%c0_1, %c0_2, %c0_3] : memref<1x16x128xbf16, #tpu.memory_space<vmem>>, vector<1x16x128xbf16>
    %2 = vector.shape_cast %1 : vector<1x16x128xbf16> to vector<16x128xbf16>
    %3 = arith.extf %2 : vector<16x128xbf16> to vector<16x128xf32>
    %4 = vector.extract_strided_slice %0 {offsets = [0, 0], sizes = [1, 128], strides = [1, 1]} : vector<2x128xf32> to vector<1x128xf32>
    %5 = vector.broadcast %4 : vector<1x128xf32> to vector<16x128xf32>
    %6 = arith.mulf %3, %5 : vector<16x128xf32>
    %7 = vector.extract_strided_slice %0 {offsets = [1, 0], sizes = [1, 128], strides = [1, 1]} : vector<2x128xf32> to vector<1x128xf32>
    %8 = vector.broadcast %7 : vector<1x128xf32> to vector<16x128xf32>
    %9 = arith.addf %6, %8 : vector<16x128xf32>
    %cst = arith.constant 0.000000e+00 : f32
    %10 = vector.broadcast %cst : f32 to vector<16x128xf32>
    %11 = arith.maximumf %9, %10 : vector<16x128xf32>
    %12 = arith.truncf %11 : vector<16x128xf32> to vector<16x128xbf16>
    %c0_4 = arith.constant 0 : index
    %c0_5 = arith.constant 0 : index
    %13 = vector.load %arg4[%c0_4, %c0_5] : memref<128x1024xbf16, #tpu.memory_space<vmem>>, vector<128x1024xbf16>
    %cst_6 = arith.constant dense<0.000000e+00> : vector<16x1024xf32>
    %14 = tpu.matmul %12, %13, %cst_6 {dimension_numbers = #tpu.dot_dimension_numbers<[1], [0], [0], [1], [0, 0, 1, 1], [], []>} : vector<16x128xbf16>, vector<128x1024xbf16>, vector<16x1024xf32> -> vector<16x1024xf32>
    %c0_7 = arith.constant 0 : index
    %c0_8 = arith.constant 0 : index
    %15 = vector.load %arg5[%c0_7, %c0_8] : memref<1x1024xf32, #tpu.memory_space<vmem>>, vector<1x1024xf32>
    %16 = vector.broadcast %15 : vector<1x1024xf32> to vector<16x1024xf32>
    %17 = arith.addf %14, %16 : vector<16x1024xf32>
    %c0_i32 = arith.constant 0 : i32
    %18 = arith.cmpi eq, %arg0, %c0_i32 : i32
    %c0_i32_9 = arith.constant 0 : i32
    %19 = arith.cmpi eq, %arg1, %c0_i32_9 : i32
    %20 = arith.andi %18, %19 : i1
    %21 = arith.extui %20 : i1 to i32
    %c0_i32_10 = arith.constant 0 : i32
    %22 = arith.cmpi ne, %21, %c0_i32_10 : i32
    scf.if %22 {
      %cst_28 = arith.constant 0.000000e+00 : f32
      %49 = vector.broadcast %cst_28 : f32 to vector<2x1024xf32>
      %c0_29 = arith.constant 0 : index
      %c0_30 = arith.constant 0 : index
      %50 = vector.load %arg6[%c0_29, %c0_30] : memref<2x1024xf32, #tpu.memory_space<vmem>>, vector<2x1024xf32>
      tpu.vector_store %arg6[%c0_29, %c0_30], %49 {strides = array<i32>} : memref<2x1024xf32, #tpu.memory_space<vmem>>, vector<2x1024xf32>,
    } else {
    }
    %c0_11 = arith.constant 0 : index
    %c0_12 = arith.constant 0 : index
    %23 = vector.load %arg6[%c0_11, %c0_12] : memref<2x1024xf32, #tpu.memory_space<vmem>>, vector<1x1024xf32>
    %cst_13 = arith.constant dense<0.000000e+00> : vector<1024xf32>
    %24 = vector.multi_reduction <add>, %17, %cst_13 [0] : vector<16x1024xf32> to vector<1024xf32>
    %25 = vector.shape_cast %24 : vector<1024xf32> to vector<1x1024xf32>
    %26 = arith.addf %23, %25 : vector<1x1024xf32>
    %c0_14 = arith.constant 0 : index
    %c0_15 = arith.constant 0 : index
    %27 = vector.load %arg6[%c0_14, %c0_15] : memref<2x1024xf32, #tpu.memory_space<vmem>>, vector<1x1024xf32>
    tpu.vector_store %arg6[%c0_14, %c0_15], %26 {strides = array<i32>} : memref<2x1024xf32, #tpu.memory_space<vmem>>, vector<1x1024xf32>,
    %c1 = arith.constant 1 : index
    %c0_16 = arith.constant 0 : index
    %28 = vector.load %arg6[%c1, %c0_16] : memref<2x1024xf32, #tpu.memory_space<vmem>>, vector<1x1024xf32>
    %29 = arith.mulf %17, %17 : vector<16x1024xf32>
    %cst_17 = arith.constant dense<0.000000e+00> : vector<1024xf32>
    %30 = vector.multi_reduction <add>, %29, %cst_17 [0] : vector<16x1024xf32> to vector<1024xf32>
    %31 = vector.shape_cast %30 : vector<1024xf32> to vector<1x1024xf32>
    %32 = arith.addf %28, %31 : vector<1x1024xf32>
    %c1_18 = arith.constant 1 : index
    %c0_19 = arith.constant 0 : index
    %33 = vector.load %arg6[%c1_18, %c0_19] : memref<2x1024xf32, #tpu.memory_space<vmem>>, vector<1x1024xf32>
    tpu.vector_store %arg6[%c1_18, %c0_19], %32 {strides = array<i32>} : memref<2x1024xf32, #tpu.memory_space<vmem>>, vector<1x1024xf32>,
    %cst_20 = arith.constant dense<0xFF800000> : vector<1024xf32>
    %34 = vector.multi_reduction <maximumf>, %17, %cst_20 [0] : vector<16x1024xf32> to vector<1024xf32>
    %35 = vector.shape_cast %34 : vector<1024xf32> to vector<1x1024xf32>
    %cst_21 = arith.constant dense<0x7F800000> : vector<1024xf32>
    %36 = vector.multi_reduction <minimumf>, %17, %cst_21 [0] : vector<16x1024xf32> to vector<1024xf32>
    %37 = vector.shape_cast %36 : vector<1024xf32> to vector<1x1024xf32>
    %c0_i32_22 = arith.constant 0 : i32
    %38 = arith.cmpi eq, %arg1, %c0_i32_22 : i32
    %39 = arith.extui %38 : i1 to i32
    %c0_i32_23 = arith.constant 0 : i32
    %40 = arith.cmpi ne, %39, %c0_i32_23 : i32
    scf.if %40 {
      %c0_28 = arith.constant 0 : index
      %c0_29 = arith.constant 0 : index
      %c0_30 = arith.constant 0 : index
      %49 = vector.load %arg7[%c0_28, %c0_29, %c0_30] : memref<1x1x1024xf32, #tpu.memory_space<vmem>>, vector<1x1x1024xf32>
      %50 = vector.shape_cast %49 : vector<1x1x1024xf32> to vector<1x1024xf32>
      %51 = vector.shape_cast %35 : vector<1x1024xf32> to vector<1x1x1024xf32>
      tpu.vector_store %arg7[%c0_28, %c0_29, %c0_30], %51 {strides = array<i32>} : memref<1x1x1024xf32, #tpu.memory_space<vmem>>, vector<1x1x1024xf32>,
      %c0_31 = arith.constant 0 : index
      %c0_32 = arith.constant 0 : index
      %c0_33 = arith.constant 0 : index
      %52 = vector.load %arg8[%c0_31, %c0_32, %c0_33] : memref<1x1x1024xf32, #tpu.memory_space<vmem>>, vector<1x1x1024xf32>
      %53 = vector.shape_cast %52 : vector<1x1x1024xf32> to vector<1x1024xf32>
      %54 = vector.shape_cast %37 : vector<1x1024xf32> to vector<1x1x1024xf32>
      tpu.vector_store %arg8[%c0_31, %c0_32, %c0_33], %54 {strides = array<i32>} : memref<1x1x1024xf32, #tpu.memory_space<vmem>>, vector<1x1x1024xf32>,
    } else {
    }
    %c0_i32_24 = arith.constant 0 : i32
    %41 = arith.cmpi sgt, %arg1, %c0_i32_24 : i32
    %42 = arith.extui %41 : i1 to i32
    %c0_i32_25 = arith.constant 0 : i32
    %43 = arith.cmpi ne, %42, %c0_i32_25 : i32
    scf.if %43 {
      %c0_28 = arith.constant 0 : index
      %c0_29 = arith.constant 0 : index
      %c0_30 = arith.constant 0 : index
      %49 = vector.load %arg7[%c0_28, %c0_29, %c0_30] : memref<1x1x1024xf32, #tpu.memory_space<vmem>>, vector<1x1x1024xf32>
      %50 = vector.shape_cast %49 : vector<1x1x1024xf32> to vector<1x1024xf32>
      %51 = arith.maximumf %50, %35 : vector<1x1024xf32>
      %c0_31 = arith.constant 0 : index
      %c0_32 = arith.constant 0 : index
      %c0_33 = arith.constant 0 : index
      %52 = vector.load %arg7[%c0_31, %c0_32, %c0_33] : memref<1x1x1024xf32, #tpu.memory_space<vmem>>, vector<1x1x1024xf32>
      %53 = vector.shape_cast %52 : vector<1x1x1024xf32> to vector<1x1024xf32>
      %54 = vector.shape_cast %51 : vector<1x1024xf32> to vector<1x1x1024xf32>
      tpu.vector_store %arg7[%c0_31, %c0_32, %c0_33], %54 {strides = array<i32>} : memref<1x1x1024xf32, #tpu.memory_space<vmem>>, vector<1x1x1024xf32>,
      %c0_34 = arith.constant 0 : index
      %c0_35 = arith.constant 0 : index
      %c0_36 = arith.constant 0 : index
      %55 = vector.load %arg8[%c0_34, %c0_35, %c0_36] : memref<1x1x1024xf32, #tpu.memory_space<vmem>>, vector<1x1x1024xf32>
      %56 = vector.shape_cast %55 : vector<1x1x1024xf32> to vector<1x1024xf32>
      %57 = arith.minimumf %56, %37 : vector<1x1024xf32>
      %c0_37 = arith.constant 0 : index
      %c0_38 = arith.constant 0 : index
      %c0_39 = arith.constant 0 : index
      %58 = vector.load %arg8[%c0_37, %c0_38, %c0_39] : memref<1x1x1024xf32, #tpu.memory_space<vmem>>, vector<1x1x1024xf32>
      %59 = vector.shape_cast %58 : vector<1x1x1024xf32> to vector<1x1024xf32>
      %60 = vector.shape_cast %57 : vector<1x1024xf32> to vector<1x1x1024xf32>
      tpu.vector_store %arg8[%c0_37, %c0_38, %c0_39], %60 {strides = array<i32>} : memref<1x1x1024xf32, #tpu.memory_space<vmem>>, vector<1x1x1024xf32>,
    } else {
    }
    %c1_i32 = arith.constant 1 : i32
    %44 = arith.cmpi eq, %arg0, %c1_i32 : i32
    %c0_i32_26 = arith.constant 0 : i32
    %45 = arith.cmpi eq, %arg1, %c0_i32_26 : i32
    %46 = arith.andi %44, %45 : i1
    %47 = arith.extui %46 : i1 to i32
    %c0_i32_27 = arith.constant 0 : i32
    %48 = arith.cmpi ne, %47, %c0_i32_27 : i32
    scf.if %48 {
      %c0_28 = arith.constant 0 : index
      %c0_29 = arith.constant 0 : index
      %49 = vector.load %arg6[%c0_28, %c0_29] : memref<2x1024xf32, #tpu.memory_space<vmem>>, vector<1x1024xf32>
      %c1_30 = arith.constant 1 : index
      %c0_31 = arith.constant 0 : index
      %50 = vector.load %arg6[%c1_30, %c0_31] : memref<2x1024xf32, #tpu.memory_space<vmem>>, vector<1x1024xf32>
      %cst_32 = arith.constant 3.125000e-02 : f32
      %51 = vector.broadcast %cst_32 : f32 to vector<1x1024xf32>
      %52 = arith.mulf %49, %51 : vector<1x1024xf32>
      %cst_33 = arith.constant 3.125000e-02 : f32
      %53 = vector.broadcast %cst_33 : f32 to vector<1x1024xf32>
      %54 = arith.mulf %50, %53 : vector<1x1024xf32>
      %55 = arith.mulf %52, %52 : vector<1x1024xf32>
      %56 = arith.subf %54, %55 : vector<1x1024xf32>
      %c0_34 = arith.constant 0 : index
      %c0_35 = arith.constant 0 : index
      %57 = vector.load %arg6[%c0_34, %c0_35] : memref<2x1024xf32, #tpu.memory_space<vmem>>, vector<1x1024xf32>
      tpu.vector_store %arg6[%c0_34, %c0_35], %52 {strides = array<i32>} : memref<2x1024xf32, #tpu.memory_space<vmem>>, vector<1x1024xf32>,
      %c1_36 = arith.constant 1 : index
      %c0_37 = arith.constant 0 : index
      %58 = vector.load %arg6[%c1_36, %c0_37] : memref<2x1024xf32, #tpu.memory_space<vmem>>, vector<1x1024xf32>
      tpu.vector_store %arg6[%c1_36, %c0_37], %56 {strides = array<i32>} : memref<2x1024xf32, #tpu.memory_space<vmem>>, vector<1x1024xf32>,
    } else {
    }
    return
  }
  func.func @transform_0(%arg0: i32, %arg1: i32) -> (i32, i32, i32) {
    %c0_i32 = arith.constant 0 : i32
    %c0_i32_0 = arith.constant 0 : i32
    return %arg0, %arg1, %c0_i32 : i32, i32, i32
  }
  func.func @transform_1(%arg0: i32, %arg1: i32) -> (i32, i32) {
    %c0_i32 = arith.constant 0 : i32
    %c0_i32_0 = arith.constant 0 : i32
    %c0_i32_1 = arith.constant 0 : i32
    return %c0_i32, %c0_i32_0 : i32, i32
  }
  func.func @transform_2(%arg0: i32, %arg1: i32) -> (i32, i32) {
    %c0_i32 = arith.constant 0 : i32
    %c0_i32_0 = arith.constant 0 : i32
    %c0_i32_1 = arith.constant 0 : i32
    return %c0_i32, %c0_i32_0 : i32, i32
  }
  func.func @transform_3(%arg0: i32, %arg1: i32) -> (i32, i32) {
    %c0_i32 = arith.constant 0 : i32
    %c0_i32_0 = arith.constant 0 : i32
    %c0_i32_1 = arith.constant 0 : i32
    return %c0_i32, %c0_i32_0 : i32, i32
  }
  func.func @transform_4(%arg0: i32, %arg1: i32) -> (i32, i32) {
    %c0_i32 = arith.constant 0 : i32
    %c0_i32_0 = arith.constant 0 : i32
    %c0_i32_1 = arith.constant 0 : i32
    return %c0_i32, %c0_i32_0 : i32, i32
  }
  func.func @transform_5(%arg0: i32, %arg1: i32) -> (i32, i32, i32) {
    %c0_i32 = arith.constant 0 : i32
    %c0_i32_0 = arith.constant 0 : i32
    %c0_i32_1 = arith.constant 0 : i32
    return %arg0, %c0_i32, %c0_i32_0 : i32, i32, i32
  }
  func.func @transform_6(%arg0: i32, %arg1: i32) -> (i32, i32, i32) {
    %c0_i32 = arith.constant 0 : i32
    %c0_i32_0 = arith.constant 0 : i32
    %c0_i32_1 = arith.constant 0 : i32
    return %arg0, %c0_i32, %c0_i32_0 : i32, i32, i32
  }
}

module attributes {stable_mosaic.version = 11 : i64} {
  func.func @_fc_head_kernel(%arg0: memref<2x1x1024xf32, #tpu.memory_space<vmem>>, %arg1: memref<2x1x1024xf32, #tpu.memory_space<vmem>>, %arg2: memref<2x1024xf32, #tpu.memory_space<vmem>>, %arg3: memref<2x1024xf32, #tpu.memory_space<vmem>>, %arg4: memref<1024x512xbf16, #tpu.memory_space<vmem>>, %arg5: memref<3x512xf32, #tpu.memory_space<vmem>>, %arg6: memref<512x256xbf16, #tpu.memory_space<vmem>>, %arg7: memref<3x256xf32, #tpu.memory_space<vmem>>, %arg8: memref<256x9xf32, #tpu.memory_space<vmem>>, %arg9: memref<1x9xf32, #tpu.memory_space<vmem>>, %arg10: memref<2x9xf32, #tpu.memory_space<vmem>>) attributes {dimension_semantics = [], scalar_prefetch = 0 : i64, scratch_operands = 0 : i64, tpu.core_type = #tpu.core_type<tc>} {
    %c0 = arith.constant 0 : index
    %c0_0 = arith.constant 0 : index
    %0 = vector.load %arg2[%c0, %c0_0] : memref<2x1024xf32, #tpu.memory_space<vmem>>, vector<2x1024xf32>
    %c0_1 = arith.constant 0 : index
    %c0_2 = arith.constant 0 : index
    %1 = vector.load %arg3[%c0_1, %c0_2] : memref<2x1024xf32, #tpu.memory_space<vmem>>, vector<2x1024xf32>
    %2 = vector.extract_strided_slice %1 {offsets = [0, 0], sizes = [1, 1024], strides = [1, 1]} : vector<2x1024xf32> to vector<1x1024xf32>
    %3 = vector.extract_strided_slice %0 {offsets = [1, 0], sizes = [1, 1024], strides = [1, 1]} : vector<2x1024xf32> to vector<1x1024xf32>
    %cst = arith.constant 9.99999974E-6 : f32
    %4 = vector.broadcast %cst : f32 to vector<1x1024xf32>
    %5 = arith.addf %3, %4 : vector<1x1024xf32>
    %6 = math.rsqrt %5 : vector<1x1024xf32>
    %7 = arith.mulf %2, %6 : vector<1x1024xf32>
    %8 = vector.extract_strided_slice %1 {offsets = [1, 0], sizes = [1, 1024], strides = [1, 1]} : vector<2x1024xf32> to vector<1x1024xf32>
    %9 = vector.extract_strided_slice %0 {offsets = [0, 0], sizes = [1, 1024], strides = [1, 1]} : vector<2x1024xf32> to vector<1x1024xf32>
    %10 = arith.mulf %7, %9 : vector<1x1024xf32>
    %11 = arith.subf %8, %10 : vector<1x1024xf32>
    %c0_3 = arith.constant 0 : index
    %c0_4 = arith.constant 0 : index
    %c0_5 = arith.constant 0 : index
    %12 = vector.load %arg0[%c0_3, %c0_4, %c0_5] : memref<2x1x1024xf32, #tpu.memory_space<vmem>>, vector<2x1x1024xf32>
    %13 = vector.shape_cast %12 : vector<2x1x1024xf32> to vector<2x1024xf32>
    %c0_6 = arith.constant 0 : index
    %c0_7 = arith.constant 0 : index
    %c0_8 = arith.constant 0 : index
    %14 = vector.load %arg1[%c0_6, %c0_7, %c0_8] : memref<2x1x1024xf32, #tpu.memory_space<vmem>>, vector<2x1x1024xf32>
    %15 = vector.shape_cast %14 : vector<2x1x1024xf32> to vector<2x1024xf32>
    %cst_9 = arith.constant 0.000000e+00 : f32
    %16 = vector.broadcast %cst_9 : f32 to vector<1x1024xf32>
    %17 = arith.cmpf oge, %7, %16 : vector<1x1024xf32>
    %18 = vector.broadcast %7 : vector<1x1024xf32> to vector<2x1024xf32>
    %19 = arith.mulf %18, %13 : vector<2x1024xf32>
    %20 = vector.broadcast %11 : vector<1x1024xf32> to vector<2x1024xf32>
    %21 = arith.addf %19, %20 : vector<2x1024xf32>
    %22 = vector.broadcast %7 : vector<1x1024xf32> to vector<2x1024xf32>
    %23 = arith.mulf %22, %15 : vector<2x1024xf32>
    %24 = vector.broadcast %11 : vector<1x1024xf32> to vector<2x1024xf32>
    %25 = arith.addf %23, %24 : vector<2x1024xf32>
    %26 = vector.shape_cast %17 : vector<1x1024xi1> to vector<1x1024xi1>
    %27 = vector.broadcast %26 : vector<1x1024xi1> to vector<2x1024xi1>
    %28 = arith.select %27, %21, %25 : vector<2x1024xi1>, vector<2x1024xf32>
    %cst_10 = arith.constant 0.000000e+00 : f32
    %29 = vector.broadcast %cst_10 : f32 to vector<2x1024xf32>
    %30 = arith.maximumf %28, %29 : vector<2x1024xf32>
    %c0_11 = arith.constant 0 : index
    %c0_12 = arith.constant 0 : index
    %31 = vector.load %arg5[%c0_11, %c0_12] : memref<3x512xf32, #tpu.memory_space<vmem>>, vector<3x512xf32>
    %32 = arith.truncf %30 : vector<2x1024xf32> to vector<2x1024xbf16>
    %c0_13 = arith.constant 0 : index
    %c0_14 = arith.constant 0 : index
    %33 = vector.load %arg4[%c0_13, %c0_14] : memref<1024x512xbf16, #tpu.memory_space<vmem>>, vector<1024x512xbf16>
    %cst_15 = arith.constant dense<0.000000e+00> : vector<2x512xf32>
    %34 = tpu.matmul %32, %33, %cst_15 {dimension_numbers = #tpu.dot_dimension_numbers<[1], [0], [0], [1], [0, 0, 1, 1], [], []>} : vector<2x1024xbf16>, vector<1024x512xbf16>, vector<2x512xf32> -> vector<2x512xf32>
    %35 = vector.extract_strided_slice %31 {offsets = [0, 0], sizes = [1, 512], strides = [1, 1]} : vector<3x512xf32> to vector<1x512xf32>
    %36 = vector.broadcast %35 : vector<1x512xf32> to vector<2x512xf32>
    %37 = arith.addf %34, %36 : vector<2x512xf32>
    %cst_16 = arith.constant dense<0.000000e+00> : vector<512xf32>
    %38 = vector.multi_reduction <add>, %37, %cst_16 [0] : vector<2x512xf32> to vector<512xf32>
    %39 = vector.shape_cast %38 : vector<512xf32> to vector<1x512xf32>
    %cst_17 = arith.constant 2.000000e+00 : f32
    %40 = vector.broadcast %cst_17 : f32 to vector<1x512xf32>
    %41 = arith.divf %39, %40 : vector<1x512xf32>
    %42 = vector.broadcast %41 : vector<1x512xf32> to vector<2x512xf32>
    %43 = arith.subf %37, %42 : vector<2x512xf32>
    %44 = arith.mulf %43, %43 : vector<2x512xf32>
    %cst_18 = arith.constant dense<0.000000e+00> : vector<512xf32>
    %45 = vector.multi_reduction <add>, %44, %cst_18 [0] : vector<2x512xf32> to vector<512xf32>
    %46 = vector.shape_cast %45 : vector<512xf32> to vector<1x512xf32>
    %cst_19 = arith.constant 2.000000e+00 : f32
    %47 = vector.broadcast %cst_19 : f32 to vector<1x512xf32>
    %48 = arith.divf %46, %47 : vector<1x512xf32>
    %49 = vector.broadcast %41 : vector<1x512xf32> to vector<2x512xf32>
    %50 = arith.subf %37, %49 : vector<2x512xf32>
    %cst_20 = arith.constant 9.99999974E-6 : f32
    %51 = vector.broadcast %cst_20 : f32 to vector<1x512xf32>
    %52 = arith.addf %48, %51 : vector<1x512xf32>
    %53 = math.rsqrt %52 : vector<1x512xf32>
    %54 = vector.broadcast %53 : vector<1x512xf32> to vector<2x512xf32>
    %55 = arith.mulf %50, %54 : vector<2x512xf32>
    %56 = vector.extract_strided_slice %31 {offsets = [1, 0], sizes = [1, 512], strides = [1, 1]} : vector<3x512xf32> to vector<1x512xf32>
    %57 = vector.broadcast %56 : vector<1x512xf32> to vector<2x512xf32>
    %58 = arith.mulf %55, %57 : vector<2x512xf32>
    %59 = vector.extract_strided_slice %31 {offsets = [2, 0], sizes = [1, 512], strides = [1, 1]} : vector<3x512xf32> to vector<1x512xf32>
    %60 = vector.broadcast %59 : vector<1x512xf32> to vector<2x512xf32>
    %61 = arith.addf %58, %60 : vector<2x512xf32>
    %cst_21 = arith.constant 0.000000e+00 : f32
    %62 = vector.broadcast %cst_21 : f32 to vector<2x512xf32>
    %63 = arith.maximumf %61, %62 : vector<2x512xf32>
    %c0_22 = arith.constant 0 : index
    %c0_23 = arith.constant 0 : index
    %64 = vector.load %arg7[%c0_22, %c0_23] : memref<3x256xf32, #tpu.memory_space<vmem>>, vector<3x256xf32>
    %65 = arith.truncf %63 : vector<2x512xf32> to vector<2x512xbf16>
    %c0_24 = arith.constant 0 : index
    %c0_25 = arith.constant 0 : index
    %66 = vector.load %arg6[%c0_24, %c0_25] : memref<512x256xbf16, #tpu.memory_space<vmem>>, vector<512x256xbf16>
    %cst_26 = arith.constant dense<0.000000e+00> : vector<2x256xf32>
    %67 = tpu.matmul %65, %66, %cst_26 {dimension_numbers = #tpu.dot_dimension_numbers<[1], [0], [0], [1], [0, 0, 1, 1], [], []>} : vector<2x512xbf16>, vector<512x256xbf16>, vector<2x256xf32> -> vector<2x256xf32>
    %68 = vector.extract_strided_slice %64 {offsets = [0, 0], sizes = [1, 256], strides = [1, 1]} : vector<3x256xf32> to vector<1x256xf32>
    %69 = vector.broadcast %68 : vector<1x256xf32> to vector<2x256xf32>
    %70 = arith.addf %67, %69 : vector<2x256xf32>
    %cst_27 = arith.constant dense<0.000000e+00> : vector<256xf32>
    %71 = vector.multi_reduction <add>, %70, %cst_27 [0] : vector<2x256xf32> to vector<256xf32>
    %72 = vector.shape_cast %71 : vector<256xf32> to vector<1x256xf32>
    %cst_28 = arith.constant 2.000000e+00 : f32
    %73 = vector.broadcast %cst_28 : f32 to vector<1x256xf32>
    %74 = arith.divf %72, %73 : vector<1x256xf32>
    %75 = vector.broadcast %74 : vector<1x256xf32> to vector<2x256xf32>
    %76 = arith.subf %70, %75 : vector<2x256xf32>
    %77 = arith.mulf %76, %76 : vector<2x256xf32>
    %cst_29 = arith.constant dense<0.000000e+00> : vector<256xf32>
    %78 = vector.multi_reduction <add>, %77, %cst_29 [0] : vector<2x256xf32> to vector<256xf32>
    %79 = vector.shape_cast %78 : vector<256xf32> to vector<1x256xf32>
    %cst_30 = arith.constant 2.000000e+00 : f32
    %80 = vector.broadcast %cst_30 : f32 to vector<1x256xf32>
    %81 = arith.divf %79, %80 : vector<1x256xf32>
    %82 = vector.broadcast %74 : vector<1x256xf32> to vector<2x256xf32>
    %83 = arith.subf %70, %82 : vector<2x256xf32>
    %cst_31 = arith.constant 9.99999974E-6 : f32
    %84 = vector.broadcast %cst_31 : f32 to vector<1x256xf32>
    %85 = arith.addf %81, %84 : vector<1x256xf32>
    %86 = math.rsqrt %85 : vector<1x256xf32>
    %87 = vector.broadcast %86 : vector<1x256xf32> to vector<2x256xf32>
    %88 = arith.mulf %83, %87 : vector<2x256xf32>
    %89 = vector.extract_strided_slice %64 {offsets = [1, 0], sizes = [1, 256], strides = [1, 1]} : vector<3x256xf32> to vector<1x256xf32>
    %90 = vector.broadcast %89 : vector<1x256xf32> to vector<2x256xf32>
    %91 = arith.mulf %88, %90 : vector<2x256xf32>
    %92 = vector.extract_strided_slice %64 {offsets = [2, 0], sizes = [1, 256], strides = [1, 1]} : vector<3x256xf32> to vector<1x256xf32>
    %93 = vector.broadcast %92 : vector<1x256xf32> to vector<2x256xf32>
    %94 = arith.addf %91, %93 : vector<2x256xf32>
    %cst_32 = arith.constant 0.000000e+00 : f32
    %95 = vector.broadcast %cst_32 : f32 to vector<2x256xf32>
    %96 = arith.maximumf %94, %95 : vector<2x256xf32>
    %c0_33 = arith.constant 0 : index
    %c0_34 = arith.constant 0 : index
    %97 = vector.load %arg8[%c0_33, %c0_34] : memref<256x9xf32, #tpu.memory_space<vmem>>, vector<256x9xf32>
    %cst_35 = arith.constant dense<0.000000e+00> : vector<2x9xf32>
    %98 = tpu.matmul %96, %97, %cst_35 {dimension_numbers = #tpu.dot_dimension_numbers<[1], [0], [0], [1], [0, 0, 1, 1], [], []>} : vector<2x256xf32>, vector<256x9xf32>, vector<2x9xf32> -> vector<2x9xf32>
    %c0_36 = arith.constant 0 : index
    %c0_37 = arith.constant 0 : index
    %99 = vector.load %arg9[%c0_36, %c0_37] : memref<1x9xf32, #tpu.memory_space<vmem>>, vector<1x9xf32>
    %100 = vector.broadcast %99 : vector<1x9xf32> to vector<2x9xf32>
    %101 = arith.addf %98, %100 : vector<2x9xf32>
    %c0_38 = arith.constant 0 : index
    %c0_39 = arith.constant 0 : index
    %102 = vector.load %arg10[%c0_38, %c0_39] : memref<2x9xf32, #tpu.memory_space<vmem>>, vector<2x9xf32>
    tpu.vector_store %arg10[%c0_38, %c0_39], %101 {strides = array<i32>} : memref<2x9xf32, #tpu.memory_space<vmem>>, vector<2x9xf32>,
    return
  }
}

</mosaic_0001>

<bundles_post_ra>
// kernel: stn3d_forward.4
= control target key start
LH: loop header
LB: loop body
LE: loop exit
PB: predicated region body
PF: predicated region fallthrough
CT: control target
= control target key end

     0   :  { %11 = vsyncpa [#allocation3], 0  ;;  %s882_s0 = inlined_call_operand.vmem [shape: f32[2,16,3], index: 0, kind: input, shape index: {}]   ;;  %s883_s1 = inlined_call_operand.hbm [shape: f32[2,3], index: 1, kind: input, shape index: {}]   ;;  %s884_s2 = inlined_call_operand.hbm [shape: f32[3,64], index: 2, kind: input, shape index: {}]   ;;  %s885_s3 = inlined_call_operand.hbm [shape: f32[1,64], index: 3, kind: input, shape index: {}]   ;;  %s886_s4 = inlined_call_operand.vmem [shape: bf16[2,16,64], index: 4, kind: output, shape index: {0}]   ;;  %s887_s5 = inlined_call_operand.vmem [shape: f32[2,64], index: 5, kind: output, shape index: {1}]  }
   0x1   :  { %12 = vsyncpa [#allocation5], 0  ;;  %s772_s18 = smov 0   ;;  %s774_s19 = smov 0  }
   0x2   :  { %s776_s20 = smov 0  }
   0x3 LB: > { %s199_s23 = sshll.u32 %s884_s2, 4  ;;  %s532_s24 = sadd.s32 4294967295, %s736_s20   ;;  %s736_s20 = sphi %s776_s20, %s18_s20   ;;  %s732_s19 = sphi %s774_s19, %s892_s19   ;;  %s728_s18 = sphi %s772_s18, %s891_s18   ;;  %s200_s23 = int_to_ptr.hbm [resolvable:$true] %s199_s23 }
   0x4   : > { %p534_p0 = scmp.ge.s32.totalorder %s736_s20, 1  ;;  %p175_p1 = scmp.lt.s32.totalorder %s736_s20, 3 }
   0x5   : > { %p793_p2 = scmp.eq.s32.totalorder %s532_s24, 0  ;;  %s738_s27 = smov [#allocation4]  }
   0x6   : > { %p797_p3 = pnand %p534_p0, %p175_p1  ;;  %s201_s28 = sshll.u32 %s738_s27, 4  ;;  %s202_s28 = int_to_ptr.vmem [resolvable:$true] %s201_s28 }
   0x7   : > { %s30_s30 = sadd.s32 1, %s732_s19  ;;  %s187_s8 = sshll.u32 %s883_s1, 4  ;;  %s188_s8 = int_to_ptr.hbm [resolvable:$true] %s187_s8 }
   0x8   : > { %p571_p4 = pneg %p797_p3  ;;  %p32_p6 = scmp.ge.s32.totalorder %s30_s30, 2 }
   0x9   : > { %s211_s11 = sshll.u32 %s885_s3, 4  ;;  %s739_s12 = smov [#allocation2]   ;;  %s212_s11 = int_to_ptr.hbm [resolvable:$true] %s211_s11 }
   0xa   : > { %p805_p5 = pnand %p793_p2, %p571_p4  ;;  %s894_s30 = smov (%p32_p6, %s30_s30), 0 }
   0xb   : > { %s189_s13 = sshll.u32 %s739_s12, 4  ;;  %s740_s14 = smov [#allocation6]   ;;  %s190_s13 = int_to_ptr.vmem [resolvable:$true] %s189_s13 }
   0xc   : > { %577 = dma.hbm_to_vmem [thread:$0]  (!%p805_p5), %s200_s23, 64, %s202_s28, [#allocation5]  }
   0xd   : > { %574 = dma.hbm_to_vmem [thread:$0]  (!%p805_p5), %s188_s8, 32, %s190_s13, [#allocation3]  }
   0xe   : > { %s213_s15 = sshll.u32 %s740_s14, 4  ;;  %239 = sbr.rel (%p797_p3) target bundleno = 198 (0xc6), region = 36  ;;  %s214_s15 = int_to_ptr.vmem [resolvable:$true] %s213_s15 }
   0xf   : > { %580 = dma.hbm_to_vmem [thread:$0]  (!%p805_p5), %s212_s11, 16, %s214_s15, [#allocation5]  }
  0x13   : > { %719 = dma.done.wait (%p793_p2), [#allocation3], 32  }
  0x14   : > { %721 = vsyncadd (%p793_p2), [#allocation3], 4294967264 }
  0x15   : > { %723 = dma.done.wait (%p793_p2), [#allocation5], 80  }
  0x16   : > { %725 = vsyncadd (%p793_p2), [#allocation5], 4294967216  ;;  %p287_p7 = scmp.lt.s32.totalorder %s728_s18, 1  ;;  %vm327_vm0 = vcmask 1042432   ;;  %v315_v0 = vld [vmem:[#allocation4] sm:$0x7] }
  0x17   : > { %v306_v1 = vld [vmem:[#allocation2] sm:$0x3]  ;;  %547 = vmatpush.msk.msra.mxu0 %vm327_vm0, %v315_v0  ;;  %558 = vmatpush.msk.msra.mxu1 %vm327_vm0, %v315_v0  ;;  %vm320_vm1 = vcmask 23552   ;;  %p359_p8 = scmp.eq.s32.totalorder %s728_s18, 0  ;;  %v615_v10 = vld [vmem:[#allocation6] ss:$0 sm:$0xff] }
  0x18   : > { %s288_s16 = scalar_select %p287_p7, %s728_s18, 1  ;;  %v309_v3 = vperm.slane %v306_v1, 0  ;;  %v312_v4 = vperm.slane %v306_v1, 1  ;;  %vm356_vm2 = vcmask 519168   ;;  %vm365_vm3 = vcmask (%p359_p8), 517120  }
  0x19   : > { %v741_v17 = vmov (%p359_p8), 0.0  }
  0x1a   : > { %s554_s17 = sshll.u32 %s288_s16, 4  ;;  %s555_s24 = sshll.u32 %s288_s16, 3  ;;  %366 = vst.msk [vmem:[%s887_s5] sm:$0x3] (%p359_p8), %vm365_vm3, %v741_v17 }
  0x1b   : > { %s294_s23 = scalar_lea.vmem %s882_s0, %s554_s17  ;;  %s304_s27 = scalar_lea.vmem %s886_s4, %s555_s24 }
  0x1c   : > { %v307_v2 = vld [vmem:[%s294_s23] sm:$0xff]  ;;  %v308_v5 = vld [vmem:[%s294_s23 + $0x8] sm:$0xff] }
  0x1d   : > { %v310_v6 = vmul.f32 %v309_v3, %v307_v2  ;;  %v311_v7 = vmul.f32 %v309_v3, %v308_v5 }
  0x1f   : > { %v313_v8 = vadd.f32 %v312_v4, %v310_v6  ;;  %v314_v9 = vadd.f32 %v312_v4, %v311_v7 }
  0x21   : > { %548 = vmatmul.msk.f32.vlgmr.msra.gmra.mxu0 %vm320_vm1, %v313_v8  ;;  %549 = vmatmul.msk.f32.vlgmr.msra.gmra.mxu1 %vm320_vm1, %v314_v9 }
  0x9e   : > { %v348_v11 = vpop.f32.mrf.mxu0  ;;  %v351_v12 = vpop.f32.mrf.mxu1 }
  0x9f   : > { %v349_v13 = vadd.f32 %v615_v10, %v348_v11  ;;  %v352_v14 = vadd.f32 %v615_v10, %v351_v12 }
  0xa0   : > { %364 = sbr.rel (!%p359_p8) target bundleno = 165 (0xa5), region = 52 }
  0xa1   : > { %v354_v15 = vpack.c.bf16 %v349_v13, %v349_v13  ;;  %v355_v16 = vpack.c.bf16 %v352_v14, %v352_v14 }
  0xa3   : > { %357 = vst.msk [vmem:[%s304_s27] sm:$0xf] %vm356_vm2, %v354_v15 }
  0xa4   : > { %358 = vst.msk [vmem:[%s304_s27 + $0x4] sm:$0xf] %vm356_vm2, %v355_v16 }
  0xa5 PF: > { %vm368_vm4 = vcmask 523264   ;;  %v382_v18 = vmul.f32 %v349_v13, %v349_v13  ;;  %v383_v19 = vmul.f32 %v352_v14, %v352_v14  ;;  %p395_p9 = scmp.eq.s32.totalorder %s728_s18, 1  ;;  %v367_v35 = vld [vmem:[%s887_s5] sm:$0x1]  ;;  %v381_v38 = vld [vmem:[%s887_s5 + $0x1] sm:$0x1] }
  0xa6   : > { %v369_v20 = vsel %vm368_vm4, %v349_v13, 0.0  ;;  %v370_v21 = vsel %vm368_vm4, %v352_v14, 0.0  ;;  %vm379_vm5 = vcmask 516096  }
  0xa7   : > { %v371_v22 = vadd.f32 %v370_v21, %v369_v20  ;;  %v384_v23 = vsel %vm368_vm4, %v382_v18, 0.0  ;;  %v385_v24 = vsel %vm368_vm4, %v383_v19, 0.0 }
  0xa8   : > { %v386_v25 = vadd.f32 %v385_v24, %v384_v23 }
  0xa9   : > { %v372_v26 = vrot.slane %v371_v22, 4 }
  0xaa   : > { %v387_v27 = vrot.slane %v386_v25, 4 }
  0xab   : > { %v373_v28 = vadd.f32 %v372_v26, %v371_v22 }
  0xac   : > { %v388_v29 = vadd.f32 %v387_v27, %v386_v25 }
  0xad   : > { %v374_v30 = vrot.slane %v373_v28, 2 }
  0xae   : > { %v389_v31 = vrot.slane %v388_v29, 2 }
  0xaf   : > { %v375_v32 = vadd.f32 %v374_v30, %v373_v28 }
  0xb0   : > { %v390_v33 = vadd.f32 %v389_v31, %v388_v29 }
  0xb1   : > { %v376_v34 = vrot.slane %v375_v32, 1 }
  0xb2   : > { %v391_v36 = vrot.slane %v390_v33, 1 }
  0xb3   : > { %v377_v37 = vadd.f32 %v376_v34, %v375_v32 }
  0xb4   : > { %v392_v39 = vadd.f32 %v391_v36, %v390_v33  ;;  %399 = sbr.rel (!%p395_p9) target bundleno = 198 (0xc6), region = 56 }
  0xb5   : > { %v378_v40 = vadd.f32 %v377_v37, %v367_v35 }
  0xb6   : > { %v393_v41 = vadd.f32 %v392_v39, %v381_v38 }
  0xb7   : > { %380 = vst.msk [vmem:[%s887_s5] sm:$0x1] %vm379_vm5, %v378_v40 }
  0xb8   : > { %394 = vst.msk [vmem:[%s887_s5 + $0x1] sm:$0x1] %vm379_vm5, %v393_v41 }
  0xbe   : > { %v400_v42 = vld [vmem:[%s887_s5] sm:$0x1] }
  0xbf   : > { %v401_v43 = vld [vmem:[%s887_s5 + $0x1] sm:$0x1]  ;;  %v402_v44 = vmul.f32 0.03125, %v400_v42 }
  0xc0   : > { %v403_v45 = vmul.f32 0.03125, %v401_v43 }
  0xc1   : > { %406 = vst.msk [vmem:[%s887_s5] sm:$0x1] %vm379_vm5, %v402_v44  ;;  %v404_v46 = vmul.f32 %v402_v44, %v402_v44 }
  0xc3   : > { %v405_v47 = vsub.f32 %v403_v45, %v404_v46 }
  0xc5   : > { %407 = vst.msk [vmem:[%s887_s5 + $0x1] sm:$0x1] %vm379_vm5, %v405_v47 }
  0xc6 PF: > { %s18_s20 = sadd.s32 1, %s736_s20   ;;  %s891_s18 = smov %s732_s19 }
  0xc7   : > { %p15_p10 = scmp.ge.s32.totalorder %s18_s20, 4   ;;  %s892_s19 = smov %s894_s30 }
  0xc9   :  { %17 = sbr.rel (!%p15_p10) target bundleno = 3 (0x3), region = 95 }
  0xce   :  { %444 = vsyncpa [#allocation3], 1 }
  0xcf   :  { %446 = vsyncpa [#allocation3 + $0x1], 1 }
  0xd0   :  { %447 = vsyncpa [#allocation5], 1 }

// kernel: stn3d_forward.5
= control target key start
LH: loop header
LB: loop body
LE: loop exit
PB: predicated region body
PF: predicated region fallthrough
CT: control target
= control target key end

     0   :  { %11 = vsyncpa [#allocation3], 0  ;;  %s673_s18 = smov 0   ;;  %s675_s19 = smov 0   ;;  %s767_s0 = inlined_call_operand.vmem [shape: bf16[2,16,64], index: 0, kind: input, shape index: {}]   ;;  %s768_s1 = inlined_call_operand.vmem [shape: f32[2,64], index: 1, kind: input, shape index: {}]   ;;  %s769_s2 = inlined_call_operand.vmem [shape: bf16[64,128], index: 2, kind: input, shape index: {}]   ;;  %s770_s3 = inlined_call_operand.hbm [shape: f32[1,128], index: 3, kind: input, shape index: {}]   ;;  %s771_s4 = inlined_call_operand.vmem [shape: bf16[2,16,128], index: 4, kind: output, shape index: {0}]   ;;  %s772_s5 = inlined_call_operand.vmem [shape: f32[2,128], index: 5, kind: output, shape index: {1}]  }
   0x1   :  { %s677_s20 = smov 0  }
   0x2 LB: > { %s497_s21 = sadd.s32 4294967295, %s639_s20   ;;  %s29_s22 = sadd.s32 1, %s635_s19  ;;  %s639_s20 = sphi %s677_s20, %s17_s20   ;;  %s635_s19 = sphi %s675_s19, %s774_s19   ;;  %s631_s18 = sphi %s673_s18, %s773_s18  }
   0x3   : > { %p31_p0 = scmp.ge.s32.totalorder %s29_s22, 2  ;;  %p499_p1 = scmp.ge.s32.totalorder %s639_s20, 1 }
   0x4   : > { %p174_p2 = scmp.lt.s32.totalorder %s639_s20, 3  ;;  %p554_p4 = scmp.eq.s32.totalorder %s497_s21, 0 }
   0x5   : > { %s776_s22 = smov (%p31_p0, %s29_s22), 0  ;;  %s192_s25 = sshll.u32 %s770_s3, 4  ;;  %s193_s25 = int_to_ptr.hbm [resolvable:$true] %s192_s25 }
   0x6   : > { %p175_p3 = pnand %p499_p1, %p174_p2  ;;  %s641_s26 = smov [#allocation2]  }
   0x7   : > { %s194_s27 = sshll.u32 %s641_s26, 4  ;;  %s195_s27 = int_to_ptr.vmem [resolvable:$true] %s194_s27 }
   0x8   : > { %p550_p5 = pneg %p175_p3  ;;  %220 = sbr.rel (%p175_p3) target bundleno = 201 (0xc9), region = 36 }
   0xa   : > { %p551_p6 = pnand %p554_p4, %p550_p5 }
   0xc   : > { %553 = dma.hbm_to_vmem [thread:$0]  (!%p551_p6), %s193_s25, 16, %s195_s27, [#allocation3]  }
   0xd   : > { %626 = dma.done.wait (%p554_p4), [#allocation3], 16  }
   0xe   : > { %628 = vsyncadd (%p554_p4), [#allocation3], 4294967280  ;;  %p258_p7 = scmp.lt.s32.totalorder %s631_s18, 1  ;;  %v534_v0 = vld [vmem:[%s769_s2 + $0x18] sm:$0xff]  ;;  %v278_v1 = vld [vmem:[%s768_s1] sm:$0x3] }
   0xf   : > { %336 = vmatpush.bf16.msra.mxu0 %v534_v0  ;;  %v533_v3 = vld [vmem:[%s769_s2 + $0x10] sm:$0xff]  ;;  %v283_v6 = vperm.slane %v278_v1, 0  ;;  %v286_v7 = vperm.slane %v278_v1, 1  ;;  %v532_v10 = vld [vmem:[%s769_s2 + $0x8] sm:$0xff]  ;;  %v531_v15 = vld [vmem:[%s769_s2] sm:$0xff]  ;;  %vm328_vm0 = vcmask 523264  }
  0x10   : > { %s699_s28 = scalar_select %p258_p7, %s631_s18, 1  ;;  %v582_v18 = vld [vmem:[#allocation2] ss:$0 sm:$0xff] }
  0x11   : > { %p350_p8 = scmp.eq.s32.totalorder %s631_s18, 0 }
  0x12   : > { %s529_s29 = sshll.u32 %s699_s28, 3  ;;  %v642_v23 = vmov (%p350_p8), 0.0  }
  0x13   : > { %s265_s7 = scalar_lea.vmem %s767_s0, %s529_s29  ;;  %337 = vmatpush.bf16.msra.mxu0 %v533_v3  ;;  %s275_s24 = scalar_lea.vmem %s771_s4, %s529_s29  ;;  %356 = vst [vmem:[%s772_s5] sm:$0x3] (%p350_p8), %v642_v23 }
  0x14   : > { %v538_v2 = vld [vmem:[%s265_s7] sm:$0xff]  }
  0x15   : > { %v539_v4 = vunpack.c.l.bf16 %v538_v2  ;;  %v540_v5 = vunpack.c.h.bf16 %v538_v2 }
  0x17   : > { %v284_v8 = vmul.f32 %v539_v4, %v283_v6  ;;  %v285_v9 = vmul.f32 %v540_v5, %v283_v6  ;;  %338 = vmatpush.bf16.msra.mxu0 %v532_v10 }
  0x19   : > { %v287_v11 = vadd.f32 %v286_v7, %v284_v8  ;;  %v288_v12 = vadd.f32 %v286_v7, %v285_v9 }
  0x1b   : > { %v289_v13 = vmax.f32 %v287_v11, 0.0  ;;  %v290_v14 = vmax.f32 %v288_v12, 0.0  ;;  %339 = vmatpush.bf16.msra.mxu0 %v531_v15 }
  0x1d   : > { %v291_v16 = vpack.c.bf16 %v290_v14, %v289_v13 }
  0x1f   : > { %524 = vmatmul.msk.bf16.vlgmr.msra.gmra.mxu0 %vm328_vm0, %v291_v16 }
  0x9c   : > { %v341_v17 = vpop.f32.mrf.mxu0 }
  0x9d   : > { %v342_v20 = vadd.f32 %v582_v18, %v341_v17 }
  0xa4   : > { %v343_v19 = vpop.f32.mrf.mxu0 }
  0xa5   : > { %v344_v21 = vadd.f32 %v582_v18, %v343_v19  ;;  %355 = sbr.rel (!%p350_p8) target bundleno = 170 (0xaa), region = 44 }
  0xa7   : > { %v544_v22 = vpack.c.bf16 %v344_v21, %v342_v20 }
  0xa9   : > { %545 = vst [vmem:[%s275_s24] sm:$0xff] %v544_v22  }
  0xaa PF: > { %v358_v24 = vadd.f32 %v344_v21, %v342_v20  ;;  %v368_v25 = vmul.f32 %v342_v20, %v342_v20  ;;  %v369_v26 = vmul.f32 %v344_v21, %v344_v21  ;;  %p379_p9 = scmp.eq.s32.totalorder %s631_s18, 1  ;;  %v357_v37 = vld [vmem:[%s772_s5] sm:$0x1]  ;;  %v367_v40 = vld [vmem:[%s772_s5 + $0x1] sm:$0x1] }
  0xac   : > { %v359_v27 = vrot.slane %v358_v24, 4  ;;  %v370_v28 = vadd.f32 %v369_v26, %v368_v25 }
  0xae   : > { %v360_v29 = vadd.f32 %v359_v27, %v358_v24  ;;  %v371_v30 = vrot.slane %v370_v28, 4 }
  0xb0   : > { %v361_v31 = vrot.slane %v360_v29, 2  ;;  %v372_v32 = vadd.f32 %v371_v30, %v370_v28 }
  0xb2   : > { %v362_v33 = vadd.f32 %v361_v31, %v360_v29  ;;  %v373_v34 = vrot.slane %v372_v32, 2 }
  0xb4   : > { %v363_v35 = vrot.slane %v362_v33, 1  ;;  %v374_v36 = vadd.f32 %v373_v34, %v372_v32 }
  0xb6   : > { %v364_v38 = vadd.f32 %v363_v35, %v362_v33  ;;  %v375_v39 = vrot.slane %v374_v36, 1 }
  0xb8   : > { %v365_v41 = vadd.f32 %v364_v38, %v357_v37  ;;  %v376_v42 = vadd.f32 %v375_v39, %v374_v36  ;;  %383 = sbr.rel (!%p379_p9) target bundleno = 201 (0xc9), region = 48 }
  0xba   : > { %366 = vst [vmem:[%s772_s5] sm:$0x1] %v365_v41  ;;  %v377_v43 = vadd.f32 %v376_v42, %v367_v40 }
  0xbc   : > { %378 = vst [vmem:[%s772_s5 + $0x1] sm:$0x1] %v377_v43 }
  0xc1   : > { %v384_v44 = vld [vmem:[%s772_s5] sm:$0x1] }
  0xc2   : > { %v386_v46 = vmul.f32 0.03125, %v384_v44 }
  0xc3   : > { %v385_v45 = vld [vmem:[%s772_s5 + $0x1] sm:$0x1] }
  0xc4   : > { %v387_v47 = vmul.f32 0.03125, %v385_v45  ;;  %390 = vst [vmem:[%s772_s5] sm:$0x1] %v386_v46  ;;  %v388_v48 = vmul.f32 %v386_v46, %v386_v46 }
  0xc6   : > { %v389_v49 = vsub.f32 %v387_v47, %v388_v48 }
  0xc8   : > { %391 = vst [vmem:[%s772_s5 + $0x1] sm:$0x1] %v389_v49 }
  0xc9 PF: > { %s17_s20 = sadd.s32 1, %s639_s20   ;;  %s773_s18 = smov %s635_s19 }
  0xca   : > { %p14_p10 = scmp.ge.s32.totalorder %s17_s20, 4   ;;  %s774_s19 = smov %s776_s22 }
  0xcc   :  { %16 = sbr.rel (!%p14_p10) target bundleno = 2 (0x2), region = 87 }
  0xd1   :  { %428 = vsyncpa [#allocation3], 1 }
  0xd2   :  { %430 = vsyncpa [#allocation3 + $0x1], 1 }

// kernel: stn3d_forward.6
= control target key start
LH: loop header
LB: loop body
LE: loop exit
PB: predicated region body
PF: predicated region fallthrough
CT: control target
= control target key end

     0   :  { %12 = vsyncpa [#allocation3], 0  ;;  %s1851_s21 = smov 0   ;;  %s1853_s22 = smov 0   ;;  %s2504_s0 = inlined_call_operand.vmem [shape: bf16[2,16,128], index: 0, kind: input, shape index: {}]   ;;  %s2505_s1 = inlined_call_operand.vmem [shape: f32[2,128], index: 1, kind: input, shape index: {}]   ;;  %s2506_s2 = inlined_call_operand.vmem [shape: bf16[128,1024], index: 2, kind: input, shape index: {}]   ;;  %s2507_s3 = inlined_call_operand.hbm [shape: f32[1,1024], index: 3, kind: input, shape index: {}]   ;;  %s2508_s4 = inlined_call_operand.vmem [shape: f32[2,1024], index: 4, kind: output, shape index: {0}]   ;;  %s2509_s5 = inlined_call_operand.vmem [shape: f32[2,1,1024], index: 5, kind: output, shape index: {1}]   ;;  %s2510_s6 = inlined_call_operand.vmem [shape: f32[2,1,1024], index: 6, kind: output, shape index: {2}]  }
   0x1   :  { %s1855_s23 = smov 0  }
   0x2 LB: > { %s1374_s24 = sadd.s32 4294967295, %s1812_s23   ;;  %s30_s25 = sadd.s32 1, %s1808_s22  ;;  %s1812_s23 = sphi %s1855_s23, %s18_s23   ;;  %s1808_s22 = sphi %s1853_s22, %s2512_s22   ;;  %s1804_s21 = sphi %s1851_s21, %s2511_s21  }
   0x3   : > { %p32_p0 = scmp.ge.s32.totalorder %s30_s25, 2  ;;  %p1376_p1 = scmp.ge.s32.totalorder %s1812_s23, 1 }
   0x4   : > { %p199_p2 = scmp.lt.s32.totalorder %s1812_s23, 3  ;;  %p1728_p4 = scmp.eq.s32.totalorder %s1374_s24, 0 }
   0x5   : > { %s2514_s25 = smov (%p32_p0, %s30_s25), 0  ;;  %s217_s28 = sshll.u32 %s2507_s3, 4  ;;  %s218_s28 = int_to_ptr.hbm [resolvable:$true] %s217_s28 }
   0x6   : > { %p200_p3 = pnand %p1376_p1, %p199_p2  ;;  %s1814_s29 = smov [#allocation2]  }
   0x7   : > { %s219_s30 = sshll.u32 %s1814_s29, 4  ;;  %s220_s30 = int_to_ptr.vmem [resolvable:$true] %s219_s30 }
   0x8   : > { %p1724_p5 = pneg %p200_p3  ;;  %245 = sbr.rel (%p200_p3) target bundleno = 307 (0x133), region = 36 }
   0xa   : > { %p1725_p6 = pnand %p1728_p4, %p1724_p5 }
   0xc   : > { %1727 = dma.hbm_to_vmem [thread:$0]  (!%p1725_p6), %s218_s28, 128, %s220_s30, [#allocation3]  }
   0xd   : > { %1799 = dma.done.wait (%p1728_p4), [#allocation3], 128  }
   0xe   : > { %1801 = vsyncadd (%p1728_p4), [#allocation3], 4294967168  ;;  %p284_p7 = scmp.lt.s32.totalorder %s1804_s21, 1  ;;  %v1611_v0 = vld [vmem:[%s2506_s2 + $0x1c0] sm:$0xf]  ;;  %p829_p8 = scmp.eq.s32.totalorder %s1804_s21, 0 }
   0xf   : > { %v1710_v1 = vld [vmem:[%s2506_s2 + $0x1dc] sm:$0xf0]  ;;  %v1706_v2 = vld [vmem:[%s2506_s2 + $0x1c4] sm:$0xf]  ;;  %v1619_v5 = vld [vmem:[%s2506_s2 + $0x1c8] sm:$0xf] }
  0x10   : > { %s285_s7 = scalar_select %p284_p7, %s1804_s21, 1  ;;  %v1612_v3 = vor.u32 %v1710_v1, %v1611_v0  ;;  %v1613_v4 = vld [vmem:[%s2506_s2 + $0x1e0] sm:$0xf0]  ;;  %v1711_v6 = vld [vmem:[%s2506_s2 + $0x1e4] sm:$0xf0] }
  0x11   : > { %v1616_v7 = vor.u32 %v1706_v2, %v1613_v4  ;;  %v1620_v8 = vor.u32 %v1711_v6, %v1619_v5  ;;  %v1707_v9 = vld [vmem:[%s2506_s2 + $0x1cc] sm:$0xf]  ;;  %v1579_v11 = vld [vmem:[%s2506_s2 + $0x180] sm:$0xf]  ;;  %v1698_v14 = vld [vmem:[%s2506_s2 + $0x184] sm:$0xf] }
  0x12   : > { %s1877_s8 = sshll.u32 %s285_s7, 3  ;;  %v1621_v10 = vld [vmem:[%s2506_s2 + $0x1e8] sm:$0xf0]  ;;  %717 = vmatpush.bf16.msra.mxu0 %v1612_v3  ;;  %v1702_v13 = vld [vmem:[%s2506_s2 + $0x19c] sm:$0xf0] }
  0x13   : > { %s296_s11 = scalar_lea.vmem %s2509_s5, %s1877_s8  ;;  %s300_s14 = scalar_lea.vmem %s2510_s6, %s1877_s8  ;;  %v1624_v12 = vor.u32 %v1707_v9, %v1621_v10  ;;  %v1581_v15 = vld [vmem:[%s2506_s2 + $0x1a0] sm:$0xf0]  ;;  %731 = vmatpush.bf16.msra.mxu1 %v1616_v7  ;;  %745 = vmatpush.bf16.msra.mxu2 %v1620_v8  ;;  %v1580_v16 = vor.u32 %v1702_v13, %v1579_v11  ;;  %v1587_v18 = vld [vmem:[%s2506_s2 + $0x188] sm:$0xf]  ;;  %v1699_v20 = vld [vmem:[%s2506_s2 + $0x18c] sm:$0xf] }
  0x14   : > { %v1584_v17 = vor.u32 %v1698_v14, %v1581_v15  ;;  %v1703_v19 = vld [vmem:[%s2506_s2 + $0x1a4] sm:$0xf0]  ;;  %v1589_v22 = vld [vmem:[%s2506_s2 + $0x1a8] sm:$0xf0]  ;;  %v1547_v23 = vld [vmem:[%s2506_s2 + $0x140] sm:$0xf]  ;;  %s291_s28 = scalar_lea.vmem %s2504_s0, %s1877_s8 }
  0x15   : > { %759 = vmatpush.bf16.msra.mxu3 %v1624_v12  ;;  %v1588_v21 = vor.u32 %v1703_v19, %v1587_v18  ;;  %v1694_v24 = vld [vmem:[%s2506_s2 + $0x15c] sm:$0xf0]  ;;  %v1592_v25 = vor.u32 %v1699_v20, %v1589_v22  ;;  %v1690_v26 = vld [vmem:[%s2506_s2 + $0x144] sm:$0xf]  ;;  %v1555_v28 = vld [vmem:[%s2506_s2 + $0x148] sm:$0xf] }
  0x16   : > { %v1549_v27 = vld [vmem:[%s2506_s2 + $0x160] sm:$0xf0]  ;;  %718 = vmatpush.bf16.msra.mxu0 %v1580_v16  ;;  %v1548_v29 = vor.u32 %v1694_v24, %v1547_v23  ;;  %v1695_v30 = vld [vmem:[%s2506_s2 + $0x164] sm:$0xf0]  ;;  %v1691_v31 = vld [vmem:[%s2506_s2 + $0x14c] sm:$0xf] }
  0x17   : > { %v1557_v32 = vld [vmem:[%s2506_s2 + $0x168] sm:$0xf0]  ;;  %732 = vmatpush.bf16.msra.mxu1 %v1584_v17  ;;  %746 = vmatpush.bf16.msra.mxu2 %v1588_v21  ;;  %v1552_v33 = vor.u32 %v1690_v26, %v1549_v27  ;;  %v1556_v34 = vor.u32 %v1695_v30, %v1555_v28  ;;  %v1515_v35 = vld [vmem:[%s2506_s2 + $0x100] sm:$0xf]  ;;  %v1682_v37 = vld [vmem:[%s2506_s2 + $0x104] sm:$0xf] }
  0x18   : > { %v1686_v36 = vld [vmem:[%s2506_s2 + $0x11c] sm:$0xf0]  ;;  %v1560_v38 = vor.u32 %v1691_v31, %v1557_v32  ;;  %v1517_v39 = vld [vmem:[%s2506_s2 + $0x120] sm:$0xf0]  ;;  %v1523_v40 = vld [vmem:[%s2506_s2 + $0x108] sm:$0xf] }
  0x19   : > { %760 = vmatpush.bf16.msra.mxu3 %v1592_v25  ;;  %v1687_v41 = vld [vmem:[%s2506_s2 + $0x124] sm:$0xf0]  ;;  %v1683_v42 = vld [vmem:[%s2506_s2 + $0x10c] sm:$0xf]  ;;  %v1516_v44 = vor.u32 %v1686_v36, %v1515_v35  ;;  %v1520_v45 = vor.u32 %v1682_v37, %v1517_v39  ;;  %v1483_v47 = vld [vmem:[%s2506_s2 + $0xc0] sm:$0xf] }
  0x1a   : > { %v1525_v43 = vld [vmem:[%s2506_s2 + $0x128] sm:$0xf0]  ;;  %719 = vmatpush.bf16.msra.mxu0 %v1548_v29  ;;  %v1524_v46 = vor.u32 %v1687_v41, %v1523_v40  ;;  %v1678_v48 = vld [vmem:[%s2506_s2 + $0xdc] sm:$0xf0]  ;;  %v1674_v49 = vld [vmem:[%s2506_s2 + $0xc4] sm:$0xf] }
  0x1b   : > { %733 = vmatpush.bf16.msra.mxu1 %v1552_v33  ;;  %747 = vmatpush.bf16.msra.mxu2 %v1556_v34  ;;  %v1528_v50 = vor.u32 %v1683_v42, %v1525_v43  ;;  %v1485_v51 = vld [vmem:[%s2506_s2 + $0xe0] sm:$0xf0]  ;;  %v1491_v52 = vld [vmem:[%s2506_s2 + $0xc8] sm:$0xf]  ;;  %v1675_v54 = vld [vmem:[%s2506_s2 + $0xcc] sm:$0xf]  ;;  %v1484_v56 = vor.u32 %v1678_v48, %v1483_v47 }
  0x1c   : > { %v1679_v53 = vld [vmem:[%s2506_s2 + $0xe4] sm:$0xf0]  ;;  %v1493_v55 = vld [vmem:[%s2506_s2 + $0xe8] sm:$0xf0]  ;;  %v1488_v57 = vor.u32 %v1674_v49, %v1485_v51  ;;  %v1451_v59 = vld [vmem:[%s2506_s2 + $0x80] sm:$0xf] }
  0x1d   : > { %761 = vmatpush.bf16.msra.mxu3 %v1560_v38  ;;  %v1492_v58 = vor.u32 %v1679_v53, %v1491_v52  ;;  %v1670_v60 = vld [vmem:[%s2506_s2 + $0x9c] sm:$0xf0]  ;;  %v1666_v61 = vld [vmem:[%s2506_s2 + $0x84] sm:$0xf]  ;;  %v1496_v62 = vor.u32 %v1675_v54, %v1493_v55  ;;  %v1459_v0 = vld [vmem:[%s2506_s2 + $0x88] sm:$0xf] }
  0x1e   : > { %720 = vmatpush.bf16.msra.mxu0 %v1516_v44  ;;  %v1453_v63 = vld [vmem:[%s2506_s2 + $0xa0] sm:$0xf0]  ;;  %v1671_v1 = vld [vmem:[%s2506_s2 + $0xa4] sm:$0xf0]  ;;  %v1667_v2 = vld [vmem:[%s2506_s2 + $0x8c] sm:$0xf]  ;;  %v1452_v4 = vor.u32 %v1670_v60, %v1451_v59 }
  0x1f   : > { %734 = vmatpush.bf16.msra.mxu1 %v1520_v45  ;;  %748 = vmatpush.bf16.msra.mxu2 %v1524_v46  ;;  %v1461_v3 = vld [vmem:[%s2506_s2 + $0xa8] sm:$0xf0]  ;;  %v1456_v5 = vor.u32 %v1666_v61, %v1453_v63  ;;  %v1460_v6 = vor.u32 %v1671_v1, %v1459_v0  ;;  %v1419_v7 = vld [vmem:[%s2506_s2 + $0x40] sm:$0xf]  ;;  %v1658_v9 = vld [vmem:[%s2506_s2 + $0x44] sm:$0xf] }
  0x20   : > { %v1662_v8 = vld [vmem:[%s2506_s2 + $0x5c] sm:$0xf0]  ;;  %v1464_v10 = vor.u32 %v1667_v2, %v1461_v3  ;;  %v1421_v11 = vld [vmem:[%s2506_s2 + $0x60] sm:$0xf0]  ;;  %v1427_v12 = vld [vmem:[%s2506_s2 + $0x48] sm:$0xf] }
  0x21   : > { %762 = vmatpush.bf16.msra.mxu3 %v1528_v50  ;;  %v1663_v13 = vld [vmem:[%s2506_s2 + $0x64] sm:$0xf0]  ;;  %v1659_v14 = vld [vmem:[%s2506_s2 + $0x4c] sm:$0xf]  ;;  %v1387_v16 = vld [vmem:[%s2506_s2] sm:$0xf]  ;;  %v1420_v17 = vor.u32 %v1662_v8, %v1419_v7  ;;  %v1424_v21 = vor.u32 %v1658_v9, %v1421_v11 }
  0x22   : > { %721 = vmatpush.bf16.msra.mxu0 %v1484_v56  ;;  %v1429_v15 = vld [vmem:[%s2506_s2 + $0x68] sm:$0xf0]  ;;  %v1654_v18 = vld [vmem:[%s2506_s2 + $0x1c] sm:$0xf0]  ;;  %v1650_v19 = vld [vmem:[%s2506_s2 + $0x4] sm:$0xf]  ;;  %v1428_v22 = vor.u32 %v1663_v13, %v1427_v12 }
  0x23   : > { %735 = vmatpush.bf16.msra.mxu1 %v1488_v57  ;;  %749 = vmatpush.bf16.msra.mxu2 %v1492_v58  ;;  %v1389_v20 = vld [vmem:[%s2506_s2 + $0x20] sm:$0xf0]  ;;  %v1395_v23 = vld [vmem:[%s2506_s2 + $0x8] sm:$0xf]  ;;  %v1651_v25 = vld [vmem:[%s2506_s2 + $0xc] sm:$0xf]  ;;  %v1432_v26 = vor.u32 %v1659_v14, %v1429_v15  ;;  %v1388_v33 = vor.u32 %v1654_v18, %v1387_v16 }
  0x24   : > { %v1655_v24 = vld [vmem:[%s2506_s2 + $0x24] sm:$0xf0]  ;;  %v1397_v27 = vld [vmem:[%s2506_s2 + $0x28] sm:$0xf0]  ;;  %v1627_v28 = vld [vmem:[%s2506_s2 + $0x1d0] sm:$0xf]  ;;  %v1392_v34 = vor.u32 %v1650_v19, %v1389_v20 }
  0x25   : > { %763 = vmatpush.bf16.msra.mxu3 %v1496_v62  ;;  %v1712_v29 = vld [vmem:[%s2506_s2 + $0x1ec] sm:$0xf0]  ;;  %v1708_v30 = vld [vmem:[%s2506_s2 + $0x1d4] sm:$0xf]  ;;  %v301_v32 = vld [vmem:[%s2505_s1] sm:$0x3]  ;;  %v1396_v39 = vor.u32 %v1655_v24, %v1395_v23  ;;  %v1400_v45 = vor.u32 %v1651_v25, %v1397_v27 }
  0x26   : > { %722 = vmatpush.bf16.msra.mxu0 %v1452_v4  ;;  %v1629_v31 = vld [vmem:[%s2506_s2 + $0x1f0] sm:$0xf0]  ;;  %v1635_v35 = vld [vmem:[%s2506_s2 + $0x1d8] sm:$0xf]  ;;  %v1717_v37 = vld [vmem:[%s291_s28] sm:$0xff]   ;;  %v306_v38 = vperm.slane %v301_v32, 0  ;;  %v1628_v46 = vor.u32 %v1712_v29, %v1627_v28 }
  0x27   : > { %736 = vmatpush.bf16.msra.mxu1 %v1456_v5  ;;  %750 = vmatpush.bf16.msra.mxu2 %v1460_v6  ;;  %v1713_v36 = vld [vmem:[%s2506_s2 + $0x1f4] sm:$0xf0]  ;;  %v1709_v40 = vld [vmem:[%s2506_s2 + $0x1dc] sm:$0xf]  ;;  %v1718_v42 = vunpack.c.l.bf16 %v1717_v37  ;;  %v1719_v43 = vunpack.c.h.bf16 %v1717_v37  ;;  %v309_v44 = vperm.slane %v301_v32, 1  ;;  %v1632_v47 = vor.u32 %v1708_v30, %v1629_v31 }
  0x28   : > { %v1637_v41 = vld [vmem:[%s2506_s2 + $0x1f8] sm:$0xf0]  ;;  %v1636_v48 = vor.u32 %v1713_v36, %v1635_v35  ;;  %v1595_v49 = vld [vmem:[%s2506_s2 + $0x190] sm:$0xf]  ;;  %v1700_v51 = vld [vmem:[%s2506_s2 + $0x194] sm:$0xf] }
  0x29   : > { %764 = vmatpush.bf16.msra.mxu3 %v1464_v10  ;;  %v1704_v50 = vld [vmem:[%s2506_s2 + $0x1ac] sm:$0xf0]  ;;  %v307_v52 = vmul.f32 %v1718_v42, %v306_v38  ;;  %v308_v53 = vmul.f32 %v1719_v43, %v306_v38  ;;  %v1640_v54 = vor.u32 %v1709_v40, %v1637_v41  ;;  %v1597_v55 = vld [vmem:[%s2506_s2 + $0x1b0] sm:$0xf0]  ;;  %v1603_v56 = vld [vmem:[%s2506_s2 + $0x198] sm:$0xf] }
  0x2a   : > { %723 = vmatpush.bf16.msra.mxu0 %v1420_v17  ;;  %v1705_v57 = vld [vmem:[%s2506_s2 + $0x1b4] sm:$0xf0]  ;;  %v1701_v58 = vld [vmem:[%s2506_s2 + $0x19c] sm:$0xf]  ;;  %v1596_v62 = vor.u32 %v1704_v50, %v1595_v49  ;;  %v1563_v63 = vld [vmem:[%s2506_s2 + $0x150] sm:$0xf]  ;;  %v1600_v0 = vor.u32 %v1700_v51, %v1597_v55 }
  0x2b   : > { %737 = vmatpush.bf16.msra.mxu1 %v1424_v21  ;;  %751 = vmatpush.bf16.msra.mxu2 %v1428_v22  ;;  %v1605_v59 = vld [vmem:[%s2506_s2 + $0x1b8] sm:$0xf0]  ;;  %v310_v60 = vadd.f32 %v309_v44, %v307_v52  ;;  %v311_v61 = vadd.f32 %v309_v44, %v308_v53  ;;  %v1604_v1 = vor.u32 %v1705_v57, %v1603_v56  ;;  %v1696_v4 = vld [vmem:[%s2506_s2 + $0x16c] sm:$0xf0]  ;;  %v1692_v5 = vld [vmem:[%s2506_s2 + $0x154] sm:$0xf] }
  0x2c   : > { %v1608_v6 = vor.u32 %v1701_v58, %v1605_v59  ;;  %v1565_v7 = vld [vmem:[%s2506_s2 + $0x170] sm:$0xf0]  ;;  %v1571_v8 = vld [vmem:[%s2506_s2 + $0x158] sm:$0xf]  ;;  %v1693_v11 = vld [vmem:[%s2506_s2 + $0x15c] sm:$0xf]  ;;  %v1564_v13 = vor.u32 %v1696_v4, %v1563_v63 }
  0x2d   : > { %765 = vmatpush.bf16.msra.mxu3 %v1432_v26  ;;  %v312_v2 = vmax.f32 %v310_v60, 0.0  ;;  %v313_v3 = vmax.f32 %v311_v61, 0.0  ;;  %v1697_v9 = vld [vmem:[%s2506_s2 + $0x174] sm:$0xf0]  ;;  %v1573_v12 = vld [vmem:[%s2506_s2 + $0x178] sm:$0xf0]  ;;  %v1568_v14 = vor.u32 %v1692_v5, %v1565_v7 }
  0x2e   : > { %724 = vmatpush.bf16.msra.mxu0 %v1388_v33  ;;  %v1572_v15 = vor.u32 %v1697_v9, %v1571_v8  ;;  %v1531_v16 = vld [vmem:[%s2506_s2 + $0x110] sm:$0xf]  ;;  %v1684_v18 = vld [vmem:[%s2506_s2 + $0x114] sm:$0xf]  ;;  %v1576_v19 = vor.u32 %v1693_v11, %v1573_v12  ;;  %v1539_v21 = vld [vmem:[%s2506_s2 + $0x118] sm:$0xf] }
  0x2f   : > { %738 = vmatpush.bf16.msra.mxu1 %v1392_v34  ;;  %752 = vmatpush.bf16.msra.mxu2 %v1396_v39  ;;  %v2152_v10 = vpack.c.bf16 %v313_v3, %v312_v2  ;;  %v1688_v17 = vld [vmem:[%s2506_s2 + $0x12c] sm:$0xf0]  ;;  %v1533_v20 = vld [vmem:[%s2506_s2 + $0x130] sm:$0xf0]  ;;  %v1689_v22 = vld [vmem:[%s2506_s2 + $0x134] sm:$0xf0] }
  0x30   : > { %v1685_v23 = vld [vmem:[%s2506_s2 + $0x11c] sm:$0xf]  ;;  %v1532_v25 = vor.u32 %v1688_v17, %v1531_v16  ;;  %v1536_v26 = vor.u32 %v1684_v18, %v1533_v20  ;;  %v1540_v27 = vor.u32 %v1689_v22, %v1539_v21  ;;  %v1499_v28 = vld [vmem:[%s2506_s2 + $0xd0] sm:$0xf]  ;;  %v1676_v30 = vld [vmem:[%s2506_s2 + $0xd4] sm:$0xf] }
  0x31   : > { %766 = vmatpush.bf16.msra.mxu3 %v1400_v45  ;;  %v1541_v24 = vld [vmem:[%s2506_s2 + $0x138] sm:$0xf0]  ;;  %725 = vmatmul.bf16.vlgmr.msra.gmra.mxu0 %v2152_v10  ;;  %v1680_v29 = vld [vmem:[%s2506_s2 + $0xec] sm:$0xf0]  ;;  %v1501_v32 = vld [vmem:[%s2506_s2 + $0xf0] sm:$0xf0] }
  0x32   : > { %773 = vmatpush.bf16.msrb.mxu0 %v1628_v46  ;;  %753 = vmatmul.bf16.vlgmr.msra.gmra.mxu2 %v2152_v10  ;;  %v1544_v31 = vor.u32 %v1685_v23, %v1541_v24  ;;  %v1507_v33 = vld [vmem:[%s2506_s2 + $0xd8] sm:$0xf]  ;;  %v1677_v35 = vld [vmem:[%s2506_s2 + $0xdc] sm:$0xf]  ;;  %v1500_v37 = vor.u32 %v1680_v29, %v1499_v28  ;;  %v1504_v38 = vor.u32 %v1676_v30, %v1501_v32  ;;  %v1467_v40 = vld [vmem:[%s2506_s2 + $0x90] sm:$0xf] }
  0x33   : > { %787 = vmatpush.bf16.msrb.mxu1 %v1632_v47  ;;  %801 = vmatpush.bf16.msrb.mxu2 %v1636_v48  ;;  %v1681_v34 = vld [vmem:[%s2506_s2 + $0xf4] sm:$0xf0]  ;;  %v1509_v36 = vld [vmem:[%s2506_s2 + $0xf8] sm:$0xf0]  ;;  %v1672_v41 = vld [vmem:[%s2506_s2 + $0xac] sm:$0xf0] }
  0x34   : > { %767 = vmatmul.bf16.vlgmr.msra.gmra.mxu3 %v2152_v10  ;;  %739 = vmatmul.bf16.vlgmr.msra.gmra.mxu1 %v2152_v10  ;;  %v1508_v39 = vor.u32 %v1681_v34, %v1507_v33  ;;  %v1668_v42 = vld [vmem:[%s2506_s2 + $0x94] sm:$0xf]  ;;  %v1512_v43 = vor.u32 %v1677_v35, %v1509_v36  ;;  %v1475_v45 = vld [vmem:[%s2506_s2 + $0x98] sm:$0xf]  ;;  %v1669_v47 = vld [vmem:[%s2506_s2 + $0x9c] sm:$0xf]  ;;  %v1468_v49 = vor.u32 %v1672_v41, %v1467_v40 }
  0x35   : > { %815 = vmatpush.bf16.msrb.mxu3 %v1640_v54  ;;  %v1469_v44 = vld [vmem:[%s2506_s2 + $0xb0] sm:$0xf0]  ;;  %v1673_v46 = vld [vmem:[%s2506_s2 + $0xb4] sm:$0xf0]  ;;  %v1477_v48 = vld [vmem:[%s2506_s2 + $0xb8] sm:$0xf0] }
  0x36   : > { %774 = vmatpush.bf16.msrb.mxu0 %v1596_v62  ;;  %v1472_v50 = vor.u32 %v1668_v42, %v1469_v44  ;;  %v1476_v51 = vor.u32 %v1673_v46, %v1475_v45  ;;  %v1435_v52 = vld [vmem:[%s2506_s2 + $0x50] sm:$0xf]  ;;  %v1660_v54 = vld [vmem:[%s2506_s2 + $0x54] sm:$0xf]  ;;  %v1480_v55 = vor.u32 %v1669_v47, %v1477_v48  ;;  %v1443_v57 = vld [vmem:[%s2506_s2 + $0x58] sm:$0xf] }
  0x37   : > { %788 = vmatpush.bf16.msrb.mxu1 %v1600_v0  ;;  %802 = vmatpush.bf16.msrb.mxu2 %v1604_v1  ;;  %v1664_v53 = vld [vmem:[%s2506_s2 + $0x6c] sm:$0xf0]  ;;  %v1437_v56 = vld [vmem:[%s2506_s2 + $0x70] sm:$0xf0]  ;;  %v1665_v58 = vld [vmem:[%s2506_s2 + $0x74] sm:$0xf0] }
  0x38   : > { %v1661_v59 = vld [vmem:[%s2506_s2 + $0x5c] sm:$0xf]  ;;  %v1436_v61 = vor.u32 %v1664_v53, %v1435_v52  ;;  %v1440_v62 = vor.u32 %v1660_v54, %v1437_v56  ;;  %v1444_v63 = vor.u32 %v1665_v58, %v1443_v57  ;;  %v1403_v0 = vld [vmem:[%s2506_s2 + $0x10] sm:$0xf]  ;;  %v1652_v2 = vld [vmem:[%s2506_s2 + $0x14] sm:$0xf] }
  0x39   : > { %816 = vmatpush.bf16.msrb.mxu3 %v1608_v6  ;;  %v1445_v60 = vld [vmem:[%s2506_s2 + $0x78] sm:$0xf0]  ;;  %v1656_v1 = vld [vmem:[%s2506_s2 + $0x2c] sm:$0xf0]  ;;  %v1405_v4 = vld [vmem:[%s2506_s2 + $0x30] sm:$0xf0] }
  0x3a   : > { %775 = vmatpush.bf16.msrb.mxu0 %v1564_v13  ;;  %v1448_v3 = vor.u32 %v1661_v59, %v1445_v60  ;;  %v1411_v5 = vld [vmem:[%s2506_s2 + $0x18] sm:$0xf]  ;;  %v1653_v7 = vld [vmem:[%s2506_s2 + $0x1c] sm:$0xf]  ;;  %v1404_v9 = vor.u32 %v1656_v1, %v1403_v0  ;;  %v1408_v11 = vor.u32 %v1652_v2, %v1405_v4  ;;  %v1815_v54 = vmov (%p829_p8), 0.0  }
  0x3b   : > { %789 = vmatpush.bf16.msrb.mxu1 %v1568_v14  ;;  %803 = vmatpush.bf16.msrb.mxu2 %v1572_v15  ;;  %v1657_v6 = vld [vmem:[%s2506_s2 + $0x34] sm:$0xf0]  ;;  %v1413_v8 = vld [vmem:[%s2506_s2 + $0x38] sm:$0xf0]  ;;  %v379_v14 = vld [vmem:[#allocation2] sm:$0xff]  ;;  %835 = vst [vmem:[%s2508_s4] sm:$0xff] (%p829_p8), %v1815_v54 }
  0x3c   : > { %v1412_v12 = vor.u32 %v1657_v6, %v1411_v5  ;;  %v1416_v13 = vor.u32 %v1653_v7, %v1413_v8  ;;  %v381_v15 = vperm.slane %v379_v14, 0  ;;  %v382_v16 = vperm.slane %v379_v14, 1  ;;  %836 = vst [vmem:[%s2508_s4 + $0x8] sm:$0xff] (%p829_p8), %v1815_v54 }
  0x3d   : > { %817 = vmatpush.bf16.msrb.mxu3 %v1576_v19  ;;  %v383_v21 = vperm.slane %v379_v14, 2  ;;  %v384_v22 = vperm.slane %v379_v14, 3  ;;  %v385_v34 = vperm.slane %v379_v14, 4  ;;  %v386_v35 = vperm.slane %v379_v14, 5 }
  0x3e   : > { %776 = vmatpush.bf16.msrb.mxu0 %v1532_v25  ;;  %v387_v40 = vperm.slane %v379_v14, 6  ;;  %v388_v41 = vperm.slane %v379_v14, 7 }
  0x3f   : > { %790 = vmatpush.bf16.msrb.mxu1 %v1536_v26  ;;  %804 = vmatpush.bf16.msrb.mxu2 %v1540_v27 }
  0x41   : > { %818 = vmatpush.bf16.msrb.mxu3 %v1544_v31 }
  0x42   : > { %777 = vmatpush.bf16.msrb.mxu0 %v1500_v37 }
  0x43   : > { %791 = vmatpush.bf16.msrb.mxu1 %v1504_v38  ;;  %805 = vmatpush.bf16.msrb.mxu2 %v1508_v39 }
  0x45   : > { %819 = vmatpush.bf16.msrb.mxu3 %v1512_v43 }
  0x46   : > { %778 = vmatpush.bf16.msrb.mxu0 %v1468_v49 }
  0x47   : > { %792 = vmatpush.bf16.msrb.mxu1 %v1472_v50  ;;  %806 = vmatpush.bf16.msrb.mxu2 %v1476_v51 }
  0x49   : > { %820 = vmatpush.bf16.msrb.mxu3 %v1480_v55 }
  0x4a   : > { %779 = vmatpush.bf16.msrb.mxu0 %v1436_v61 }
  0x4b   : > { %793 = vmatpush.bf16.msrb.mxu1 %v1440_v62  ;;  %807 = vmatpush.bf16.msrb.mxu2 %v1444_v63 }
  0x4d   : > { %821 = vmatpush.bf16.msrb.mxu3 %v1448_v3 }
  0x4e   : > { %780 = vmatpush.bf16.msrb.mxu0 %v1404_v9 }
  0x4f   : > { %794 = vmatpush.bf16.msrb.mxu1 %v1408_v11  ;;  %808 = vmatpush.bf16.msrb.mxu2 %v1412_v12 }
  0x51   : > { %822 = vmatpush.bf16.msrb.mxu3 %v1416_v13  ;;  %781 = vmatmul.bf16.vlgmr.msrb.gmra.mxu0 %v2152_v10 }
  0x52   : > { %795 = vmatmul.bf16.vlgmr.msrb.gmra.mxu1 %v2152_v10  ;;  %809 = vmatmul.bf16.vlgmr.msrb.gmra.mxu2 %v2152_v10 }
  0x54   : > { %823 = vmatmul.bf16.vlgmr.msrb.gmra.mxu3 %v2152_v10 }
  0xae   : > { %v726_v17 = vpop.f32.mrf.mxu0 }
  0xaf   : > { %v2289_v18 = vadd.f32 %v726_v17, %v381_v15 }
  0xb1   : > { %v740_v19 = vpop.f32.mrf.mxu1 }
  0xb2   : > { %v2291_v20 = vadd.f32 %v740_v19, %v382_v16 }
  0xb5   : > { %v754_v23 = vpop.f32.mrf.mxu2 }
  0xb6   : > { %v2293_v24 = vadd.f32 %v754_v23, %v383_v21  ;;  %v728_v27 = vpop.f32.mrf.mxu0 }
  0xb7   : > { %v768_v25 = vpop.f32.mrf.mxu3  ;;  %v2297_v10 = vadd.f32 %v728_v27, %v381_v15 }
  0xb8   : > { %v2295_v26 = vadd.f32 %v768_v25, %v384_v22 }
  0xb9   : > { %v742_v28 = vpop.f32.mrf.mxu1 }
  0xba   : > { %v2299_v29 = vadd.f32 %v742_v28, %v382_v16 }
  0xbd   : > { %v756_v30 = vpop.f32.mrf.mxu2 }
  0xbe   : > { %v2301_v31 = vadd.f32 %v756_v30, %v383_v21 }
  0xbf   : > { %v770_v32 = vpop.f32.mrf.mxu3 }
  0xc0   : > { %v2303_v33 = vadd.f32 %v770_v32, %v384_v22 }
  0xce   : > { %v782_v36 = vpop.f32.mrf.mxu0 }
  0xcf   : > { %v2305_v37 = vadd.f32 %v782_v36, %v385_v34  ;;  %v796_v38 = vpop.f32.mrf.mxu1 }
  0xd0   : > { %v2307_v39 = vadd.f32 %v796_v38, %v386_v35 }
  0xd5   : > { %v810_v42 = vpop.f32.mrf.mxu2 }
  0xd6   : > { %v2309_v43 = vadd.f32 %v810_v42, %v387_v40  ;;  %v784_v45 = vpop.f32.mrf.mxu0 }
  0xd7   : > { %v824_v44 = vpop.f32.mrf.mxu3  ;;  %v2313_v47 = vadd.f32 %v784_v45, %v385_v34  ;;  %v798_v48 = vpop.f32.mrf.mxu1 }
  0xd8   : > { %v2311_v46 = vadd.f32 %v824_v44, %v388_v41  ;;  %v2315_v49 = vadd.f32 %v798_v48, %v386_v35 }
  0xdc   : > { %834 = sbr.rel (!%p829_p8) target bundleno = 225 (0xe1), region = 44 }
  0xdd   : > { %v812_v50 = vpop.f32.mrf.mxu2 }
  0xde   : > { %v2317_v51 = vadd.f32 %v812_v50, %v387_v40 }
  0xdf   : > { %v826_v52 = vpop.f32.mrf.mxu3 }
  0xe0   : > { %v2319_v53 = vadd.f32 %v826_v52, %v388_v41 }
  0xe1 PF: > { %v838_v55 = vadd.f32 %v2297_v10, %v2289_v18  ;;  %v845_v56 = vadd.f32 %v2299_v29, %v2291_v20  ;;  %v852_v57 = vadd.f32 %v2301_v31, %v2293_v24  ;;  %v859_v58 = vadd.f32 %v2303_v33, %v2295_v26  ;;  %p1244_p9 = scmp.eq.s32.totalorder %s1804_s21, 1 }
  0xe2   : > { %v866_v59 = vadd.f32 %v2313_v47, %v2305_v37  ;;  %v873_v60 = vadd.f32 %v2315_v49, %v2307_v39  ;;  %v880_v61 = vadd.f32 %v2317_v51, %v2309_v43  ;;  %v887_v62 = vadd.f32 %v2319_v53, %v2311_v46 }
  0xe3   : > { %v839_v63 = vrot.slane %v838_v55, 4  ;;  %v846_v0 = vrot.slane %v845_v56, 4  ;;  %v853_v1 = vrot.slane %v852_v57, 4  ;;  %v860_v2 = vrot.slane %v859_v58, 4 }
  0xe4   : > { %v867_v3 = vrot.slane %v866_v59, 4  ;;  %v874_v4 = vrot.slane %v873_v60, 4  ;;  %v881_v5 = vrot.slane %v880_v61, 4  ;;  %v888_v6 = vrot.slane %v887_v62, 4 }
  0xe5   : > { %v840_v7 = vadd.f32 %v839_v63, %v838_v55  ;;  %v847_v8 = vadd.f32 %v846_v0, %v845_v56  ;;  %v854_v9 = vadd.f32 %v853_v1, %v852_v57  ;;  %v861_v11 = vadd.f32 %v860_v2, %v859_v58 }
  0xe6   : > { %v868_v12 = vadd.f32 %v867_v3, %v866_v59  ;;  %v875_v13 = vadd.f32 %v874_v4, %v873_v60  ;;  %v882_v14 = vadd.f32 %v881_v5, %v880_v61  ;;  %v889_v15 = vadd.f32 %v888_v6, %v887_v62 }
  0xe7   : > { %v841_v16 = vrot.slane %v840_v7, 2  ;;  %v848_v17 = vrot.slane %v847_v8, 2  ;;  %v855_v19 = vrot.slane %v854_v9, 2  ;;  %v862_v21 = vrot.slane %v861_v11, 2 }
  0xe8   : > { %v869_v22 = vrot.slane %v868_v12, 2  ;;  %v876_v23 = vrot.slane %v875_v13, 2  ;;  %v883_v25 = vrot.slane %v882_v14, 2  ;;  %v890_v27 = vrot.slane %v889_v15, 2 }
  0xe9   : > { %v842_v28 = vadd.f32 %v841_v16, %v840_v7  ;;  %v849_v30 = vadd.f32 %v848_v17, %v847_v8  ;;  %v856_v32 = vadd.f32 %v855_v19, %v854_v9  ;;  %v863_v34 = vadd.f32 %v862_v21, %v861_v11  ;;  %v837_v9 = vld [vmem:[%s2508_s4] ss:$2 sm:$0xff] }
  0xea   : > { %v870_v35 = vadd.f32 %v869_v22, %v868_v12  ;;  %v877_v36 = vadd.f32 %v876_v23, %v875_v13  ;;  %v884_v38 = vadd.f32 %v883_v25, %v882_v14  ;;  %v891_v40 = vadd.f32 %v890_v27, %v889_v15 }
  0xeb   : > { %v843_v41 = vrot.slane %v842_v28, 1  ;;  %v850_v42 = vrot.slane %v849_v30, 1  ;;  %v857_v44 = vrot.slane %v856_v32, 1  ;;  %v864_v45 = vrot.slane %v863_v34, 1 }
  0xec   : > { %v871_v48 = vrot.slane %v870_v35, 1  ;;  %v878_v50 = vrot.slane %v877_v36, 1  ;;  %v885_v52 = vrot.slane %v884_v38, 1  ;;  %v892_v54 = vrot.slane %v891_v40, 1 }
  0xed   : > { %v844_v55 = vadd.f32 %v843_v41, %v842_v28  ;;  %v851_v56 = vadd.f32 %v850_v42, %v849_v30  ;;  %v858_v57 = vadd.f32 %v857_v44, %v856_v32  ;;  %v865_v58 = vadd.f32 %v864_v45, %v863_v34 }
  0xee   : > { %v872_v59 = vadd.f32 %v871_v48, %v870_v35  ;;  %v879_v60 = vadd.f32 %v878_v50, %v877_v36  ;;  %v886_v61 = vadd.f32 %v885_v52, %v884_v38  ;;  %v893_v62 = vadd.f32 %v892_v54, %v891_v40 }
  0xef   : > { %v902_v63 = vrot.slane %v851_v56, 7  ;;  %v903_v0 = vrot.slane %v858_v57, 6  ;;  %v904_v1 = vrot.slane %v865_v58, 5  ;;  %vm909_vm0 = vcmask 1040384  }
  0xf0   : > { %v905_v2 = vrot.slane %v872_v59, 4  ;;  %v906_v3 = vrot.slane %v879_v60, 3  ;;  %v907_v4 = vrot.slane %v886_v61, 2  ;;  %v908_v5 = vrot.slane %v893_v62, 1 }
  0xf1   : > { %v910_v6 = vsel %vm909_vm0, %v844_v55, %v902_v63  ;;  %vm911_vm1 = vcmask 1042434   ;;  %vm913_vm2 = vcmask 1041408   ;;  %vm915_vm3 = vcmask 1044484  }
  0xf2   : > { %v912_v7 = vsel %vm911_vm1, %v903_v0, %v904_v1  ;;  %v916_v8 = vsel %vm915_vm3, %v905_v2, %v906_v3  ;;  %vm917_vm4 = vcmask 1046534   ;;  %vm919_vm5 = vcmask 1045508  }
  0xf3   : > { %v914_v11 = vsel %vm913_vm2, %v910_v6, %v912_v7  ;;  %v918_v12 = vsel %vm917_vm4, %v907_v4, %v908_v5  ;;  %vm921_vm6 = vcmask 1043456   ;;  %v928_v13 = vmul.f32 %v2289_v18, %v2289_v18 }
  0xf4   : > { %v920_v14 = vsel %vm919_vm5, %v916_v8, %v918_v12  ;;  %v929_v15 = vmul.f32 %v2291_v20, %v2291_v20  ;;  %v930_v16 = vmul.f32 %v2293_v24, %v2293_v24  ;;  %v931_v17 = vmul.f32 %v2295_v26, %v2295_v26 }
  0xf5   : > { %v922_v19 = vsel %vm921_vm6, %v914_v11, %v920_v14  ;;  %v932_v21 = vmul.f32 %v2305_v37, %v2305_v37  ;;  %v933_v22 = vmul.f32 %v2307_v39, %v2307_v39  ;;  %v934_v23 = vmul.f32 %v2309_v43, %v2309_v43 }
  0xf6   : > { %v924_v25 = vadd.f32 %v922_v19, %v837_v9  ;;  %v935_v27 = vmul.f32 %v2311_v46, %v2311_v46  ;;  %v936_v28 = vmul.f32 %v2297_v10, %v2297_v10  ;;  %v937_v30 = vmul.f32 %v2299_v29, %v2299_v29 }
  0xf7   : > { %v938_v32 = vmul.f32 %v2301_v31, %v2301_v31  ;;  %v939_v34 = vmul.f32 %v2303_v33, %v2303_v33  ;;  %v940_v35 = vmul.f32 %v2313_v47, %v2313_v47  ;;  %v941_v36 = vmul.f32 %v2315_v49, %v2315_v49 }
  0xf8   : > { %925 = vst [vmem:[%s2508_s4] ss:$2 sm:$0xff] %v924_v25  ;;  %v942_v38 = vmul.f32 %v2317_v51, %v2317_v51  ;;  %v943_v40 = vmul.f32 %v2319_v53, %v2319_v53  ;;  %v944_v41 = vadd.f32 %v936_v28, %v928_v13  ;;  %v951_v42 = vadd.f32 %v937_v30, %v929_v15 }
  0xf9   : > { %v958_v44 = vadd.f32 %v938_v32, %v930_v16  ;;  %v965_v45 = vadd.f32 %v939_v34, %v931_v17  ;;  %v972_v48 = vadd.f32 %v940_v35, %v932_v21  ;;  %v979_v50 = vadd.f32 %v941_v36, %v933_v22 }
  0xfa   : > { %v945_v52 = vrot.slane %v944_v41, 4  ;;  %v952_v54 = vrot.slane %v951_v42, 4  ;;  %v986_v55 = vadd.f32 %v942_v38, %v934_v23  ;;  %v993_v56 = vadd.f32 %v943_v40, %v935_v27 }
  0xfb   : > { %v959_v57 = vrot.slane %v958_v44, 4  ;;  %v966_v58 = vrot.slane %v965_v45, 4  ;;  %v973_v59 = vrot.slane %v972_v48, 4  ;;  %v980_v60 = vrot.slane %v979_v50, 4 }
  0xfc   : > { %v946_v61 = vadd.f32 %v945_v52, %v944_v41  ;;  %v953_v62 = vadd.f32 %v952_v54, %v951_v42  ;;  %v987_v63 = vrot.slane %v986_v55, 4  ;;  %v994_v0 = vrot.slane %v993_v56, 4 }
  0xfd   : > { %v960_v1 = vadd.f32 %v959_v57, %v958_v44  ;;  %v967_v2 = vadd.f32 %v966_v58, %v965_v45  ;;  %v974_v3 = vadd.f32 %v973_v59, %v972_v48  ;;  %v981_v4 = vadd.f32 %v980_v60, %v979_v50 }
  0xfe   : > { %v947_v5 = vrot.slane %v946_v61, 2  ;;  %v954_v6 = vrot.slane %v953_v62, 2  ;;  %v988_v7 = vadd.f32 %v987_v63, %v986_v55  ;;  %v995_v8 = vadd.f32 %v994_v0, %v993_v56 }
  0xff   : > { %v961_v9 = vrot.slane %v960_v1, 2  ;;  %v968_v11 = vrot.slane %v967_v2, 2  ;;  %v975_v12 = vrot.slane %v974_v3, 2  ;;  %v982_v13 = vrot.slane %v981_v4, 2 }
 0x100   : > { %v948_v14 = vadd.f32 %v947_v5, %v946_v61  ;;  %v955_v15 = vadd.f32 %v954_v6, %v953_v62  ;;  %v989_v16 = vrot.slane %v988_v7, 2  ;;  %v996_v17 = vrot.slane %v995_v8, 2  ;;  %v1642_v5 = vld [vmem:[%s2508_s4 + $0x1] ss:$2 sm:$0xff] }
 0x101   : > { %v962_v19 = vadd.f32 %v961_v9, %v960_v1  ;;  %v969_v21 = vadd.f32 %v968_v11, %v967_v2  ;;  %v976_v22 = vadd.f32 %v975_v12, %v974_v3  ;;  %v983_v23 = vadd.f32 %v982_v13, %v981_v4 }
 0x102   : > { %v949_v25 = vrot.slane %v948_v14, 1  ;;  %v956_v27 = vrot.slane %v955_v15, 1  ;;  %v990_v28 = vadd.f32 %v989_v16, %v988_v7  ;;  %v997_v30 = vadd.f32 %v996_v17, %v995_v8 }
 0x103   : > { %v963_v32 = vrot.slane %v962_v19, 1  ;;  %v970_v34 = vrot.slane %v969_v21, 1  ;;  %v977_v35 = vrot.slane %v976_v22, 1  ;;  %v984_v36 = vrot.slane %v983_v23, 1 }
 0x104   : > { %v950_v38 = vadd.f32 %v949_v25, %v948_v14  ;;  %v957_v40 = vadd.f32 %v956_v27, %v955_v15  ;;  %v991_v41 = vrot.slane %v990_v28, 1  ;;  %v998_v42 = vrot.slane %v997_v30, 1 }
 0x105   : > { %v964_v44 = vadd.f32 %v963_v32, %v962_v19  ;;  %v971_v45 = vadd.f32 %v970_v34, %v969_v21  ;;  %v978_v48 = vadd.f32 %v977_v35, %v976_v22  ;;  %v985_v50 = vadd.f32 %v984_v36, %v983_v23 }
 0x106   : > { %v992_v52 = vadd.f32 %v991_v41, %v990_v28  ;;  %v999_v54 = vadd.f32 %v998_v42, %v997_v30  ;;  %v1008_v55 = vrot.slane %v957_v40, 7  ;;  %v1025_v56 = vmax.f32 %v2289_v18, %v2297_v10 }
 0x107   : > { %v1009_v57 = vrot.slane %v964_v44, 6  ;;  %v1010_v58 = vrot.slane %v971_v45, 5  ;;  %v1011_v59 = vrot.slane %v978_v48, 4  ;;  %v1012_v60 = vrot.slane %v985_v50, 3 }
 0x108   : > { %v1013_v61 = vrot.slane %v992_v52, 2  ;;  %v1014_v62 = vrot.slane %v999_v54, 1  ;;  %v1015_v63 = vsel %vm909_vm0, %v950_v38, %v1008_v55  ;;  %v1026_v0 = vrot.slane %v1025_v56, 4 }
 0x109   : > { %v1016_v1 = vsel %vm911_vm1, %v1009_v57, %v1010_v58  ;;  %v1018_v2 = vsel %vm915_vm3, %v1011_v59, %v1012_v60  ;;  %v1032_v3 = vmax.f32 %v2291_v20, %v2299_v29  ;;  %v1039_v4 = vmax.f32 %v2293_v24, %v2301_v31 }
 0x10a   : > { %v1017_v6 = vsel %vm913_vm2, %v1015_v63, %v1016_v1  ;;  %v1019_v7 = vsel %vm917_vm4, %v1013_v61, %v1014_v62  ;;  %v1027_v8 = vmax.f32 %v1025_v56, %v1026_v0  ;;  %v1046_v9 = vmax.f32 %v2295_v26, %v2303_v33 }
 0x10b   : > { %v1020_v11 = vsel %vm919_vm5, %v1018_v2, %v1019_v7  ;;  %v1033_v12 = vrot.slane %v1032_v3, 4  ;;  %v1040_v13 = vrot.slane %v1039_v4, 4  ;;  %v1053_v14 = vmax.f32 %v2305_v37, %v2313_v47 }
 0x10c   : > { %v1021_v15 = vsel %vm921_vm6, %v1017_v6, %v1020_v11  ;;  %v1028_v16 = vrot.slane %v1027_v8, 2  ;;  %v1047_v17 = vrot.slane %v1046_v9, 4  ;;  %v1060_v19 = vmax.f32 %v2307_v39, %v2315_v49 }
 0x10d   : > { %v1023_v21 = vadd.f32 %v1642_v5, %v1021_v15  ;;  %v1034_v22 = vmax.f32 %v1032_v3, %v1033_v12  ;;  %v1041_v23 = vmax.f32 %v1039_v4, %v1040_v13  ;;  %v1054_v25 = vrot.slane %v1053_v14, 4 }
 0x10e   : > { %v1029_v27 = vmax.f32 %v1027_v8, %v1028_v16  ;;  %v1048_v28 = vmax.f32 %v1046_v9, %v1047_v17  ;;  %v1061_v30 = vrot.slane %v1060_v19, 4  ;;  %v1067_v32 = vmax.f32 %v2309_v43, %v2317_v51 }
 0x10f   : > { %1643 = vst [vmem:[%s2508_s4 + $0x1] ss:$2 sm:$0xff] %v1023_v21  ;;  %v1035_v34 = vrot.slane %v1034_v22, 2  ;;  %v1042_v35 = vrot.slane %v1041_v23, 2  ;;  %v1055_v36 = vmax.f32 %v1053_v14, %v1054_v25  ;;  %v1074_v38 = vmax.f32 %v2311_v46, %v2319_v53 }
 0x110   : > { %v1030_v40 = vrot.slane %v1029_v27, 1  ;;  %v1049_v41 = vrot.slane %v1048_v28, 2  ;;  %v1062_v42 = vmax.f32 %v1060_v19, %v1061_v30  ;;  %v1068_v44 = vrot.slane %v1067_v32, 4 }
 0x111   : > { %v1036_v45 = vmax.f32 %v1034_v22, %v1035_v34  ;;  %v1043_v48 = vmax.f32 %v1041_v23, %v1042_v35  ;;  %v1056_v50 = vrot.slane %v1055_v36, 2  ;;  %v1075_v52 = vrot.slane %v1074_v38, 4 }
 0x112   : > { %v2420_v54 = vmax.f32 %v1029_v27, %v1030_v40  ;;  %v1050_v55 = vmax.f32 %v1048_v28, %v1049_v41  ;;  %v1063_v56 = vrot.slane %v1062_v42, 2  ;;  %v1069_v57 = vmax.f32 %v1067_v32, %v1068_v44 }
 0x113   : > { %v1037_v58 = vrot.slane %v1036_v45, 1  ;;  %v1044_v59 = vrot.slane %v1043_v48, 1  ;;  %v1057_v60 = vmax.f32 %v1055_v36, %v1056_v50  ;;  %v1076_v61 = vmax.f32 %v1074_v38, %v1075_v52 }
 0x114   : > { %v1051_v62 = vrot.slane %v1050_v55, 1  ;;  %v1064_v63 = vmax.f32 %v1062_v42, %v1063_v56  ;;  %v1070_v0 = vrot.slane %v1069_v57, 2  ;;  %v1081_v1 = vmin.f32 %v2289_v18, %v2297_v10 }
 0x115   : > { %v2424_v2 = vmax.f32 %v1036_v45, %v1037_v58  ;;  %v2426_v3 = vmax.f32 %v1043_v48, %v1044_v59  ;;  %v1058_v4 = vrot.slane %v1057_v60, 1  ;;  %v1077_v5 = vrot.slane %v1076_v61, 2 }
 0x116   : > { %v2428_v6 = vmax.f32 %v1050_v55, %v1051_v62  ;;  %v1065_v7 = vrot.slane %v1064_v63, 1  ;;  %v1071_v8 = vmax.f32 %v1069_v57, %v1070_v0  ;;  %v1082_v9 = vrot.slane %v1081_v1, 4 }
 0x117   : > { %v2430_v11 = vmax.f32 %v1057_v60, %v1058_v4  ;;  %v1078_v12 = vmax.f32 %v1076_v61, %v1077_v5  ;;  %v1088_v13 = vmin.f32 %v2291_v20, %v2299_v29  ;;  %v1095_v18 = vmin.f32 %v2293_v24, %v2301_v31 }
 0x118   : > { %v2436_v10 = vmax.f32 %v1064_v63, %v1065_v7  ;;  %v1072_v14 = vrot.slane %v1071_v8, 1  ;;  %v1083_v15 = vmin.f32 %v1081_v1, %v1082_v9  ;;  %v1102_v16 = vmin.f32 %v2295_v26, %v2303_v33 }
 0x119   : > { %v1079_v17 = vrot.slane %v1078_v12, 1  ;;  %v1089_v19 = vrot.slane %v1088_v13, 4  ;;  %v1096_v21 = vrot.slane %v1095_v18, 4  ;;  %v1109_v22 = vmin.f32 %v2305_v37, %v2313_v47 }
 0x11a   : > { %v2442_v23 = vmax.f32 %v1071_v8, %v1072_v14  ;;  %v1084_v25 = vrot.slane %v1083_v15, 2  ;;  %v1103_v20 = vrot.slane %v1102_v16, 4  ;;  %v1116_v24 = vmin.f32 %v2307_v39, %v2315_v49 }
 0x11b   : > { %v1080_v29 = vmax.f32 %v1078_v12, %v1079_v17  ;;  %v1090_v31 = vmin.f32 %v1088_v13, %v1089_v19  ;;  %v1097_v27 = vmin.f32 %v1095_v18, %v1096_v21  ;;  %v1110_v28 = vrot.slane %v1109_v22, 4 }
 0x11c   : > { %v1085_v30 = vmin.f32 %v1083_v15, %v1084_v25  ;;  %v1104_v32 = vmin.f32 %v1102_v16, %v1103_v20  ;;  %v1117_v26 = vrot.slane %v1116_v24, 4  ;;  %v1123_v33 = vmin.f32 %v2309_v43, %v2317_v51 }
 0x11d   : > { %v1091_v34 = vrot.slane %v1090_v31, 2  ;;  %v1098_v35 = vrot.slane %v1097_v27, 2  ;;  %v1111_v37 = vmin.f32 %v1109_v22, %v1110_v28  ;;  %v1130_v47 = vmin.f32 %v2311_v46, %v2319_v53 }
 0x11e   : > { %v1086_v36 = vrot.slane %v1085_v30, 1  ;;  %v1105_v38 = vrot.slane %v1104_v32, 2  ;;  %v1118_v40 = vmin.f32 %v1116_v24, %v1117_v26  ;;  %v1124_v39 = vrot.slane %v1123_v33, 4 }
 0x11f   : > { %v1092_v49 = vmin.f32 %v1090_v31, %v1091_v34  ;;  %v1099_v41 = vmin.f32 %v1097_v27, %v1098_v35  ;;  %v1112_v42 = vrot.slane %v1111_v37, 2  ;;  %v1131_v44 = vrot.slane %v1130_v47, 4  ;;  %v1249_v35 = vld [vmem:[%s2508_s4] ss:$2 sm:$0xff] (%p1244_p9) }
 0x120   : > { %v1087_v45 = vmin.f32 %v1085_v30, %v1086_v36  ;;  %v1106_v48 = vmin.f32 %v1104_v32, %v1105_v38  ;;  %v1119_v50 = vrot.slane %v1118_v40, 2  ;;  %v1125_v52 = vmin.f32 %v1123_v33, %v1124_v39 }
 0x121   : > { %v1093_v55 = vrot.slane %v1092_v49, 1  ;;  %v1100_v43 = vrot.slane %v1099_v41, 1  ;;  %v1113_v51 = vmin.f32 %v1111_v37, %v1112_v42  ;;  %v1132_v56 = vmin.f32 %v1130_v47, %v1131_v44  ;;  %v1645_v37 = vld [vmem:[%s2508_s4 + $0x1] ss:$2 sm:$0xff] (%p1244_p9) }
 0x122   : > { %v1107_v57 = vrot.slane %v1106_v48, 1  ;;  %v1120_v58 = vmin.f32 %v1118_v40, %v1119_v50  ;;  %v1126_v59 = vrot.slane %v1125_v52, 2  ;;  %v1148_v46 = vrot.slane %v2424_v2, 7 }
 0x123   : > { %v1094_v53 = vmin.f32 %v1092_v49, %v1093_v55  ;;  %v1101_v60 = vmin.f32 %v1099_v41, %v1100_v43  ;;  %v1114_v61 = vrot.slane %v1113_v51, 1  ;;  %v1133_v62 = vrot.slane %v1132_v56, 2 }
 0x124   : > { %v1108_v63 = vmin.f32 %v1106_v48, %v1107_v57  ;;  %v1121_v0 = vrot.slane %v1120_v58, 1  ;;  %v1127_v1 = vmin.f32 %v1125_v52, %v1126_v59  ;;  %v1149_v4 = vrot.slane %v2426_v3, 6 }
 0x125   : > { %v1115_v5 = vmin.f32 %v1113_v51, %v1114_v61  ;;  %v1134_v7 = vmin.f32 %v1132_v56, %v1133_v62  ;;  %v1150_v8 = vrot.slane %v2428_v6, 5  ;;  %v1151_v9 = vrot.slane %v2430_v11, 4 }
 0x126   : > { %v1122_v12 = vmin.f32 %v1120_v58, %v1121_v0  ;;  %v1128_v13 = vrot.slane %v1127_v1, 1  ;;  %v1152_v18 = vrot.slane %v2436_v10, 3  ;;  %v1153_v2 = vrot.slane %v2442_v23, 2 }
 0x127   : > { %v1135_v14 = vrot.slane %v1134_v7, 1  ;;  %v1154_v15 = vrot.slane %v1080_v29, 1  ;;  %v1155_v16 = vsel %vm909_vm0, %v2420_v54, %v1148_v46  ;;  %v1156_v17 = vsel %vm911_vm1, %v1149_v4, %v1150_v8 }
 0x128   : > { %v1129_v3 = vmin.f32 %v1127_v1, %v1128_v13  ;;  %v1157_v19 = vsel %vm913_vm2, %v1155_v16, %v1156_v17  ;;  %v1158_v6 = vsel %vm915_vm3, %v1151_v9, %v1152_v18  ;;  %v1172_v11 = vrot.slane %v1094_v53, 7 }
 0x129   : > { %v1136_v21 = vmin.f32 %v1134_v7, %v1135_v14  ;;  %v1159_v22 = vsel %vm917_vm4, %v1153_v2, %v1154_v15  ;;  %v1173_v10 = vrot.slane %v1101_v60, 6  ;;  %v1174_v23 = vrot.slane %v1108_v63, 5 }
 0x12a   : > { %v1160_v25 = vsel %vm919_vm5, %v1158_v6, %v1159_v22  ;;  %v1175_v20 = vrot.slane %v1115_v5, 4  ;;  %v1176_v24 = vrot.slane %v1122_v12, 3  ;;  %v1177_v54 = vrot.slane %v1129_v3, 2 }
 0x12b   : > { %v1161_v29 = vsel %vm921_vm6, %v1157_v19, %v1160_v25  ;;  %v1178_v31 = vrot.slane %v1136_v21, 1  ;;  %v1179_v27 = vsel %vm909_vm0, %v1087_v45, %v1172_v11  ;;  %v1180_v28 = vsel %vm911_vm1, %v1173_v10, %v1174_v23 }
 0x12c   : > { %1163 = vst [vmem:[%s296_s11] sm:$0xff] %v1161_v29  ;;  %v1181_v30 = vsel %vm913_vm2, %v1179_v27, %v1180_v28  ;;  %v1182_v32 = vsel %vm915_vm3, %v1175_v20, %v1176_v24  ;;  %1248 = sbr.rel (!%p1244_p9) target bundleno = 307 (0x133), region = 56  ;;  %v1251_v47 = vmul.f32 (%p1244_p9), 0.03125, %v1249_v35  ;;  %v1252_v36 = vmul.f32 (%p1244_p9), 0.03125, %v1645_v37 }
 0x12d   : > { %v1183_v26 = vsel %vm917_vm4, %v1177_v54, %v1178_v31 }
 0x12e   : > { %v1184_v33 = vsel %vm919_vm5, %v1182_v32, %v1183_v26  ;;  %1255 = vst [vmem:[%s2508_s4] ss:$2 sm:$0xff] (%p1244_p9), %v1251_v47  ;;  %v1253_v38 = vmul.f32 (%p1244_p9), %v1251_v47, %v1251_v47 }
 0x12f   : > { %v1185_v34 = vsel %vm921_vm6, %v1181_v30, %v1184_v33 }
 0x130   : > { %1187 = vst [vmem:[%s300_s14] sm:$0xff] %v1185_v34  ;;  %v1254_v40 = vsub.f32 (%p1244_p9), %v1252_v36, %v1253_v38 }
 0x132   : > { %1646 = vst [vmem:[%s2508_s4 + $0x1] ss:$2 sm:$0xff] %v1254_v40 }
 0x133 PF: > { %s18_s23 = sadd.s32 1, %s1812_s23   ;;  %s2511_s21 = smov %s1808_s22 }
 0x134   : > { %p15_p10 = scmp.ge.s32.totalorder %s18_s23, 4   ;;  %s2512_s22 = smov %s2514_s25 }
 0x136   :  { %17 = sbr.rel (!%p15_p10) target bundleno = 2 (0x2), region = 108 }
 0x13b   :  { %1296 = vsyncpa [#allocation3], 1 }
 0x13c   :  { %1298 = vsyncpa [#allocation3 + $0x1], 1 }

// kernel: stn3d_forward.7
= control target key start
LH: loop header
LB: loop body
LE: loop exit
PB: predicated region body
PF: predicated region fallthrough
CT: control target
= control target key end

     0   :  { %s7140_s4 = inlined_call_operand.vmem [shape: bf16[1024,512], index: 4, kind: input, shape index: {}]   ;;  %s7141_s0 = inlined_call_operand.vmem [shape: f32[2,1,1024], index: 0, kind: input, shape index: {}]   ;;  %s7142_s2 = inlined_call_operand.vmem [shape: f32[2,1024], index: 2, kind: input, shape index: {}]   ;;  %s7143_s1 = inlined_call_operand.vmem [shape: f32[2,1,1024], index: 1, kind: input, shape index: {}]   ;;  %s7144_s3 = inlined_call_operand.vmem [shape: f32[2,1024], index: 3, kind: input, shape index: {}]   ;;  %s7145_s5 = inlined_call_operand.vmem [shape: f32[3,512], index: 5, kind: input, shape index: {}]   ;;  %s7146_s6 = inlined_call_operand.vmem [shape: bf16[512,256], index: 6, kind: input, shape index: {}]   ;;  %s7147_s7 = inlined_call_operand.vmem [shape: f32[3,256], index: 7, kind: input, shape index: {}]   ;;  %s7148_s9 = inlined_call_operand.vmem [shape: f32[1,9], index: 9, kind: input, shape index: {}]   ;;  %s7149_s8 = inlined_call_operand.vmem [shape: f32[256,9], index: 8, kind: input, shape index: {}]   ;;  %s7150_s10 = inlined_call_operand.vmem [shape: f32[2,9], index: 10, kind: output, shape index: {}]  }
   0x1   :  { %v3171_v0 = vld [vmem:[%s7140_s4 + $0xe0] sm:$0xf]  ;;  %v4367_v1 = vld [vmem:[%s7140_s4 + $0xec] sm:$0xf0] }
   0x2   :  { %v3299_v2 = vld [vmem:[%s7140_s4 + $0x1e0] sm:$0xf]  ;;  %v3172_v3 = vor.u32 %v4367_v1, %v3171_v0  ;;  %v4399_v4 = vld [vmem:[%s7140_s4 + $0x1ec] sm:$0xf0] }
   0x3   :  { %v3427_v5 = vld [vmem:[%s7140_s4 + $0x2e0] sm:$0xf]  ;;  %v4431_v6 = vld [vmem:[%s7140_s4 + $0x2ec] sm:$0xf0]  ;;  %v3300_v7 = vor.u32 %v4399_v4, %v3299_v2 }
   0x4   :  { %v3428_v8 = vor.u32 %v4431_v6, %v3427_v5  ;;  %v3555_v9 = vld [vmem:[%s7140_s4 + $0x3e0] sm:$0xf]  ;;  %v4463_v10 = vld [vmem:[%s7140_s4 + $0x3ec] sm:$0xf0]  ;;  %1815 = vmatpush.bf16.msra.mxu0 %v3172_v3 }
   0x5   :  { %v3155_v11 = vld [vmem:[%s7140_s4 + $0xc0] sm:$0xf]  ;;  %v3556_v12 = vor.u32 %v4463_v10, %v3555_v9  ;;  %v4363_v13 = vld [vmem:[%s7140_s4 + $0xcc] sm:$0xf0]  ;;  %1828 = vmatpush.bf16.msra.mxu1 %v3300_v7 }
   0x6   :  { %v3283_v14 = vld [vmem:[%s7140_s4 + $0x1c0] sm:$0xf]  ;;  %v4395_v15 = vld [vmem:[%s7140_s4 + $0x1cc] sm:$0xf0]  ;;  %1841 = vmatpush.bf16.msra.mxu2 %v3428_v8  ;;  %v3156_v16 = vor.u32 %v4363_v13, %v3155_v11 }
   0x7   :  { %v3284_v17 = vor.u32 %v4395_v15, %v3283_v14  ;;  %v3411_v18 = vld [vmem:[%s7140_s4 + $0x2c0] sm:$0xf]  ;;  %v4427_v19 = vld [vmem:[%s7140_s4 + $0x2cc] sm:$0xf0]  ;;  %1854 = vmatpush.bf16.msra.mxu3 %v3556_v12 }
   0x8   :  { %v3539_v20 = vld [vmem:[%s7140_s4 + $0x3c0] sm:$0xf]  ;;  %v3412_v21 = vor.u32 %v4427_v19, %v3411_v18  ;;  %v4459_v22 = vld [vmem:[%s7140_s4 + $0x3cc] sm:$0xf0]  ;;  %1816 = vmatpush.bf16.msra.mxu0 %v3156_v16 }
   0x9   :  { %v3139_v23 = vld [vmem:[%s7140_s4 + $0xa0] sm:$0xf]  ;;  %v4359_v24 = vld [vmem:[%s7140_s4 + $0xac] sm:$0xf0]  ;;  %v3540_v25 = vor.u32 %v4459_v22, %v3539_v20  ;;  %1829 = vmatpush.bf16.msra.mxu1 %v3284_v17 }
   0xa   :  { %v3267_v26 = vld [vmem:[%s7140_s4 + $0x1a0] sm:$0xf]  ;;  %v4391_v27 = vld [vmem:[%s7140_s4 + $0x1ac] sm:$0xf0]  ;;  %v3140_v29 = vor.u32 %v4359_v24, %v3139_v23  ;;  %1842 = vmatpush.bf16.msra.mxu2 %v3412_v21 }
   0xb   :  { %v3395_v28 = vld [vmem:[%s7140_s4 + $0x2a0] sm:$0xf]  ;;  %v4423_v30 = vld [vmem:[%s7140_s4 + $0x2ac] sm:$0xf0]  ;;  %v3268_v33 = vor.u32 %v4391_v27, %v3267_v26  ;;  %1855 = vmatpush.bf16.msra.mxu3 %v3540_v25 }
   0xc   :  { %v3523_v31 = vld [vmem:[%s7140_s4 + $0x3a0] sm:$0xf]  ;;  %v4455_v32 = vld [vmem:[%s7140_s4 + $0x3ac] sm:$0xf0]  ;;  %v3396_v34 = vor.u32 %v4423_v30, %v3395_v28  ;;  %1817 = vmatpush.bf16.msra.mxu0 %v3140_v29 }
   0xd   :  { %v3123_v35 = vld [vmem:[%s7140_s4 + $0x80] sm:$0xf]  ;;  %v4355_v36 = vld [vmem:[%s7140_s4 + $0x8c] sm:$0xf0]  ;;  %v3524_v38 = vor.u32 %v4455_v32, %v3523_v31  ;;  %1830 = vmatpush.bf16.msra.mxu1 %v3268_v33 }
   0xe   :  { %v3251_v37 = vld [vmem:[%s7140_s4 + $0x180] sm:$0xf]  ;;  %v4387_v39 = vld [vmem:[%s7140_s4 + $0x18c] sm:$0xf0]  ;;  %v3124_v44 = vor.u32 %v4355_v36, %v3123_v35  ;;  %1843 = vmatpush.bf16.msra.mxu2 %v3396_v34 }
   0xf   :  { %v3379_v40 = vld [vmem:[%s7140_s4 + $0x280] sm:$0xf]  ;;  %v4419_v41 = vld [vmem:[%s7140_s4 + $0x28c] sm:$0xf0]  ;;  %v3252_v45 = vor.u32 %v4387_v39, %v3251_v37  ;;  %1856 = vmatpush.bf16.msra.mxu3 %v3524_v38 }
  0x10   :  { %v3507_v42 = vld [vmem:[%s7140_s4 + $0x380] sm:$0xf]  ;;  %v4451_v43 = vld [vmem:[%s7140_s4 + $0x38c] sm:$0xf0]  ;;  %v3380_v46 = vor.u32 %v4419_v41, %v3379_v40  ;;  %1818 = vmatpush.bf16.msra.mxu0 %v3124_v44 }
  0x11   :  { %v3107_v47 = vld [vmem:[%s7140_s4 + $0x60] sm:$0xf]  ;;  %v4351_v48 = vld [vmem:[%s7140_s4 + $0x6c] sm:$0xf0]  ;;  %v3508_v50 = vor.u32 %v4451_v43, %v3507_v42  ;;  %1831 = vmatpush.bf16.msra.mxu1 %v3252_v45 }
  0x12   :  { %v3235_v49 = vld [vmem:[%s7140_s4 + $0x160] sm:$0xf]  ;;  %v4383_v51 = vld [vmem:[%s7140_s4 + $0x16c] sm:$0xf0]  ;;  %v3108_v56 = vor.u32 %v4351_v48, %v3107_v47  ;;  %1844 = vmatpush.bf16.msra.mxu2 %v3380_v46 }
  0x13   :  { %v3363_v52 = vld [vmem:[%s7140_s4 + $0x260] sm:$0xf]  ;;  %v4415_v53 = vld [vmem:[%s7140_s4 + $0x26c] sm:$0xf0]  ;;  %v3236_v57 = vor.u32 %v4383_v51, %v3235_v49  ;;  %1857 = vmatpush.bf16.msra.mxu3 %v3508_v50 }
  0x14   :  { %v3491_v54 = vld [vmem:[%s7140_s4 + $0x360] sm:$0xf]  ;;  %v4447_v55 = vld [vmem:[%s7140_s4 + $0x36c] sm:$0xf0]  ;;  %v3364_v58 = vor.u32 %v4415_v53, %v3363_v52  ;;  %1819 = vmatpush.bf16.msra.mxu0 %v3108_v56 }
  0x15   :  { %v3091_v59 = vld [vmem:[%s7140_s4 + $0x40] sm:$0xf]  ;;  %v4347_v60 = vld [vmem:[%s7140_s4 + $0x4c] sm:$0xf0]  ;;  %v3492_v62 = vor.u32 %v4447_v55, %v3491_v54  ;;  %1832 = vmatpush.bf16.msra.mxu1 %v3236_v57 }
  0x16   :  { %v3219_v61 = vld [vmem:[%s7140_s4 + $0x140] sm:$0xf]  ;;  %v4379_v63 = vld [vmem:[%s7140_s4 + $0x14c] sm:$0xf0]  ;;  %v3092_v4 = vor.u32 %v4347_v60, %v3091_v59  ;;  %1845 = vmatpush.bf16.msra.mxu2 %v3364_v58  ;;  %v82_v60 = vld [vmem:[%s7141_s0 + $0x8] sm:$0xff] }
  0x17   :  { %v3347_v0 = vld [vmem:[%s7140_s4 + $0x240] sm:$0xf]  ;;  %v4411_v1 = vld [vmem:[%s7140_s4 + $0x24c] sm:$0xf0]  ;;  %v3220_v5 = vor.u32 %v4379_v63, %v3219_v61  ;;  %1858 = vmatpush.bf16.msra.mxu3 %v3492_v62  ;;  %117 = vst [vmem:[#allocation1 + $0x1] ss:$9 sm:$0xff] %v82_v60 }
  0x18   :  { %v3475_v2 = vld [vmem:[%s7140_s4 + $0x340] sm:$0xf]  ;;  %v4443_v3 = vld [vmem:[%s7140_s4 + $0x34c] sm:$0xf0]  ;;  %v3348_v6 = vor.u32 %v4411_v1, %v3347_v0  ;;  %1820 = vmatpush.bf16.msra.mxu0 %v3092_v4  ;;  %v5008_v0 = vld [vmem:[%s7142_s2 + $0x8] sm:$0xff] }
  0x19   :  { %v3075_v7 = vld [vmem:[%s7140_s4 + $0x20] sm:$0xf]  ;;  %v4343_v8 = vld [vmem:[%s7140_s4 + $0x2c] sm:$0xf0]  ;;  %v3476_v10 = vor.u32 %v4443_v3, %v3475_v2  ;;  %1833 = vmatpush.bf16.msra.mxu1 %v3220_v5  ;;  %v5015_v3 = vadd.f32 1e-05, %v5008_v0 }
  0x1a   :  { %v3203_v9 = vld [vmem:[%s7140_s4 + $0x120] sm:$0xf]  ;;  %v4375_v11 = vld [vmem:[%s7140_s4 + $0x12c] sm:$0xf0]  ;;  %v3076_v16 = vor.u32 %v4343_v8, %v3075_v7  ;;  %1846 = vmatpush.bf16.msra.mxu2 %v3348_v6 }
  0x1b   :  { %v3331_v12 = vld [vmem:[%s7140_s4 + $0x220] sm:$0xf]  ;;  %v4407_v13 = vld [vmem:[%s7140_s4 + $0x22c] sm:$0xf0]  ;;  %v3204_v19 = vor.u32 %v4375_v11, %v3203_v9  ;;  %1859 = vmatpush.bf16.msra.mxu3 %v3476_v10  ;;  %vm57_vm4 = vweird.f32 %v5015_v3 }
  0x1c   :  { %v3459_v14 = vld [vmem:[%s7140_s4 + $0x320] sm:$0xf]  ;;  %v4439_v15 = vld [vmem:[%s7140_s4 + $0x32c] sm:$0xf0]  ;;  %v3332_v20 = vor.u32 %v4407_v13, %v3331_v12  ;;  %1821 = vmatpush.bf16.msra.mxu0 %v3076_v16 }
  0x1d   :  { %v3059_v17 = vld [vmem:[%s7140_s4] sm:$0xf]  ;;  %v4339_v18 = vld [vmem:[%s7140_s4 + $0xc] sm:$0xf0]  ;;  %v3460_v24 = vor.u32 %v4439_v15, %v3459_v14  ;;  %1834 = vmatpush.bf16.msra.mxu1 %v3204_v19 }
  0x1e   :  { %v3187_v21 = vld [vmem:[%s7140_s4 + $0x100] sm:$0xf]  ;;  %v4371_v22 = vld [vmem:[%s7140_s4 + $0x10c] sm:$0xf0]  ;;  %v3060_v31 = vor.u32 %v4339_v18, %v3059_v17  ;;  %1847 = vmatpush.bf16.msra.mxu2 %v3332_v20 }
  0x1f   :  { %v3315_v23 = vld [vmem:[%s7140_s4 + $0x200] sm:$0xf]  ;;  %v4403_v25 = vld [vmem:[%s7140_s4 + $0x20c] sm:$0xf0]  ;;  %v3188_v35 = vor.u32 %v4371_v22, %v3187_v21  ;;  %1860 = vmatpush.bf16.msra.mxu3 %v3460_v24 }
  0x20   :  { %v3443_v26 = vld [vmem:[%s7140_s4 + $0x300] sm:$0xf]  ;;  %v4435_v27 = vld [vmem:[%s7140_s4 + $0x30c] sm:$0xf0]  ;;  %v3316_v36 = vor.u32 %v4403_v25, %v3315_v23  ;;  %1822 = vmatpush.bf16.msra.mxu0 %v3060_v31  ;;  %v84_v23 = vld [vmem:[%s7143_s1 + $0x8] sm:$0xff] }
  0x21   :  { %v3683_v28 = vld [vmem:[%s7140_s4 + $0x4e0] sm:$0xf]  ;;  %v4495_v29 = vld [vmem:[%s7140_s4 + $0x4ec] sm:$0xf0]  ;;  %v3444_v39 = vor.u32 %v4435_v27, %v3443_v26  ;;  %1835 = vmatpush.bf16.msra.mxu1 %v3188_v35 }
  0x22   :  { %v3811_v30 = vld [vmem:[%s7140_s4 + $0x5e0] sm:$0xf]  ;;  %v4527_v32 = vld [vmem:[%s7140_s4 + $0x5ec] sm:$0xf0]  ;;  %v3684_v40 = vor.u32 %v4495_v29, %v3683_v28  ;;  %1848 = vmatpush.bf16.msra.mxu2 %v3316_v36 }
  0x23   :  { %v3939_v33 = vld [vmem:[%s7140_s4 + $0x6e0] sm:$0xf]  ;;  %v4559_v34 = vld [vmem:[%s7140_s4 + $0x6ec] sm:$0xf0]  ;;  %v3812_v43 = vor.u32 %v4527_v32, %v3811_v30  ;;  %1861 = vmatpush.bf16.msra.mxu3 %v3444_v39 }
  0x24   :  { %v4067_v37 = vld [vmem:[%s7140_s4 + $0x7e0] sm:$0xf]  ;;  %v4591_v38 = vld [vmem:[%s7140_s4 + $0x7ec] sm:$0xf0]  ;;  %v3940_v44 = vor.u32 %v4559_v34, %v3939_v33  ;;  %1867 = vmatpush.bf16.msrb.mxu0 %v3684_v40 }
  0x25   :  { %v3667_v41 = vld [vmem:[%s7140_s4 + $0x4c0] sm:$0xf]  ;;  %v4491_v42 = vld [vmem:[%s7140_s4 + $0x4cc] sm:$0xf0]  ;;  %v4068_v48 = vor.u32 %v4591_v38, %v4067_v37  ;;  %1880 = vmatpush.bf16.msrb.mxu1 %v3812_v43 }
  0x26   :  { %v3795_v45 = vld [vmem:[%s7140_s4 + $0x5c0] sm:$0xf]  ;;  %v4523_v46 = vld [vmem:[%s7140_s4 + $0x5cc] sm:$0xf0]  ;;  %v3668_v56 = vor.u32 %v4491_v42, %v3667_v41  ;;  %1893 = vmatpush.bf16.msrb.mxu2 %v3940_v44 }
  0x27   :  { %v3923_v47 = vld [vmem:[%s7140_s4 + $0x6c0] sm:$0xf]  ;;  %v4555_v49 = vld [vmem:[%s7140_s4 + $0x6cc] sm:$0xf0]  ;;  %v3796_v61 = vor.u32 %v4523_v46, %v3795_v45  ;;  %1906 = vmatpush.bf16.msrb.mxu3 %v4068_v48 }
  0x28   :  { %v4051_v50 = vld [vmem:[%s7140_s4 + $0x7c0] sm:$0xf]  ;;  %v4587_v51 = vld [vmem:[%s7140_s4 + $0x7cc] sm:$0xf0]  ;;  %v3924_v62 = vor.u32 %v4555_v49, %v3923_v47  ;;  %1868 = vmatpush.bf16.msrb.mxu0 %v3668_v56 }
  0x29   :  { %v3651_v52 = vld [vmem:[%s7140_s4 + $0x4a0] sm:$0xf]  ;;  %v4487_v53 = vld [vmem:[%s7140_s4 + $0x4ac] sm:$0xf0]  ;;  %v4052_v1 = vor.u32 %v4587_v51, %v4051_v50  ;;  %1881 = vmatpush.bf16.msrb.mxu1 %v3796_v61 }
  0x2a   :  { %v4985_v54 = vld [vmem:[%s7142_s2] sm:$0xff]  ;;  %v4519_v58 = vld [vmem:[%s7140_s4 + $0x5ac] sm:$0xf0]  ;;  %v3652_v6 = vor.u32 %v4487_v53, %v3651_v52  ;;  %1894 = vmatpush.bf16.msrb.mxu2 %v3924_v62 }
  0x2b   :  { %v81_v55 = vld [vmem:[%s7141_s0] sm:$0xff]  ;;  %v4997_v59 = vadd.f32 1e-05, %v4985_v54  ;;  %v4551_v2 = vld [vmem:[%s7140_s4 + $0x6ac] sm:$0xf0]  ;;  %1907 = vmatpush.bf16.msrb.mxu3 %v4052_v1 }
  0x2c   :  { %v3779_v57 = vld [vmem:[%s7140_s4 + $0x5a0] sm:$0xf]  ;;  %115 = vst [vmem:[#allocation1] ss:$9 sm:$0xff] %v81_v55  ;;  %v4583_v5 = vld [vmem:[%s7140_s4 + $0x7ac] sm:$0xf0]  ;;  %1869 = vmatpush.bf16.msrb.mxu0 %v3652_v6 }
  0x2d   :  { %v3907_v63 = vld [vmem:[%s7140_s4 + $0x6a0] sm:$0xf]  ;;  %4660 = vrsqrt.f32 %v4997_v59  ;;  %v4483_v8 = vld [vmem:[%s7140_s4 + $0x48c] sm:$0xf0]  ;;  %v3780_v9 = vor.u32 %v4519_v58, %v3779_v57  ;;  %vm47_vm0 = vweird.f32 %v4997_v59 }
  0x2e   :  { %v4035_v4 = vld [vmem:[%s7140_s4 + $0x7a0] sm:$0xf]  ;;  %4662 = vrsqrt.f32 %v5015_v3  ;;  %v3908_v10 = vor.u32 %v4551_v2, %v3907_v63  ;;  %v4515_v12 = vld [vmem:[%s7140_s4 + $0x58c] sm:$0xf0] }
  0x2f   :  { %v3635_v7 = vld [vmem:[%s7140_s4 + $0x480] sm:$0xf]  ;;  %v4036_v14 = vor.u32 %v4583_v5, %v4035_v4  ;;  %v4547_v15 = vld [vmem:[%s7140_s4 + $0x68c] sm:$0xf0]  ;;  %1882 = vmatpush.bf16.msrb.mxu1 %v3780_v9 }
  0x30   :  { %v3763_v11 = vld [vmem:[%s7140_s4 + $0x580] sm:$0xf]  ;;  %v4579_v17 = vld [vmem:[%s7140_s4 + $0x78c] sm:$0xf0]  ;;  %v3636_v22 = vor.u32 %v4483_v8, %v3635_v7  ;;  %1895 = vmatpush.bf16.msrb.mxu2 %v3908_v10 }
  0x31   :  { %v3891_v13 = vld [vmem:[%s7140_s4 + $0x680] sm:$0xf]  ;;  %v4479_v20 = vld [vmem:[%s7140_s4 + $0x46c] sm:$0xf0]  ;;  %v3764_v27 = vor.u32 %v4515_v12, %v3763_v11  ;;  %1908 = vmatpush.bf16.msrb.mxu3 %v4036_v14 }
  0x32   :  { %v4019_v16 = vld [vmem:[%s7140_s4 + $0x780] sm:$0xf]  ;;  %v4511_v25 = vld [vmem:[%s7140_s4 + $0x56c] sm:$0xf0]  ;;  %v3892_v28 = vor.u32 %v4547_v15, %v3891_v13  ;;  %1870 = vmatpush.bf16.msrb.mxu0 %v3636_v22 }
  0x33   :  { %v83_v18 = vld [vmem:[%s7143_s1] sm:$0xff]  ;;  %v5057_v21 = vpop.eup %4660  ;;  %v5075_v31 = vld [vmem:[#allocation1 + $0x9] sm:$0xff]  ;;  %v5077_v32 = vld [vmem:[#allocation1 + $0x12] sm:$0xff]  ;;  %v4020_v34 = vor.u32 %v4579_v17, %v4019_v16  ;;  %1883 = vmatpush.bf16.msrb.mxu1 %v3764_v27 }
  0x34   :  { %v3619_v19 = vld [vmem:[%s7140_s4 + $0x460] sm:$0xf]  ;;  %v42_v29 = vmul.f32 %v5057_v21, %v4997_v59  ;;  %v5079_v33 = vpop.eup %4662  ;;  %v5083_v36 = vld [vmem:[#allocation1 + $0x24] sm:$0xff]  ;;  %v4543_v37 = vld [vmem:[%s7140_s4 + $0x66c] sm:$0xf0]  ;;  %1896 = vmatpush.bf16.msrb.mxu2 %v3892_v28  ;;  %vm48_vm1 = vweird.f32 %v5057_v21 }
  0x35   :  { %v3747_v24 = vld [vmem:[%s7140_s4 + $0x560] sm:$0xf]  ;;  %v5089_v39 = vld [vmem:[#allocation1 + $0x2d] sm:$0xff]  ;;  %v5091_v40 = vld [vmem:[#allocation1 + $0x36] sm:$0xff]  ;;  %v52_v42 = vmul.f32 %v5079_v33, %v5015_v3  ;;  %v3620_v43 = vor.u32 %v4479_v20, %v3619_v19  ;;  %1909 = vmatpush.bf16.msrb.mxu3 %v4020_v34  ;;  %vm58_vm5 = vweird.f32 %v5079_v33 }
  0x36   :  { %v3875_v26 = vld [vmem:[%s7140_s4 + $0x660] sm:$0xf]  ;;  %v43_v38 = vmul.f32 %v5057_v21, %v42_v29  ;;  %v3748_v44 = vor.u32 %v4511_v25, %v3747_v24  ;;  %v4575_v46 = vld [vmem:[%s7140_s4 + $0x76c] sm:$0xf0]  ;;  %vm5126_vm2 = vmor %vm47_vm0, %vm48_vm1  ;;  %vm2231_vm0 = vcmask 1041408  }
  0x37   :  { %v5073_v30 = vld [vmem:[#allocation1] sm:$0xff]  ;;  %v3876_v48 = vor.u32 %v4543_v37, %v3875_v26  ;;  %v53_v50 = vmul.f32 %v5079_v33, %v52_v42  ;;  %v4475_v52 = vld [vmem:[%s7140_s4 + $0x44c] sm:$0xf0]  ;;  %1871 = vmatpush.bf16.msrb.mxu0 %v3620_v43  ;;  %vm5262_vm9 = vmor %vm57_vm4, %vm58_vm5 }
  0x38   :  { %v5081_v35 = vld [vmem:[#allocation1 + $0x1b] sm:$0xff]  ;;  %v44_v47 = vmul.f32 0.5, %v43_v38  ;;  %v4507_v55 = vld [vmem:[%s7140_s4 + $0x54c] sm:$0xf0]  ;;  %1884 = vmatpush.bf16.msrb.mxu1 %v3748_v44 }
  0x39   :  { %v5093_v41 = vld [vmem:[#allocation1 + $0x3f] sm:$0xff]  ;;  %v4539_v58 = vld [vmem:[%s7140_s4 + $0x64c] sm:$0xf0]  ;;  %v54_v1 = vmul.f32 0.5, %v53_v50  ;;  %1897 = vmatpush.bf16.msrb.mxu2 %v3876_v48  ;;  %v4679_v48 = vmov 0  }
  0x3a   :  { %178 = vst [vmem:[#allocation1] ss:$9 sm:$0xff] %v83_v18  ;;  %v4003_v45 = vld [vmem:[%s7140_s4 + $0x760] sm:$0xf]  ;;  %v45_v56 = vsub.f32 1.5, %v44_v47 }
  0x3b   :  { %180 = vst [vmem:[#allocation1 + $0x1] ss:$9 sm:$0xff] %v84_v23  ;;  %v3603_v49 = vld [vmem:[%s7140_s4 + $0x440] sm:$0xf]  ;;  %v4004_v51 = vor.u32 %v4575_v46, %v4003_v45  ;;  %v4571_v63 = vld [vmem:[%s7140_s4 + $0x74c] sm:$0xf0] }
  0x3c   :  { %v3731_v53 = vld [vmem:[%s7140_s4 + $0x540] sm:$0xf]  ;;  %v3604_v61 = vor.u32 %v4475_v52, %v3603_v49  ;;  %v46_v2 = vmul.f32 %v5057_v21, %v45_v56  ;;  %v4471_v6 = vld [vmem:[%s7140_s4 + $0x42c] sm:$0xf0]  ;;  %v55_v20 = vsub.f32 1.5, %v54_v1 }
  0x3d   :  { %v3859_v57 = vld [vmem:[%s7140_s4 + $0x640] sm:$0xf]  ;;  %v3732_v59 = vor.u32 %v4507_v55, %v3731_v53  ;;  %1910 = vmatpush.bf16.msrb.mxu3 %v4004_v51  ;;  %v4503_v9 = vld [vmem:[%s7140_s4 + $0x52c] sm:$0xf0] }
  0x3e   :  { %v3987_v62 = vld [vmem:[%s7140_s4 + $0x740] sm:$0xf]  ;;  %v3860_v4 = vor.u32 %v4539_v58, %v3859_v57  ;;  %v4535_v11 = vld [vmem:[%s7140_s4 + $0x62c] sm:$0xf0]  ;;  %v50_v13 = vsel %vm5126_vm2, %v5057_v21, %v46_v2  ;;  %1872 = vmatpush.bf16.msrb.mxu0 %v3604_v61  ;;  %v5192_v43 = vmul.f32 %v5079_v33, %v55_v20 }
  0x3f   :  { %v3587_v5 = vld [vmem:[%s7140_s4 + $0x420] sm:$0xf]  ;;  %v3988_v8 = vor.u32 %v4571_v63, %v3987_v62  ;;  %v4567_v15 = vld [vmem:[%s7140_s4 + $0x72c] sm:$0xf0]  ;;  %v3055_v16 = vrot.slane %v50_v13, 9  ;;  %1885 = vmatpush.bf16.msrb.mxu1 %v3732_v59 }
  0x40   :  { %v3715_v7 = vld [vmem:[%s7140_s4 + $0x520] sm:$0xf]  ;;  %v3588_v17 = vor.u32 %v4471_v6, %v3587_v5  ;;  %v4467_v19 = vld [vmem:[%s7140_s4 + $0x40c] sm:$0xf0]  ;;  %1898 = vmatpush.bf16.msrb.mxu2 %v3860_v4 }
  0x41   :  { %v3843_v10 = vld [vmem:[%s7140_s4 + $0x620] sm:$0xf]  ;;  %v3716_v21 = vor.u32 %v4503_v9, %v3715_v7  ;;  %v4499_v24 = vld [vmem:[%s7140_s4 + $0x50c] sm:$0xf0]  ;;  %1911 = vmatpush.bf16.msrb.mxu3 %v3988_v8 }
  0x42   :  { %v37_v12 = vld [vmem:[%s7144_s3] sm:$0xff]  ;;  %v3844_v22 = vor.u32 %v4535_v11, %v3843_v10  ;;  %v4531_v28 = vld [vmem:[%s7140_s4 + $0x60c] sm:$0xf0]  ;;  %1873 = vmatpush.bf16.msrb.mxu0 %v3588_v17 }
  0x43   :  { %v3971_v14 = vld [vmem:[%s7140_s4 + $0x720] sm:$0xf]  ;;  %v69_v25 = vmul.f32 %v3055_v16, %v37_v12  ;;  %v4563_v42 = vld [vmem:[%s7140_s4 + $0x70c] sm:$0xf0]  ;;  %1886 = vmatpush.bf16.msrb.mxu1 %v3716_v21  ;;  %v5209_v10 = vld [vmem:[%s7140_s4 + $0xe4] sm:$0xf] }
  0x44   :  { %v3571_v18 = vld [vmem:[%s7140_s4 + $0x400] sm:$0xf]  ;;  %v3972_v26 = vor.u32 %v4567_v15, %v3971_v14  ;;  %v183_v47 = vld [vmem:[#allocation1 + $0x12] sm:$0xff]  ;;  %1899 = vmatpush.bf16.msrb.mxu2 %v3844_v22  ;;  %v182_v9 = vld [vmem:[#allocation1 + $0x9] sm:$0xff] }
  0x45   :  { %v3699_v23 = vld [vmem:[%s7140_s4 + $0x500] sm:$0xf]  ;;  %v3572_v34 = vor.u32 %v4467_v19, %v3571_v18  ;;  %v71_v44 = vmul.f32 %v69_v25, %v4985_v54  ;;  %vm85_vm3 = vcmp.ge.f32.partialorder %v69_v25, 0.0  ;;  %v91_v45 = vperm.slane %v69_v25, 4  ;;  %v5220_v15 = vld [vmem:[%s7140_s4 + $0x1e4] sm:$0xf] }
  0x46   :  { %v3827_v27 = vld [vmem:[%s7140_s4 + $0x600] sm:$0xf]  ;;  %v3700_v37 = vor.u32 %v4499_v24, %v3699_v23  ;;  %v89_v46 = vperm.slane %v69_v25, 0  ;;  %v5198_v49 = vsel %vm85_vm3, 1, %v4679_v48  ;;  %v92_v50 = vperm.slane %v69_v25, 6  ;;  %1912 = vmatpush.bf16.msrb.mxu3 %v3972_v26 }
  0x47   :  { %v3955_v29 = vld [vmem:[%s7140_s4 + $0x700] sm:$0xf]  ;;  %v3828_v38 = vor.u32 %v4531_v28, %v3827_v27  ;;  %v90_v51 = vperm.slane %v69_v25, 2  ;;  %v75_v53 = vrot.slane %v71_v44, 7  ;;  %v107_v54 = vperm.slane %v91_v45, 0  ;;  %1874 = vmatpush.bf16.msrb.mxu0 %v3572_v34 }
  0x48   :  { %v3956_v52 = vor.u32 %v4563_v42, %v3955_v29  ;;  %v217_v55 = vperm.slane %v5198_v49, 4  ;;  %v105_v56 = vperm.slane %v89_v46, 0  ;;  %v181_v57 = vld [vmem:[#allocation1] sm:$0xff]  ;;  %v215_v58 = vperm.slane %v5198_v49, 0  ;;  %1887 = vmatpush.bf16.msrb.mxu1 %v3700_v37  ;;  %v5225_v16 = vld [vmem:[%s7140_s4 + $0x1f0] sm:$0xf0] }
  0x49   :  { %v108_v60 = vperm.slane %v92_v50, 0  ;;  %v218_v61 = vperm.slane %v5198_v49, 6  ;;  %v106_v62 = vperm.slane %v90_v51, 0  ;;  %v79_v63 = vsub.f32 %v37_v12, %v75_v53  ;;  %v184_v4 = vld [vmem:[#allocation1 + $0x1b] sm:$0xff]  ;;  %1900 = vmatpush.bf16.msrb.mxu2 %v3828_v38  ;;  %v5230_v21 = vld [vmem:[%s7140_s4 + $0x2e4] sm:$0xf] }
  0x4a   :  { %v136_v1 = vmul.f32 %v5077_v32, %v107_v54  ;;  %v199_v2 = vmul.f32 %v183_v47, %v107_v54  ;;  %v225_v59 = vperm.slane %v217_v55, 0  ;;  %v134_v5 = vmul.f32 %v5073_v30, %v105_v56  ;;  %1913 = vmatpush.bf16.msrb.mxu3 %v3956_v52  ;;  %v5214_v30 = vld [vmem:[%s7140_s4 + $0xf0] sm:$0xf0]  ;;  %v5243_v25 = vld [vmem:[%s7140_s4 + $0x3e4] sm:$0xf] }
  0x4b   :  { %v197_v6 = vmul.f32 %v181_v57, %v105_v56  ;;  %v223_v7 = vperm.slane %v215_v58, 0  ;;  %v137_v8 = vmul.f32 %v5081_v35, %v108_v60  ;;  %v146_v11 = vperm.slane %v79_v63, 5  ;;  %v5238_v24 = vld [vmem:[%s7140_s4 + $0x2f0] sm:$0xf0]  ;;  %v5251_v37 = vld [vmem:[%s7140_s4 + $0xc4] sm:$0xf] }
  0x4c   :  { %vm233_vm6 = vcmp.eq.s32.totalorder %v225_v59, 1  ;;  %v144_v32 = vperm.slane %v79_v63, 1  ;;  %v147_v12 = vperm.slane %v79_v63, 7  ;;  %v200_v35 = vmul.f32 %v184_v4, %v108_v60  ;;  %v3557_v34 = vld [vmem:[%s7140_s4 + $0x3f0] sm:$0xf0] }
  0x4d   :  { %vm231_vm7 = vcmp.eq.s32.totalorder %v223_v7, 1  ;;  %v226_v13 = vperm.slane %v218_v61, 0  ;;  %v135_v14 = vmul.f32 %v5075_v31, %v106_v62  ;;  %v162_v17 = vperm.slane %v146_v11, 1  ;;  %v5256_v38 = vld [vmem:[%s7140_s4 + $0xd0] sm:$0xf0] }
  0x4e   :  { %v160_v18 = vperm.slane %v144_v32, 1  ;;  %v163_v19 = vperm.slane %v147_v12, 1  ;;  %v145_v20 = vperm.slane %v79_v63, 3  ;;  %v198_v31 = vmul.f32 %v182_v9, %v106_v62  ;;  %v5274_v50 = vld [vmem:[%s7140_s4 + $0x1d0] sm:$0xf0] }
  0x4f   :  { %vm234_vm8 = vcmp.eq.s32.totalorder %v226_v13, 1  ;;  %v216_v22 = vperm.slane %v5198_v49, 2  ;;  %v3176_v23 = vor.u32 %v5209_v10, %v5214_v30  ;;  %v170_v26 = vadd.f32 %v162_v17, %v136_v1  ;;  %v5269_v49 = vld [vmem:[%s7140_s4 + $0x1c4] sm:$0xf]  ;;  %v5290_v55 = vld [vmem:[%s7140_s4 + $0x2d0] sm:$0xf0] }
  0x50   :  { %v207_v27 = vadd.f32 %v199_v2, %v162_v17  ;;  %v168_v28 = vadd.f32 %v160_v18, %v134_v5  ;;  %v205_v29 = vadd.f32 %v197_v6, %v160_v18  ;;  %v171_v42 = vadd.f32 %v163_v19, %v137_v8  ;;  %v5285_v54 = vld [vmem:[%s7140_s4 + $0x2c4] sm:$0xf]  ;;  %v5300_v57 = vld [vmem:[%s7140_s4 + $0x3d0] sm:$0xf0]  ;;  %v5311_v1 = vld [vmem:[%s7144_s3 + $0x8] sm:$0xff] }
  0x51   :  { %v208_v44 = vadd.f32 %v200_v35, %v163_v19  ;;  %v161_v45 = vperm.slane %v145_v20, 1  ;;  %v224_v46 = vperm.slane %v216_v22, 0  ;;  %v3304_v3 = vor.u32 %v5220_v15, %v5225_v16  ;;  %v5295_v56 = vld [vmem:[%s7140_s4 + $0x3c4] sm:$0xf]  ;;  %v5316_v2 = vld [vmem:[%s7140_s4 + $0xb0] sm:$0xf0] }
  0x52   :  { %v241_v51 = vsel %vm233_vm6, %v170_v26, %v207_v27  ;;  %v239_v52 = vsel %vm231_vm7, %v168_v28, %v205_v29  ;;  %v3432_v53 = vor.u32 %v5230_v21, %v5238_v24  ;;  %v5305_v58 = vld [vmem:[%s7140_s4 + $0xa4] sm:$0xf]  ;;  %v3560_v6 = vor.u32 %v5243_v25, %v3557_v34  ;;  %v5327_v7 = vld [vmem:[%s7140_s4 + $0x1b0] sm:$0xf0] }
  0x53   :  { %v249_v60 = vmax.f32 %v241_v51, 0.0  ;;  %v247_v61 = vmax.f32 %v239_v52, 0.0  ;;  %v242_v62 = vsel %vm234_vm8, %v171_v42, %v208_v44  ;;  %v169_v63 = vadd.f32 %v161_v45, %v135_v14  ;;  %v5321_v59 = vld [vmem:[%s7140_s4 + $0x1a4] sm:$0xf]  ;;  %v5347_v12 = vld [vmem:[%s7140_s4 + $0x2b0] sm:$0xf0] }
  0x54   :  { %v250_v4 = vmax.f32 %v242_v62, 0.0  ;;  %v206_v5 = vadd.f32 %v198_v31, %v161_v45  ;;  %vm232_vm10 = vcmp.eq.s32.totalorder %v224_v46, 1  ;;  %v5332_v8 = vld [vmem:[%s7140_s4 + $0x2a4] sm:$0xf]  ;;  %v60_v11 = vsel %vm5262_vm9, %v5079_v33, %v5192_v43  ;;  %v5357_v35 = vld [vmem:[%s7140_s4 + $0x3b0] sm:$0xf0] }
  0x55   :  { %v5334_v9 = vpack.c.bf16 %v249_v60, %v249_v60  ;;  %v5336_v10 = vpack.c.bf16 %v247_v61, %v247_v61  ;;  %v3160_v32 = vor.u32 %v5251_v37, %v5256_v38  ;;  %v5352_v30 = vld [vmem:[%s7140_s4 + $0x3a4] sm:$0xf]  ;;  %v3056_v43 = vrot.slane %v60_v11, 9  ;;  %v5371_v16 = vld [vmem:[%s7140_s4 + $0x90] sm:$0xf0] }
  0x56   :  { %v5359_v13 = vpack.c.bf16 %v250_v4, %v250_v4  ;;  %v240_v33 = vsel %vm232_vm10, %v169_v63, %v206_v5  ;;  %v3288_v14 = vor.u32 %v5269_v49, %v5274_v50  ;;  %v5366_v15 = vld [vmem:[%s7140_s4 + $0x84] sm:$0xf]  ;;  %v3416_v18 = vor.u32 %v5285_v54, %v5290_v55  ;;  %v5395_v25 = vld [vmem:[%s7140_s4 + $0x190] sm:$0xf0] }
  0x57   :  { %1849 = vmatmul.bf16.vlgmr.msra.gmra.mxu2 %v5334_v9  ;;  %1823 = vmatmul.bf16.vlgmr.msra.gmra.mxu0 %v5336_v10  ;;  %v248_v17 = vmax.f32 %v240_v33, 0.0  ;;  %v3544_v19 = vor.u32 %v5295_v56, %v5300_v57  ;;  %v3144_v20 = vor.u32 %v5305_v58, %v5316_v2  ;;  %v70_v21 = vmul.f32 %v3056_v43, %v5311_v1  ;;  %v5390_v24 = vld [vmem:[%s7140_s4 + $0x184] sm:$0xf]  ;;  %v187_v37 = vld [vmem:[#allocation1 + $0x36] sm:$0xff]  ;;  %v186_v63 = vld [vmem:[#allocation1 + $0x2d] sm:$0xff] }
  0x58   :  { %1862 = vmatmul.bf16.vlgmr.msra.gmra.mxu3 %v5359_v13  ;;  %1919 = vmatpush.bf16.msra.mxu0 %v3176_v23  ;;  %v3272_v31 = vor.u32 %v5321_v59, %v5327_v7  ;;  %v3400_v22 = vor.u32 %v5332_v8, %v5347_v12  ;;  %v3528_v23 = vor.u32 %v5352_v30, %v5357_v35  ;;  %v185_v51 = vld [vmem:[#allocation1 + $0x24] sm:$0xff]  ;;  %v3509_v35 = vld [vmem:[%s7140_s4 + $0x390] sm:$0xf0] }
  0x59   :  { %v5397_v26 = vpack.c.bf16 %v248_v17, %v248_v17  ;;  %1945 = vmatpush.bf16.msra.mxu2 %v3432_v53  ;;  %1958 = vmatpush.bf16.msra.mxu3 %v3560_v6  ;;  %v3128_v27 = vor.u32 %v5366_v15, %v5371_v16  ;;  %v72_v28 = vmul.f32 %v70_v21, %v5008_v0  ;;  %vm86_vm11 = vcmp.ge.f32.partialorder %v70_v21, 0.0  ;;  %v188_v58 = vld [vmem:[#allocation1 + $0x3f] sm:$0xff]  ;;  %v3109_v17 = vld [vmem:[%s7140_s4 + $0x70] sm:$0xf0] }
  0x5a   :  { %v95_v29 = vperm.slane %v70_v21, 4  ;;  %v93_v34 = vperm.slane %v70_v21, 0  ;;  %v214_v38 = vsel %vm86_vm11, 1, %v4679_v48  ;;  %v96_v42 = vperm.slane %v70_v21, 6  ;;  %v4417_v2 = vld [vmem:[%s7140_s4 + $0x284] sm:$0xf] }
  0x5b   :  { %1836 = vmatmul.bf16.vlgmr.msra.gmra.mxu1 %v5397_v26  ;;  %v94_v44 = vperm.slane %v70_v21, 2  ;;  %v3256_v45 = vor.u32 %v5390_v24, %v5395_v25  ;;  %v76_v46 = vrot.slane %v72_v28, 7  ;;  %v221_v49 = vperm.slane %v214_v38, 4  ;;  %v4449_v8 = vld [vmem:[%s7140_s4 + $0x384] sm:$0xf] }
  0x5c   :  { %1932 = vmatpush.bf16.msra.mxu1 %v3304_v3  ;;  %v111_v47 = vperm.slane %v95_v29, 0  ;;  %v109_v50 = vperm.slane %v93_v34, 0  ;;  %1920 = vmatpush.bf16.msra.mxu0 %v3160_v32  ;;  %v219_v0 = vperm.slane %v214_v38, 0  ;;  %v112_v52 = vperm.slane %v96_v42, 0  ;;  %v4413_v59 = vld [vmem:[%s7140_s4 + $0x264] sm:$0xf] }
  0x5d   :  { %v222_v53 = vperm.slane %v214_v38, 6  ;;  %1946 = vmatpush.bf16.msra.mxu2 %v3416_v18  ;;  %1959 = vmatpush.bf16.msra.mxu3 %v3544_v19  ;;  %v110_v54 = vperm.slane %v94_v44, 0  ;;  %v80_v48 = vsub.f32 %v5311_v1, %v76_v46  ;;  %v229_v57 = vperm.slane %v221_v49, 0  ;;  %v3365_v15 = vld [vmem:[%s7140_s4 + $0x270] sm:$0xf0] }
  0x5e   :  { %v140_v55 = vmul.f32 %v5091_v40, %v111_v47  ;;  %v203_v56 = vmul.f32 %v187_v37, %v111_v47  ;;  %v138_v3 = vmul.f32 %v5083_v36, %v109_v50  ;;  %v201_v60 = vmul.f32 %v185_v51, %v109_v50  ;;  %v3381_v40 = vld [vmem:[%s7140_s4 + $0x290] sm:$0xf0]  ;;  %v4445_v16 = vld [vmem:[%s7140_s4 + $0x364] sm:$0xf] }
  0x5f   :  { %v227_v61 = vperm.slane %v219_v0, 0  ;;  %v141_v62 = vmul.f32 %v5093_v41, %v112_v52  ;;  %v150_v4 = vperm.slane %v80_v48, 5  ;;  %vm237_vm12 = vcmp.eq.s32.totalorder %v229_v57, 1  ;;  %v3237_v37 = vld [vmem:[%s7140_s4 + $0x170] sm:$0xf0] }
  0x60   :  { %v148_v5 = vperm.slane %v80_v48, 1  ;;  %v151_v1 = vperm.slane %v80_v48, 7  ;;  %1933 = vmatpush.bf16.msra.mxu1 %v3288_v14  ;;  %1921 = vmatpush.bf16.msra.mxu0 %v3144_v20  ;;  %v204_v36 = vmul.f32 %v188_v58, %v112_v52  ;;  %v230_v6 = vperm.slane %v222_v53, 0  ;;  %v4345_v50 = vld [vmem:[%s7140_s4 + $0x44] sm:$0xf] }
  0x61   :  { %vm235_vm13 = vcmp.eq.s32.totalorder %v227_v61, 1  ;;  %v139_v41 = vmul.f32 %v5089_v39, %v110_v54  ;;  %1947 = vmatpush.bf16.msra.mxu2 %v3400_v22  ;;  %1960 = vmatpush.bf16.msra.mxu3 %v3528_v23  ;;  %v166_v11 = vperm.slane %v150_v4, 1  ;;  %v149_v30 = vperm.slane %v80_v48, 3  ;;  %v4349_v39 = vld [vmem:[%s7140_s4 + $0x64] sm:$0xf] }
  0x62   :  { %v164_v32 = vperm.slane %v148_v5, 1  ;;  %v167_v12 = vperm.slane %v151_v1, 1  ;;  %vm238_vm14 = vcmp.eq.s32.totalorder %v230_v6, 1  ;;  %v202_v33 = vmul.f32 %v186_v63, %v110_v54  ;;  %v4381_v22 = vld [vmem:[%s7140_s4 + $0x164] sm:$0xf] }
  0x63   :  { %v220_v43 = vperm.slane %v214_v38, 2  ;;  %v3384_v14 = vor.u32 %v4417_v2, %v3381_v40  ;;  %v174_v18 = vadd.f32 %v166_v11, %v140_v55  ;;  %v211_v19 = vadd.f32 %v203_v56, %v166_v11  ;;  %v3093_v51 = vld [vmem:[%s7140_s4 + $0x50] sm:$0xf0]  ;;  %v4377_v57 = vld [vmem:[%s7140_s4 + $0x144] sm:$0xf] }
  0x64   :  { %v172_v20 = vadd.f32 %v164_v32, %v138_v3  ;;  %v209_v21 = vadd.f32 %v201_v60, %v164_v32  ;;  %1934 = vmatpush.bf16.msra.mxu1 %v3272_v31  ;;  %v175_v23 = vadd.f32 %v167_v12, %v141_v62  ;;  %v212_v28 = vadd.f32 %v204_v36, %v167_v12  ;;  %v3221_v58 = vld [vmem:[%s7140_s4 + $0x150] sm:$0xf0]  ;;  %v4409_v24 = vld [vmem:[%s7140_s4 + $0x244] sm:$0xf] }
  0x65   :  { %v165_v29 = vperm.slane %v149_v30, 1  ;;  %v228_v34 = vperm.slane %v220_v43, 0  ;;  %1922 = vmatpush.bf16.msra.mxu0 %v3128_v27  ;;  %1948 = vmatpush.bf16.msra.mxu2 %v3384_v14  ;;  %v245_v7 = vsel %vm237_vm12, %v174_v18, %v211_v19  ;;  %v3512_v38 = vor.u32 %v4449_v8, %v3509_v35  ;;  %v3493_v27 = vld [vmem:[%s7140_s4 + $0x370] sm:$0xf0]  ;;  %v4441_v61 = vld [vmem:[%s7140_s4 + $0x344] sm:$0xf] }
  0x66   :  { %v243_v31 = vsel %vm235_vm13, %v172_v20, %v209_v21  ;;  %v3112_v42 = vor.u32 %v4349_v39, %v3109_v17  ;;  %v253_v44 = vmax.f32 %v245_v7, 0.0  ;;  %v246_v47 = vsel %vm238_vm14, %v175_v23, %v212_v28  ;;  %v3349_v60 = vld [vmem:[%s7140_s4 + $0x250] sm:$0xf0]  ;;  %v4341_v2 = vld [vmem:[%s7140_s4 + $0x24] sm:$0xf] }
  0x67   :  { %v251_v46 = vmax.f32 %v243_v31, 0.0  ;;  %v173_v49 = vadd.f32 %v165_v29, %v139_v41  ;;  %v254_v0 = vmax.f32 %v246_v47, 0.0  ;;  %v210_v52 = vadd.f32 %v202_v33, %v165_v29  ;;  %1961 = vmatpush.bf16.msra.mxu3 %v3512_v38  ;;  %v3477_v62 = vld [vmem:[%s7140_s4 + $0x350] sm:$0xf0]  ;;  %v4373_v6 = vld [vmem:[%s7140_s4 + $0x124] sm:$0xf] }
  0x68   :  { %vm236_vm15 = vcmp.eq.s32.totalorder %v228_v34, 1  ;;  %1935 = vmatpush.bf16.msra.mxu1 %v3256_v45  ;;  %v3240_v53 = vor.u32 %v4381_v22, %v3237_v37  ;;  %v5467_v54 = vpack.c.bf16 %v253_v44, %v253_v44  ;;  %v3368_v55 = vor.u32 %v4413_v59, %v3365_v15  ;;  %v3077_v4 = vld [vmem:[%s7140_s4 + $0x30] sm:$0xf0]  ;;  %v4405_v8 = vld [vmem:[%s7140_s4 + $0x224] sm:$0xf] }
  0x69   :  { %v5469_v48 = vpack.c.bf16 %v251_v46, %v251_v46  ;;  %1923 = vmatpush.bf16.msra.mxu0 %v3112_v42  ;;  %v3496_v56 = vor.u32 %v4445_v16, %v3493_v27  ;;  %v5480_v25 = vpack.c.bf16 %v254_v0, %v254_v0  ;;  %v244_v45 = vsel %vm236_vm15, %v173_v49, %v210_v52  ;;  %v3205_v41 = vld [vmem:[%s7140_s4 + $0x130] sm:$0xf0]  ;;  %v4437_v12 = vld [vmem:[%s7140_s4 + $0x324] sm:$0xf] }
  0x6a   :  { %v3096_v3 = vor.u32 %v4345_v50, %v3093_v51  ;;  %1901 = vmatmul.bf16.vlgmr.msrb.gmra.mxu2 %v5467_v54  ;;  %v252_v63 = vmax.f32 %v244_v45, 0.0  ;;  %v3224_v5 = vor.u32 %v4377_v57, %v3221_v58  ;;  %v3352_v40 = vor.u32 %v4409_v24, %v3349_v60  ;;  %v3333_v32 = vld [vmem:[%s7140_s4 + $0x230] sm:$0xf0]  ;;  %v4337_v35 = vld [vmem:[%s7140_s4 + $0x4] sm:$0xf] }
  0x6b   :  { %1875 = vmatmul.bf16.vlgmr.msrb.gmra.mxu0 %v5469_v48  ;;  %1914 = vmatmul.bf16.vlgmr.msrb.gmra.mxu3 %v5480_v25  ;;  %v3480_v36 = vor.u32 %v4441_v61, %v3477_v62  ;;  %v3080_v11 = vor.u32 %v4341_v2, %v3077_v4  ;;  %v3461_v30 = vld [vmem:[%s7140_s4 + $0x330] sm:$0xf0]  ;;  %v4369_v43 = vld [vmem:[%s7140_s4 + $0x104] sm:$0xf]  ;;  %v3208_v14 = vor.u32 %v4373_v6, %v3205_v41 }
  0x6c   :  { %1936 = vmatpush.bf16.msra.mxu1 %v3240_v53  ;;  %v5500_v1 = vpack.c.bf16 %v252_v63, %v252_v63  ;;  %1949 = vmatpush.bf16.msra.mxu2 %v3368_v55  ;;  %v3061_v33 = vld [vmem:[%s7140_s4 + $0x10] sm:$0xf0]  ;;  %v4493_v17 = vld [vmem:[%s7140_s4 + $0x4e4] sm:$0xf]  ;;  %v3336_v19 = vor.u32 %v4405_v8, %v3333_v32  ;;  %v3464_v20 = vor.u32 %v4437_v12, %v3461_v30 }
  0x6d   :  { %1962 = vmatpush.bf16.msra.mxu3 %v3496_v56  ;;  %1924 = vmatpush.bf16.msra.mxu0 %v3096_v3  ;;  %v3189_v39 = vld [vmem:[%s7140_s4 + $0x110] sm:$0xf0]  ;;  %v4401_v21 = vld [vmem:[%s7140_s4 + $0x204] sm:$0xf]  ;;  %v3064_v28 = vor.u32 %v4337_v35, %v3061_v33 }
  0x6e   :  { %1888 = vmatmul.bf16.vlgmr.msrb.gmra.mxu1 %v5500_v1  ;;  %v3685_v18 = vld [vmem:[%s7140_s4 + $0x4f0] sm:$0xf0]  ;;  %v4433_v23 = vld [vmem:[%s7140_s4 + $0x304] sm:$0xf]  ;;  %v3192_v42 = vor.u32 %v4369_v43, %v3189_v39 }
  0x6f   :  { %v3317_v22 = vld [vmem:[%s7140_s4 + $0x210] sm:$0xf0]  ;;  %v4525_v34 = vld [vmem:[%s7140_s4 + $0x5e4] sm:$0xf]  ;;  %v3688_v59 = vor.u32 %v4493_v17, %v3685_v18 }
  0x70   :  { %1937 = vmatpush.bf16.msra.mxu1 %v3224_v5  ;;  %1950 = vmatpush.bf16.msra.mxu2 %v3352_v40  ;;  %v3445_v29 = vld [vmem:[%s7140_s4 + $0x310] sm:$0xf0]  ;;  %v4557_v7 = vld [vmem:[%s7140_s4 + $0x6e4] sm:$0xf]  ;;  %v3320_v44 = vor.u32 %v4401_v21, %v3317_v22 }
  0x71   :  { %1963 = vmatpush.bf16.msra.mxu3 %v3480_v36  ;;  %1925 = vmatpush.bf16.msra.mxu0 %v3080_v11  ;;  %v3813_v37 = vld [vmem:[%s7140_s4 + $0x5f0] sm:$0xf0]  ;;  %v4589_v38 = vld [vmem:[%s7140_s4 + $0x7e4] sm:$0xf]  ;;  %v3448_v46 = vor.u32 %v4433_v23, %v3445_v29 }
  0x72   :  { %v3941_v31 = vld [vmem:[%s7140_s4 + $0x6f0] sm:$0xf0]  ;;  %v4489_v16 = vld [vmem:[%s7140_s4 + $0x4c4] sm:$0xf]  ;;  %v3816_v47 = vor.u32 %v4525_v34, %v3813_v37 }
  0x73   :  { %v4069_v15 = vld [vmem:[%s7140_s4 + $0x7f0] sm:$0xf0]  ;;  %v3944_v49 = vor.u32 %v4557_v7, %v3941_v31  ;;  %v4521_v50 = vld [vmem:[%s7140_s4 + $0x5c4] sm:$0xf] }
  0x74   :  { %1938 = vmatpush.bf16.msra.mxu1 %v3208_v14  ;;  %v3669_v27 = vld [vmem:[%s7140_s4 + $0x4d0] sm:$0xf0]  ;;  %1951 = vmatpush.bf16.msra.mxu2 %v3336_v19  ;;  %v4072_v0 = vor.u32 %v4589_v38, %v4069_v15  ;;  %v4553_v53 = vld [vmem:[%s7140_s4 + $0x6c4] sm:$0xf] }
  0x75   :  { %1964 = vmatpush.bf16.msra.mxu3 %v3464_v20  ;;  %1926 = vmatpush.bf16.msra.mxu0 %v3064_v28  ;;  %v3797_v51 = vld [vmem:[%s7140_s4 + $0x5d0] sm:$0xf0]  ;;  %v3672_v52 = vor.u32 %v4489_v16, %v3669_v27  ;;  %v4585_v56 = vld [vmem:[%s7140_s4 + $0x7c4] sm:$0xf] }
  0x76   :  { %v3925_v55 = vld [vmem:[%s7140_s4 + $0x6d0] sm:$0xf0]  ;;  %v4485_v58 = vld [vmem:[%s7140_s4 + $0x4a4] sm:$0xf]  ;;  %v3800_v45 = vor.u32 %v4521_v50, %v3797_v51 }
  0x77   :  { %v4053_v57 = vld [vmem:[%s7140_s4 + $0x7d0] sm:$0xf0]  ;;  %v3928_v3 = vor.u32 %v4553_v53, %v3925_v55  ;;  %v4517_v60 = vld [vmem:[%s7140_s4 + $0x5a4] sm:$0xf] }
  0x78   :  { %1939 = vmatpush.bf16.msra.mxu1 %v3192_v42  ;;  %v3653_v24 = vld [vmem:[%s7140_s4 + $0x4b0] sm:$0xf0]  ;;  %1952 = vmatpush.bf16.msra.mxu2 %v3320_v44  ;;  %v4056_v62 = vor.u32 %v4585_v56, %v4053_v57  ;;  %v4549_v2 = vld [vmem:[%s7140_s4 + $0x6a4] sm:$0xf] }
  0x79   :  { %1971 = vmatpush.bf16.msrb.mxu0 %v3688_v59  ;;  %1965 = vmatpush.bf16.msra.mxu3 %v3448_v46  ;;  %v3781_v61 = vld [vmem:[%s7140_s4 + $0x5b0] sm:$0xf0]  ;;  %v3656_v63 = vor.u32 %v4485_v58, %v3653_v24  ;;  %v4581_v5 = vld [vmem:[%s7140_s4 + $0x7a4] sm:$0xf] }
  0x7a   :  { %v3909_v4 = vld [vmem:[%s7140_s4 + $0x6b0] sm:$0xf0]  ;;  %v4481_v36 = vld [vmem:[%s7140_s4 + $0x484] sm:$0xf]  ;;  %v3784_v41 = vor.u32 %v4517_v60, %v3781_v61 }
  0x7b   :  { %v4037_v40 = vld [vmem:[%s7140_s4 + $0x7b0] sm:$0xf0]  ;;  %1953 = vmatmul.bf16.vlgmr.msra.gmra.mxu2 %v5334_v9  ;;  %1927 = vmatmul.bf16.vlgmr.msra.gmra.mxu0 %v5336_v10  ;;  %v3912_v8 = vor.u32 %v4549_v2, %v3909_v4  ;;  %v4513_v11 = vld [vmem:[%s7140_s4 + $0x584] sm:$0xf] }
  0x7c   :  { %1984 = vmatpush.bf16.msrb.mxu1 %v3816_v47  ;;  %1997 = vmatpush.bf16.msrb.mxu2 %v3944_v49  ;;  %v3637_v6 = vld [vmem:[%s7140_s4 + $0x490] sm:$0xf0]  ;;  %v4040_v12 = vor.u32 %v4581_v5, %v4037_v40  ;;  %v4545_v35 = vld [vmem:[%s7140_s4 + $0x684] sm:$0xf] }
  0x7d   :  { %2010 = vmatpush.bf16.msrb.mxu3 %v4072_v0  ;;  %1972 = vmatpush.bf16.msrb.mxu0 %v3672_v52  ;;  %v3765_v32 = vld [vmem:[%s7140_s4 + $0x590] sm:$0xf0]  ;;  %v3640_v30 = vor.u32 %v4481_v36, %v3637_v6  ;;  %v4577_v43 = vld [vmem:[%s7140_s4 + $0x784] sm:$0xf] }
  0x7e   :  { %1966 = vmatmul.bf16.vlgmr.msra.gmra.mxu3 %v5359_v13  ;;  %v3893_v33 = vld [vmem:[%s7140_s4 + $0x690] sm:$0xf0]  ;;  %v4477_v39 = vld [vmem:[%s7140_s4 + $0x464] sm:$0xf]  ;;  %1940 = vmatmul.bf16.vlgmr.msra.gmra.mxu1 %v5397_v26  ;;  %v3768_v18 = vor.u32 %v4513_v11, %v3765_v32 }
  0x7f   :  { %v4021_v14 = vld [vmem:[%s7140_s4 + $0x790] sm:$0xf0]  ;;  %v3896_v19 = vor.u32 %v4545_v35, %v3893_v33  ;;  %v4509_v20 = vld [vmem:[%s7140_s4 + $0x564] sm:$0xf]  ;;  %v4400_v35 = vld [vmem:[%s7140_s4 + $0x1f4] sm:$0xf0] }
  0x80   :  { %1985 = vmatpush.bf16.msrb.mxu1 %v3800_v45  ;;  %1998 = vmatpush.bf16.msrb.mxu2 %v3928_v3  ;;  %v3621_v17 = vld [vmem:[%s7140_s4 + $0x470] sm:$0xf0]  ;;  %v4024_v22 = vor.u32 %v4577_v43, %v4021_v14  ;;  %v4541_v28 = vld [vmem:[%s7140_s4 + $0x664] sm:$0xf]  ;;  %v3435_v33 = vld [vmem:[%s7140_s4 + $0x2e8] sm:$0xf] }
  0x81   :  { %2011 = vmatpush.bf16.msrb.mxu3 %v4056_v62  ;;  %1973 = vmatpush.bf16.msrb.mxu0 %v3656_v63  ;;  %v3749_v21 = vld [vmem:[%s7140_s4 + $0x570] sm:$0xf0]  ;;  %v3624_v23 = vor.u32 %v4477_v39, %v3621_v17  ;;  %v4573_v34 = vld [vmem:[%s7140_s4 + $0x764] sm:$0xf]  ;;  %v3179_v62 = vld [vmem:[%s7140_s4 + $0xe8] sm:$0xf] }
  0x82   :  { %v3877_v29 = vld [vmem:[%s7140_s4 + $0x670] sm:$0xf0]  ;;  %v4473_v59 = vld [vmem:[%s7140_s4 + $0x444] sm:$0xf]  ;;  %v3752_v31 = vor.u32 %v4509_v20, %v3749_v21  ;;  %v4368_v63 = vld [vmem:[%s7140_s4 + $0xf4] sm:$0xf0] }
  0x83   :  { %v4005_v37 = vld [vmem:[%s7140_s4 + $0x770] sm:$0xf0]  ;;  %v3880_v38 = vor.u32 %v4541_v28, %v3877_v29  ;;  %v4505_v42 = vld [vmem:[%s7140_s4 + $0x544] sm:$0xf]  ;;  %v4432_v43 = vld [vmem:[%s7140_s4 + $0x2f4] sm:$0xf0] }
  0x84   :  { %1986 = vmatpush.bf16.msrb.mxu1 %v3784_v41  ;;  %1999 = vmatpush.bf16.msrb.mxu2 %v3912_v8  ;;  %v3605_v7 = vld [vmem:[%s7140_s4 + $0x450] sm:$0xf0]  ;;  %v4008_v16 = vor.u32 %v4573_v34, %v4005_v37  ;;  %v4537_v44 = vld [vmem:[%s7140_s4 + $0x644] sm:$0xf]  ;;  %v3563_v14 = vld [vmem:[%s7140_s4 + $0x3e8] sm:$0xf] }
  0x85   :  { %2012 = vmatpush.bf16.msrb.mxu3 %v4040_v12  ;;  %1974 = vmatpush.bf16.msrb.mxu0 %v3640_v30  ;;  %v3733_v15 = vld [vmem:[%s7140_s4 + $0x550] sm:$0xf0]  ;;  %v3608_v27 = vor.u32 %v4473_v59, %v3605_v7  ;;  %v4569_v47 = vld [vmem:[%s7140_s4 + $0x744] sm:$0xf]  ;;  %v3180_v12 = vor.u32 %v4368_v63, %v3179_v62  ;;  %v3307_v30 = vld [vmem:[%s7140_s4 + $0x1e8] sm:$0xf] }
  0x86   :  { %v3861_v46 = vld [vmem:[%s7140_s4 + $0x650] sm:$0xf0]  ;;  %v4469_v50 = vld [vmem:[%s7140_s4 + $0x424] sm:$0xf]  ;;  %v3736_v0 = vor.u32 %v4505_v42, %v3733_v15  ;;  %v4464_v39 = vld [vmem:[%s7140_s4 + $0x3f4] sm:$0xf0]  ;;  %v3308_v20 = vor.u32 %v4400_v35, %v3307_v30 }
  0x87   :  { %v3989_v49 = vld [vmem:[%s7140_s4 + $0x750] sm:$0xf0]  ;;  %v3864_v52 = vor.u32 %v4537_v44, %v3861_v46  ;;  %v4501_v53 = vld [vmem:[%s7140_s4 + $0x524] sm:$0xf]  ;;  %v3163_v21 = vld [vmem:[%s7140_s4 + $0xc8] sm:$0xf]  ;;  %v3564_v28 = vor.u32 %v4464_v39, %v3563_v14 }
  0x88   :  { %1987 = vmatpush.bf16.msrb.mxu1 %v3768_v18  ;;  %2000 = vmatpush.bf16.msrb.mxu2 %v3896_v19  ;;  %v3589_v51 = vld [vmem:[%s7140_s4 + $0x430] sm:$0xf0]  ;;  %v3992_v56 = vor.u32 %v4569_v47, %v3989_v49  ;;  %v4533_v58 = vld [vmem:[%s7140_s4 + $0x624] sm:$0xf]  ;;  %v3291_v29 = vld [vmem:[%s7140_s4 + $0x1c8] sm:$0xf] }
  0x89   :  { %2013 = vmatpush.bf16.msrb.mxu3 %v4024_v22  ;;  %1975 = vmatpush.bf16.msrb.mxu0 %v3624_v23  ;;  %v3717_v55 = vld [vmem:[%s7140_s4 + $0x530] sm:$0xf0]  ;;  %v3592_v57 = vor.u32 %v4469_v50, %v3589_v51  ;;  %v4565_v45 = vld [vmem:[%s7140_s4 + $0x724] sm:$0xf]  ;;  %v4364_v22 = vld [vmem:[%s7140_s4 + $0xd4] sm:$0xf0]  ;;  %v3436_v23 = vor.u32 %v4432_v43, %v3435_v33 }
  0x8a   :  { %v3845_v24 = vld [vmem:[%s7140_s4 + $0x630] sm:$0xf0]  ;;  %v4465_v60 = vld [vmem:[%s7140_s4 + $0x404] sm:$0xf]  ;;  %v3720_v2 = vor.u32 %v4501_v53, %v3717_v55  ;;  %v4396_v34 = vld [vmem:[%s7140_s4 + $0x1d4] sm:$0xf0] }
  0x8b   :  { %v3973_v3 = vld [vmem:[%s7140_s4 + $0x730] sm:$0xf0]  ;;  %v3848_v4 = vor.u32 %v4533_v58, %v3845_v24  ;;  %v4497_v5 = vld [vmem:[%s7140_s4 + $0x504] sm:$0xf]  ;;  %v3419_v37 = vld [vmem:[%s7140_s4 + $0x2c8] sm:$0xf]  ;;  %v3292_v42 = vor.u32 %v4396_v34, %v3291_v29 }
  0x8c   :  { %1988 = vmatpush.bf16.msrb.mxu1 %v3752_v31  ;;  %2001 = vmatpush.bf16.msrb.mxu2 %v3880_v38  ;;  %v3573_v61 = vld [vmem:[%s7140_s4 + $0x410] sm:$0xf0]  ;;  %v4529_v36 = vld [vmem:[%s7140_s4 + $0x604] sm:$0xf]  ;;  %v3976_v6 = vor.u32 %v4565_v45, %v3973_v3  ;;  %v4428_v59 = vld [vmem:[%s7140_s4 + $0x2d4] sm:$0xf0]  ;;  %v3164_v38 = vor.u32 %v4364_v22, %v3163_v21 }
  0x8d   :  { %2014 = vmatpush.bf16.msrb.mxu3 %v4008_v16  ;;  %1976 = vmatpush.bf16.msrb.mxu0 %v3608_v27  ;;  %v3701_v40 = vld [vmem:[%s7140_s4 + $0x510] sm:$0xf0]  ;;  %v3576_v41 = vor.u32 %v4465_v60, %v3573_v61  ;;  %v4561_v11 = vld [vmem:[%s7140_s4 + $0x704] sm:$0xf]  ;;  %v3547_v7 = vld [vmem:[%s7140_s4 + $0x3c8] sm:$0xf]  ;;  %v3420_v27 = vor.u32 %v4428_v59, %v3419_v37 }
  0x8e   :  { %v3829_v8 = vld [vmem:[%s7140_s4 + $0x610] sm:$0xf0]  ;;  %v3704_v17 = vor.u32 %v4497_v5, %v3701_v40  ;;  %v4460_v31 = vld [vmem:[%s7140_s4 + $0x3d4] sm:$0xf0]  ;;  %v3147_v15 = vld [vmem:[%s7140_s4 + $0xa8] sm:$0xf] }
  0x8f   :  { %v3957_v32 = vld [vmem:[%s7140_s4 + $0x710] sm:$0xf0]  ;;  %v3832_v18 = vor.u32 %v4529_v36, %v3829_v8  ;;  %v4360_v16 = vld [vmem:[%s7140_s4 + $0xb4] sm:$0xf0]  ;;  %v3548_v44 = vor.u32 %v4460_v31, %v3547_v7  ;;  %v3275_v46 = vld [vmem:[%s7140_s4 + $0x1a8] sm:$0xf] }
  0x90   :  { %1989 = vmatpush.bf16.msrb.mxu1 %v3736_v0  ;;  %2002 = vmatpush.bf16.msrb.mxu2 %v3864_v52  ;;  %v3960_v19 = vor.u32 %v4561_v11, %v3957_v32  ;;  %v4392_v47 = vld [vmem:[%s7140_s4 + $0x1b4] sm:$0xf0]  ;;  %v3403_v49 = vld [vmem:[%s7140_s4 + $0x2a8] sm:$0xf]  ;;  %v3148_v52 = vor.u32 %v4360_v16, %v3147_v15 }
  0x91   :  { %2015 = vmatpush.bf16.msrb.mxu3 %v3992_v56  ;;  %1977 = vmatpush.bf16.msrb.mxu0 %v3592_v57  ;;  %v4424_v50 = vld [vmem:[%s7140_s4 + $0x2b4] sm:$0xf0]  ;;  %v3531_v51 = vld [vmem:[%s7140_s4 + $0x3a8] sm:$0xf]  ;;  %v3276_v53 = vor.u32 %v4392_v47, %v3275_v46 }
  0x92   :  { %v4456_v0 = vld [vmem:[%s7140_s4 + $0x3b4] sm:$0xf0]  ;;  %v3131_v55 = vld [vmem:[%s7140_s4 + $0x88] sm:$0xf]  ;;  %v3404_v57 = vor.u32 %v4424_v50, %v3403_v49 }
  0x93   :  { %v4356_v56 = vld [vmem:[%s7140_s4 + $0x94] sm:$0xf0]  ;;  %v3532_v58 = vor.u32 %v4456_v0, %v3531_v51  ;;  %v3259_v24 = vld [vmem:[%s7140_s4 + $0x188] sm:$0xf] }
  0x94   :  { %1990 = vmatpush.bf16.msrb.mxu1 %v3720_v2  ;;  %2003 = vmatpush.bf16.msrb.mxu2 %v3848_v4  ;;  %v4388_v45 = vld [vmem:[%s7140_s4 + $0x194] sm:$0xf0]  ;;  %v3387_v3 = vld [vmem:[%s7140_s4 + $0x288] sm:$0xf]  ;;  %v3132_v63 = vor.u32 %v4356_v56, %v3131_v55 }
  0x95   :  { %2016 = vmatpush.bf16.msrb.mxu3 %v3976_v6  ;;  %1978 = vmatpush.bf16.msrb.mxu0 %v3576_v41  ;;  %v4420_v60 = vld [vmem:[%s7140_s4 + $0x294] sm:$0xf0]  ;;  %v3515_v61 = vld [vmem:[%s7140_s4 + $0x388] sm:$0xf]  ;;  %v3260_v2 = vor.u32 %v4388_v45, %v3259_v24 }
  0x96   :  { %v4452_v62 = vld [vmem:[%s7140_s4 + $0x394] sm:$0xf0]  ;;  %v3115_v4 = vld [vmem:[%s7140_s4 + $0x68] sm:$0xf]  ;;  %v3388_v40 = vor.u32 %v4420_v60, %v3387_v3 }
  0x97   :  { %v4352_v5 = vld [vmem:[%s7140_s4 + $0x74] sm:$0xf0]  ;;  %v3516_v36 = vor.u32 %v4452_v62, %v3515_v61  ;;  %v3243_v6 = vld [vmem:[%s7140_s4 + $0x168] sm:$0xf] }
  0x98   :  { %1991 = vmatpush.bf16.msrb.mxu1 %v3704_v17  ;;  %2004 = vmatpush.bf16.msrb.mxu2 %v3832_v18  ;;  %v4384_v41 = vld [vmem:[%s7140_s4 + $0x174] sm:$0xf0]  ;;  %v3371_v8 = vld [vmem:[%s7140_s4 + $0x268] sm:$0xf]  ;;  %v3116_v30 = vor.u32 %v4352_v5, %v3115_v4 }
  0x99   :  { %2023 = vmatpush.bf16.msra.mxu0 %v3180_v12  ;;  %2017 = vmatpush.bf16.msrb.mxu3 %v3960_v19  ;;  %v4416_v11 = vld [vmem:[%s7140_s4 + $0x274] sm:$0xf0]  ;;  %v3499_v32 = vld [vmem:[%s7140_s4 + $0x368] sm:$0xf]  ;;  %v3244_v35 = vor.u32 %v4384_v41, %v3243_v6 }
  0x9a   :  { %1979 = vmatmul.bf16.vlgmr.msrb.gmra.mxu0 %v5469_v48  ;;  %v4448_v12 = vld [vmem:[%s7140_s4 + $0x374] sm:$0xf0]  ;;  %v3099_v33 = vld [vmem:[%s7140_s4 + $0x48] sm:$0xf]  ;;  %v3372_v14 = vor.u32 %v4416_v11, %v3371_v8 }
  0x9b   :  { %2005 = vmatmul.bf16.vlgmr.msrb.gmra.mxu2 %v5467_v54  ;;  %1992 = vmatmul.bf16.vlgmr.msrb.gmra.mxu1 %v5500_v1  ;;  %v4348_v43 = vld [vmem:[%s7140_s4 + $0x54] sm:$0xf0]  ;;  %v3500_v39 = vor.u32 %v4448_v12, %v3499_v32  ;;  %v3227_v17 = vld [vmem:[%s7140_s4 + $0x148] sm:$0xf] }
  0x9c   :  { %2036 = vmatpush.bf16.msra.mxu1 %v3308_v20  ;;  %2049 = vmatpush.bf16.msra.mxu2 %v3436_v23  ;;  %v4380_v18 = vld [vmem:[%s7140_s4 + $0x154] sm:$0xf0]  ;;  %v3355_v19 = vld [vmem:[%s7140_s4 + $0x248] sm:$0xf]  ;;  %v3100_v23 = vor.u32 %v4348_v43, %v3099_v33 }
  0x9d   :  { %2062 = vmatpush.bf16.msra.mxu3 %v3564_v28  ;;  %2024 = vmatpush.bf16.msra.mxu0 %v3164_v38  ;;  %v4412_v20 = vld [vmem:[%s7140_s4 + $0x254] sm:$0xf0]  ;;  %v3483_v21 = vld [vmem:[%s7140_s4 + $0x348] sm:$0xf]  ;;  %v3228_v28 = vor.u32 %v4380_v18, %v3227_v17 }
  0x9e   :  { %2018 = vmatmul.bf16.vlgmr.msrb.gmra.mxu3 %v5480_v25  ;;  %v4444_v22 = vld [vmem:[%s7140_s4 + $0x354] sm:$0xf0]  ;;  %v3083_v29 = vld [vmem:[%s7140_s4 + $0x28] sm:$0xf]  ;;  %v3356_v37 = vor.u32 %v4412_v20, %v3355_v19 }
  0x9f   :  { %v4344_v34 = vld [vmem:[%s7140_s4 + $0x34] sm:$0xf0]  ;;  %v3484_v59 = vor.u32 %v4444_v22, %v3483_v21  ;;  %v3211_v7 = vld [vmem:[%s7140_s4 + $0x128] sm:$0xf] }
  0xa0   :  { %2037 = vmatpush.bf16.msra.mxu1 %v3292_v42  ;;  %2050 = vmatpush.bf16.msra.mxu2 %v3420_v27  ;;  %v4376_v31 = vld [vmem:[%s7140_s4 + $0x134] sm:$0xf0]  ;;  %v3339_v38 = vld [vmem:[%s7140_s4 + $0x228] sm:$0xf]  ;;  %v3084_v27 = vor.u32 %v4344_v34, %v3083_v29 }
  0xa1   :  { %2063 = vmatpush.bf16.msra.mxu3 %v3548_v44  ;;  %2025 = vmatpush.bf16.msra.mxu0 %v3148_v52  ;;  %v4408_v42 = vld [vmem:[%s7140_s4 + $0x234] sm:$0xf0]  ;;  %v3467_v15 = vld [vmem:[%s7140_s4 + $0x328] sm:$0xf]  ;;  %v3212_v47 = vor.u32 %v4376_v31, %v3211_v7 }
  0xa2   :  { %v4440_v16 = vld [vmem:[%s7140_s4 + $0x334] sm:$0xf0]  ;;  %v3067_v44 = vld [vmem:[%s7140_s4 + $0x8] sm:$0xf]  ;;  %v3340_v0 = vor.u32 %v4408_v42, %v3339_v38 }
  0xa3   :  { %v4340_v46 = vld [vmem:[%s7140_s4 + $0x14] sm:$0xf0]  ;;  %v3195_v49 = vld [vmem:[%s7140_s4 + $0x108] sm:$0xf]  ;;  %v3468_v52 = vor.u32 %v4440_v16, %v3467_v15 }
  0xa4   :  { %2038 = vmatpush.bf16.msra.mxu1 %v3276_v53  ;;  %2051 = vmatpush.bf16.msra.mxu2 %v3404_v57  ;;  %v4372_v50 = vld [vmem:[%s7140_s4 + $0x114] sm:$0xf0]  ;;  %v3323_v51 = vld [vmem:[%s7140_s4 + $0x208] sm:$0xf]  ;;  %v3068_v45 = vor.u32 %v4340_v46, %v3067_v44 }
  0xa5   :  { %2064 = vmatpush.bf16.msra.mxu3 %v3532_v58  ;;  %2026 = vmatpush.bf16.msra.mxu0 %v3132_v63  ;;  %v4404_v53 = vld [vmem:[%s7140_s4 + $0x214] sm:$0xf0]  ;;  %v3691_v55 = vld [vmem:[%s7140_s4 + $0x4e8] sm:$0xf]  ;;  %v3196_v62 = vor.u32 %v4372_v50, %v3195_v49 }
  0xa6   :  { %v4496_v56 = vld [vmem:[%s7140_s4 + $0x4f4] sm:$0xf0]  ;;  %v3451_v57 = vld [vmem:[%s7140_s4 + $0x308] sm:$0xf]  ;;  %v3324_v5 = vor.u32 %v4404_v53, %v3323_v51 }
  0xa7   :  { %v4436_v58 = vld [vmem:[%s7140_s4 + $0x314] sm:$0xf0]  ;;  %v3819_v24 = vld [vmem:[%s7140_s4 + $0x5e8] sm:$0xf]  ;;  %v3692_v63 = vor.u32 %v4496_v56, %v3691_v55 }
  0xa8   :  { %2039 = vmatpush.bf16.msra.mxu1 %v3260_v2  ;;  %2052 = vmatpush.bf16.msra.mxu2 %v3388_v40  ;;  %v4528_v3 = vld [vmem:[%s7140_s4 + $0x5f4] sm:$0xf0]  ;;  %v3947_v60 = vld [vmem:[%s7140_s4 + $0x6e8] sm:$0xf]  ;;  %v3452_v40 = vor.u32 %v4436_v58, %v3451_v57 }
  0xa9   :  { %2065 = vmatpush.bf16.msra.mxu3 %v3516_v36  ;;  %2027 = vmatpush.bf16.msra.mxu0 %v3116_v30  ;;  %v4560_v61 = vld [vmem:[%s7140_s4 + $0x6f4] sm:$0xf0]  ;;  %v4075_v2 = vld [vmem:[%s7140_s4 + $0x7e8] sm:$0xf]  ;;  %v3820_v41 = vor.u32 %v4528_v3, %v3819_v24 }
  0xaa   :  { %v4592_v4 = vld [vmem:[%s7140_s4 + $0x7f4] sm:$0xf0]  ;;  %v3675_v36 = vld [vmem:[%s7140_s4 + $0x4c8] sm:$0xf]  ;;  %v3948_v8 = vor.u32 %v4560_v61, %v3947_v60 }
  0xab   :  { %v4492_v6 = vld [vmem:[%s7140_s4 + $0x4d4] sm:$0xf0]  ;;  %v3803_v11 = vld [vmem:[%s7140_s4 + $0x5c8] sm:$0xf]  ;;  %v4076_v32 = vor.u32 %v4592_v4, %v4075_v2 }
  0xac   :  { %2040 = vmatpush.bf16.msra.mxu1 %v3244_v35  ;;  %2053 = vmatpush.bf16.msra.mxu2 %v3372_v14  ;;  %v4524_v12 = vld [vmem:[%s7140_s4 + $0x5d4] sm:$0xf0]  ;;  %v3931_v30 = vld [vmem:[%s7140_s4 + $0x6c8] sm:$0xf]  ;;  %v3676_v33 = vor.u32 %v4492_v6, %v3675_v36 }
  0xad   :  { %2066 = vmatpush.bf16.msra.mxu3 %v3500_v39  ;;  %2028 = vmatpush.bf16.msra.mxu0 %v3100_v23  ;;  %v4556_v35 = vld [vmem:[%s7140_s4 + $0x6d4] sm:$0xf0]  ;;  %v4059_v43 = vld [vmem:[%s7140_s4 + $0x7c8] sm:$0xf]  ;;  %v3804_v18 = vor.u32 %v4524_v12, %v3803_v11 }
  0xae   :  { %v4588_v14 = vld [vmem:[%s7140_s4 + $0x7d4] sm:$0xf0]  ;;  %v3659_v39 = vld [vmem:[%s7140_s4 + $0x4a8] sm:$0xf]  ;;  %v3932_v19 = vor.u32 %v4556_v35, %v3931_v30 }
  0xaf   :  { %v4488_v17 = vld [vmem:[%s7140_s4 + $0x4b4] sm:$0xf0]  ;;  %v3787_v20 = vld [vmem:[%s7140_s4 + $0x5a8] sm:$0xf]  ;;  %v4060_v21 = vor.u32 %v4588_v14, %v4059_v43 }
  0xb0   :  { %2041 = vmatpush.bf16.msra.mxu1 %v3228_v28  ;;  %2054 = vmatpush.bf16.msra.mxu2 %v3356_v37  ;;  %v4520_v22 = vld [vmem:[%s7140_s4 + $0x5b4] sm:$0xf0]  ;;  %v3915_v23 = vld [vmem:[%s7140_s4 + $0x6a8] sm:$0xf]  ;;  %v3660_v29 = vor.u32 %v4488_v17, %v3659_v39 }
  0xb1   :  { %2067 = vmatpush.bf16.msra.mxu3 %v3484_v59  ;;  %2029 = vmatpush.bf16.msra.mxu0 %v3084_v27  ;;  %v4552_v28 = vld [vmem:[%s7140_s4 + $0x6b4] sm:$0xf0]  ;;  %v4043_v34 = vld [vmem:[%s7140_s4 + $0x7a8] sm:$0xf]  ;;  %v3788_v31 = vor.u32 %v4520_v22, %v3787_v20 }
  0xb2   :  { %v4584_v37 = vld [vmem:[%s7140_s4 + $0x7b4] sm:$0xf0]  ;;  %v3643_v59 = vld [vmem:[%s7140_s4 + $0x488] sm:$0xf]  ;;  %v3916_v38 = vor.u32 %v4552_v28, %v3915_v23 }
  0xb3   :  { %v4484_v7 = vld [vmem:[%s7140_s4 + $0x494] sm:$0xf0]  ;;  %v3771_v42 = vld [vmem:[%s7140_s4 + $0x588] sm:$0xf]  ;;  %v4044_v15 = vor.u32 %v4584_v37, %v4043_v34  ;;  %v4366_v37 = vld [vmem:[%s7140_s4 + $0xec] sm:$0xf] }
  0xb4   :  { %2042 = vmatpush.bf16.msra.mxu1 %v3212_v47  ;;  %2055 = vmatpush.bf16.msra.mxu2 %v3340_v0  ;;  %v4516_v16 = vld [vmem:[%s7140_s4 + $0x594] sm:$0xf0]  ;;  %v3899_v27 = vld [vmem:[%s7140_s4 + $0x688] sm:$0xf]  ;;  %v3644_v46 = vor.u32 %v4484_v7, %v3643_v59  ;;  %v3181_v59 = vld [vmem:[%s7140_s4 + $0xf8] sm:$0xf0] }
  0xb5   :  { %2068 = vmatpush.bf16.msra.mxu3 %v3468_v52  ;;  %2030 = vmatpush.bf16.msra.mxu0 %v3068_v45  ;;  %v4548_v44 = vld [vmem:[%s7140_s4 + $0x694] sm:$0xf0]  ;;  %v4027_v47 = vld [vmem:[%s7140_s4 + $0x788] sm:$0xf]  ;;  %v3772_v0 = vor.u32 %v4516_v16, %v3771_v42  ;;  %v4398_v16 = vld [vmem:[%s7140_s4 + $0x1ec] sm:$0xf] }
  0xb6   :  { %v4580_v49 = vld [vmem:[%s7140_s4 + $0x794] sm:$0xf0]  ;;  %v3627_v50 = vld [vmem:[%s7140_s4 + $0x468] sm:$0xf]  ;;  %v3900_v52 = vor.u32 %v4548_v44, %v3899_v27  ;;  %v3309_v27 = vld [vmem:[%s7140_s4 + $0x1f8] sm:$0xf0] }
  0xb7   :  { %v4480_v51 = vld [vmem:[%s7140_s4 + $0x474] sm:$0xf0]  ;;  %v3755_v53 = vld [vmem:[%s7140_s4 + $0x568] sm:$0xf]  ;;  %v4028_v55 = vor.u32 %v4580_v49, %v4027_v47  ;;  %v4430_v44 = vld [vmem:[%s7140_s4 + $0x2ec] sm:$0xf] }
  0xb8   :  { %2043 = vmatpush.bf16.msra.mxu1 %v3196_v62  ;;  %2056 = vmatpush.bf16.msra.mxu2 %v3324_v5  ;;  %v4512_v56 = vld [vmem:[%s7140_s4 + $0x574] sm:$0xf0]  ;;  %v3883_v57 = vld [vmem:[%s7140_s4 + $0x668] sm:$0xf]  ;;  %v3628_v24 = vor.u32 %v4480_v51, %v3627_v50  ;;  %v3437_v47 = vld [vmem:[%s7140_s4 + $0x2f8] sm:$0xf0] }
  0xb9   :  { %2075 = vmatpush.bf16.msrb.mxu0 %v3692_v63  ;;  %2069 = vmatpush.bf16.msra.mxu3 %v3452_v40  ;;  %v4544_v58 = vld [vmem:[%s7140_s4 + $0x674] sm:$0xf0]  ;;  %v4011_v45 = vld [vmem:[%s7140_s4 + $0x768] sm:$0xf]  ;;  %v3756_v62 = vor.u32 %v4512_v56, %v3755_v53  ;;  %v4462_v49 = vld [vmem:[%s7140_s4 + $0x3ec] sm:$0xf] }
  0xba   :  { %2031 = vmatmul.bf16.vlgmr.msra.gmra.mxu0 %v5336_v10  ;;  %v4576_v3 = vld [vmem:[%s7140_s4 + $0x774] sm:$0xf0]  ;;  %v3611_v60 = vld [vmem:[%s7140_s4 + $0x448] sm:$0xf]  ;;  %v3884_v63 = vor.u32 %v4544_v58, %v3883_v57  ;;  %v3565_v50 = vld [vmem:[%s7140_s4 + $0x3f8] sm:$0xf0]  ;;  %v3440_v58 = vor.u32 %v4430_v44, %v3437_v47 }
  0xbb   :  { %2057 = vmatmul.bf16.vlgmr.msra.gmra.mxu2 %v5334_v9  ;;  %2044 = vmatmul.bf16.vlgmr.msra.gmra.mxu1 %v5397_v26  ;;  %v4476_v61 = vld [vmem:[%s7140_s4 + $0x454] sm:$0xf0]  ;;  %v3739_v2 = vld [vmem:[%s7140_s4 + $0x548] sm:$0xf]  ;;  %v4012_v4 = vor.u32 %v4576_v3, %v4011_v45  ;;  %v4362_v56 = vld [vmem:[%s7140_s4 + $0xcc] sm:$0xf] }
  0xbc   :  { %2088 = vmatpush.bf16.msrb.mxu1 %v3820_v41  ;;  %2101 = vmatpush.bf16.msrb.mxu2 %v3948_v8  ;;  %v4508_v5 = vld [vmem:[%s7140_s4 + $0x554] sm:$0xf0]  ;;  %v3867_v40 = vld [vmem:[%s7140_s4 + $0x648] sm:$0xf]  ;;  %v3612_v6 = vor.u32 %v4476_v61, %v3611_v60  ;;  %v3165_v57 = vld [vmem:[%s7140_s4 + $0xd8] sm:$0xf0] }
  0xbd   :  { %2114 = vmatpush.bf16.msrb.mxu3 %v4076_v32  ;;  %2076 = vmatpush.bf16.msrb.mxu0 %v3676_v33  ;;  %v4540_v36 = vld [vmem:[%s7140_s4 + $0x654] sm:$0xf0]  ;;  %v3995_v41 = vld [vmem:[%s7140_s4 + $0x748] sm:$0xf]  ;;  %v3740_v12 = vor.u32 %v4508_v5, %v3739_v2  ;;  %v4394_v45 = vld [vmem:[%s7140_s4 + $0x1cc] sm:$0xf] }
  0xbe   :  { %2070 = vmatmul.bf16.vlgmr.msra.gmra.mxu3 %v5359_v13  ;;  %v4572_v8 = vld [vmem:[%s7140_s4 + $0x754] sm:$0xf0]  ;;  %v3595_v11 = vld [vmem:[%s7140_s4 + $0x428] sm:$0xf]  ;;  %v3868_v30 = vor.u32 %v4540_v36, %v3867_v40  ;;  %v3293_v3 = vld [vmem:[%s7140_s4 + $0x1d8] sm:$0xf0] }
  0xbf   :  { %v4472_v32 = vld [vmem:[%s7140_s4 + $0x434] sm:$0xf0]  ;;  %v3723_v35 = vld [vmem:[%s7140_s4 + $0x528] sm:$0xf]  ;;  %v3996_v33 = vor.u32 %v4572_v8, %v3995_v41  ;;  %v4426_v60 = vld [vmem:[%s7140_s4 + $0x2cc] sm:$0xf]  ;;  %v3296_v5 = vor.u32 %v4394_v45, %v3293_v3 }
  0xc0   :  { %2089 = vmatpush.bf16.msrb.mxu1 %v3804_v18  ;;  %2102 = vmatpush.bf16.msrb.mxu2 %v3932_v19  ;;  %v4504_v43 = vld [vmem:[%s7140_s4 + $0x534] sm:$0xf0]  ;;  %v3851_v14 = vld [vmem:[%s7140_s4 + $0x628] sm:$0xf]  ;;  %v3596_v17 = vor.u32 %v4472_v32, %v3595_v11  ;;  %v3421_v61 = vld [vmem:[%s7140_s4 + $0x2d8] sm:$0xf0] }
  0xc1   :  { %2115 = vmatpush.bf16.msrb.mxu3 %v4060_v21  ;;  %2077 = vmatpush.bf16.msrb.mxu0 %v3660_v29  ;;  %v4536_v39 = vld [vmem:[%s7140_s4 + $0x634] sm:$0xf0]  ;;  %v3979_v18 = vld [vmem:[%s7140_s4 + $0x728] sm:$0xf]  ;;  %v3724_v28 = vor.u32 %v4504_v43, %v3723_v35  ;;  %v4358_v40 = vld [vmem:[%s7140_s4 + $0xac] sm:$0xf] }
  0xc2   :  { %v4568_v19 = vld [vmem:[%s7140_s4 + $0x734] sm:$0xf0]  ;;  %v3579_v20 = vld [vmem:[%s7140_s4 + $0x408] sm:$0xf]  ;;  %v3852_v29 = vor.u32 %v4536_v39, %v3851_v14  ;;  %v3149_v36 = vld [vmem:[%s7140_s4 + $0xb8] sm:$0xf0] }
  0xc3   :  { %v4468_v21 = vld [vmem:[%s7140_s4 + $0x414] sm:$0xf0]  ;;  %v3707_v22 = vld [vmem:[%s7140_s4 + $0x508] sm:$0xf]  ;;  %v3980_v7 = vor.u32 %v4568_v19, %v3979_v18  ;;  %v4390_v8 = vld [vmem:[%s7140_s4 + $0x1ac] sm:$0xf]  ;;  %v3152_v14 = vor.u32 %v4358_v40, %v3149_v36 }
  0xc4   :  { %2090 = vmatpush.bf16.msrb.mxu1 %v3788_v31  ;;  %2103 = vmatpush.bf16.msrb.mxu2 %v3916_v38  ;;  %v4500_v23 = vld [vmem:[%s7140_s4 + $0x514] sm:$0xf0]  ;;  %v3835_v34 = vld [vmem:[%s7140_s4 + $0x608] sm:$0xf]  ;;  %v3277_v11 = vld [vmem:[%s7140_s4 + $0x1b8] sm:$0xf0] }
  0xc5   :  { %2116 = vmatpush.bf16.msrb.mxu3 %v4044_v15  ;;  %2078 = vmatpush.bf16.msrb.mxu0 %v3644_v46  ;;  %v4532_v31 = vld [vmem:[%s7140_s4 + $0x614] sm:$0xf0]  ;;  %v3963_v38 = vld [vmem:[%s7140_s4 + $0x708] sm:$0xf]  ;;  %v3580_v15 = vor.u32 %v4468_v21, %v3579_v20  ;;  %v3184_v46 = vor.u32 %v4366_v37, %v3181_v59  ;;  %v3708_v51 = vor.u32 %v4500_v23, %v3707_v22  ;;  %v4422_v32 = vld [vmem:[%s7140_s4 + $0x2ac] sm:$0xf] }
  0xc6   :  { %v4564_v42 = vld [vmem:[%s7140_s4 + $0x714] sm:$0xf0]  ;;  %v4454_v35 = vld [vmem:[%s7140_s4 + $0x3ac] sm:$0xf]  ;;  %v3280_v39 = vor.u32 %v4390_v8, %v3277_v11  ;;  %v3133_v18 = vld [vmem:[%s7140_s4 + $0x98] sm:$0xf0] }
  0xc7   :  { %v3964_v53 = vor.u32 %v4564_v42, %v3963_v38  ;;  %v4386_v21 = vld [vmem:[%s7140_s4 + $0x18c] sm:$0xf]  ;;  %v3261_v22 = vld [vmem:[%s7140_s4 + $0x198] sm:$0xf0] }
  0xc8   :  { %2091 = vmatpush.bf16.msrb.mxu1 %v3772_v0  ;;  %2104 = vmatpush.bf16.msrb.mxu2 %v3900_v52  ;;  %v3836_v0 = vor.u32 %v4532_v31, %v3835_v34  ;;  %v6160_v52 = vld [vmem:[%s7145_s5] sm:$0x77]  ;;  %v4418_v23 = vld [vmem:[%s7140_s4 + $0x28c] sm:$0xf]  ;;  %v3517_v37 = vld [vmem:[%s7140_s4 + $0x398] sm:$0xf0]  ;;  %v3264_v38 = vor.u32 %v4386_v21, %v3261_v22 }
  0xc9   :  { %2117 = vmatpush.bf16.msrb.mxu3 %v4028_v55  ;;  %2079 = vmatpush.bf16.msrb.mxu0 %v3628_v24  ;;  %v3312_v55 = vor.u32 %v4398_v16, %v3309_v27  ;;  %v3568_v24 = vor.u32 %v4462_v49, %v3565_v50  ;;  %v523_v2 = vperm.slane %v6160_v52, 0  ;;  %v4450_v34 = vld [vmem:[%s7140_s4 + $0x38c] sm:$0xf]  ;;  %v3245_v47 = vld [vmem:[%s7140_s4 + $0x178] sm:$0xf0] }
  0xca   :  { %v4350_v42 = vld [vmem:[%s7140_s4 + $0x6c] sm:$0xf]  ;;  %v3520_v44 = vor.u32 %v4450_v34, %v3517_v37  ;;  %v3085_v11 = vld [vmem:[%s7140_s4 + $0x38] sm:$0xf0] }
  0xcb   :  { %v531_v43 = vperm.slane %v523_v2, 0  ;;  %v4414_v49 = vld [vmem:[%s7140_s4 + $0x26c] sm:$0xf]  ;;  %v3357_v2 = vld [vmem:[%s7140_s4 + $0x258] sm:$0xf0] }
  0xcc   :  { %2092 = vmatpush.bf16.msrb.mxu1 %v3756_v62  ;;  %2105 = vmatpush.bf16.msrb.mxu2 %v3884_v63  ;;  %v4458_v62 = vld [vmem:[%s7140_s4 + $0x3cc] sm:$0xf]  ;;  %v3549_v63 = vld [vmem:[%s7140_s4 + $0x3d8] sm:$0xf0] }
  0xcd   :  { %2118 = vmatpush.bf16.msrb.mxu3 %v4012_v4  ;;  %2080 = vmatpush.bf16.msrb.mxu0 %v3612_v6  ;;  %v3168_v4 = vor.u32 %v4362_v56, %v3165_v57  ;;  %v3424_v6 = vor.u32 %v4426_v60, %v3421_v61  ;;  %v3552_v41 = vor.u32 %v4458_v62, %v3549_v63  ;;  %v4378_v45 = vld [vmem:[%s7140_s4 + $0x14c] sm:$0xf]  ;;  %v3229_v61 = vld [vmem:[%s7140_s4 + $0x158] sm:$0xf0] }
  0xce   :  { %v4410_v62 = vld [vmem:[%s7140_s4 + $0x24c] sm:$0xf]  ;;  %v3069_v22 = vld [vmem:[%s7140_s4 + $0x18] sm:$0xf0] }
  0xcf   :  { %v4342_v8 = vld [vmem:[%s7140_s4 + $0x2c] sm:$0xf] }
  0xd0   :  { %2093 = vmatpush.bf16.msrb.mxu1 %v3740_v12  ;;  %2106 = vmatpush.bf16.msrb.mxu2 %v3868_v30  ;;  %v3405_v30 = vld [vmem:[%s7140_s4 + $0x2b8] sm:$0xf0]  ;;  %v4338_v21 = vld [vmem:[%s7140_s4 + $0xc] sm:$0xf] }
  0xd1   :  { %2119 = vmatpush.bf16.msrb.mxu3 %v3996_v33  ;;  %2081 = vmatpush.bf16.msrb.mxu0 %v3596_v17  ;;  %v3533_v33 = vld [vmem:[%s7140_s4 + $0x3b8] sm:$0xf0]  ;;  %v4354_v17 = vld [vmem:[%s7140_s4 + $0x8c] sm:$0xf]  ;;  %v3408_v19 = vor.u32 %v4422_v32, %v3405_v30  ;;  %v3360_v30 = vor.u32 %v4410_v62, %v3357_v2 }
  0xd2   :  { %v3536_v20 = vor.u32 %v4454_v35, %v3533_v33  ;;  %v4374_v33 = vld [vmem:[%s7140_s4 + $0x12c] sm:$0xf] }
  0xd3   :  { %v4402_v34 = vld [vmem:[%s7140_s4 + $0x20c] sm:$0xf] }
  0xd4   :  { %2094 = vmatpush.bf16.msrb.mxu1 %v3724_v28  ;;  %2107 = vmatpush.bf16.msrb.mxu2 %v3852_v29  ;;  %v1824_v12 = vpop.f32.mrf.mxu0  ;;  %v3389_v29 = vld [vmem:[%s7140_s4 + $0x298] sm:$0xf0] }
  0xd5   :  { %2120 = vmatpush.bf16.msrb.mxu3 %v3980_v7  ;;  %2082 = vmatpush.bf16.msrb.mxu0 %v3580_v15  ;;  %v1825_v59 = vadd.f32 %v1824_v12, %v531_v43  ;;  %v3136_v7 = vor.u32 %v4354_v17, %v3133_v18  ;;  %v3117_v15 = vld [vmem:[%s7140_s4 + $0x78] sm:$0xf0]  ;;  %v3392_v27 = vor.u32 %v4418_v23, %v3389_v29  ;;  %v4680_v12 = vmov 2.0   ;;  %v4438_v17 = vld [vmem:[%s7140_s4 + $0x32c] sm:$0xf] }
  0xd6   :  { %v3120_v56 = vor.u32 %v4350_v42, %v3117_v15  ;;  %4664 = vrcp.f32 %v4680_v12  ;;  %v3213_v43 = vld [vmem:[%s7140_s4 + $0x138] sm:$0xf0]  ;;  %v4434_v15 = vld [vmem:[%s7140_s4 + $0x30c] sm:$0xf] }
  0xd7   :  { %v3469_v18 = vld [vmem:[%s7140_s4 + $0x338] sm:$0xf0]  ;;  %v3216_v23 = vor.u32 %v4374_v33, %v3213_v43 }
  0xd8   :  { %2095 = vmatpush.bf16.msrb.mxu1 %v3708_v51  ;;  %2108 = vmatpush.bf16.msrb.mxu2 %v3836_v0  ;;  %v1837_v28 = vpop.f32.mrf.mxu1  ;;  %v3373_v51 = vld [vmem:[%s7140_s4 + $0x278] sm:$0xf0]  ;;  %v4446_v0 = vld [vmem:[%s7140_s4 + $0x36c] sm:$0xf] }
  0xd9   :  { %2127 = vmatpush.bf16.msra.mxu0 %v3184_v46  ;;  %2121 = vmatpush.bf16.msrb.mxu3 %v3964_v53  ;;  %v4382_v46 = vld [vmem:[%s7140_s4 + $0x16c] sm:$0xf]  ;;  %v3501_v53 = vld [vmem:[%s7140_s4 + $0x378] sm:$0xf0]  ;;  %v3376_v3 = vor.u32 %v4414_v49, %v3373_v51 }
  0xda   :  { %2083 = vmatmul.bf16.vlgmr.msrb.gmra.mxu0 %v5469_v48  ;;  %v1850_v31 = vpop.f32.mrf.mxu2  ;;  %v3248_v57 = vor.u32 %v4382_v46, %v3245_v47  ;;  %v3504_v60 = vor.u32 %v4446_v0, %v3501_v53  ;;  %v3197_v29 = vld [vmem:[%s7140_s4 + $0x118] sm:$0xf0]  ;;  %v3072_v47 = vor.u32 %v4338_v21, %v3069_v22  ;;  %v4550_v21 = vld [vmem:[%s7140_s4 + $0x6ac] sm:$0xf] }
  0xdb   :  { %2109 = vmatmul.bf16.vlgmr.msrb.gmra.mxu2 %v5467_v54  ;;  %2096 = vmatmul.bf16.vlgmr.msrb.gmra.mxu1 %v5500_v1  ;;  %v1863_v16 = vpop.f32.mrf.mxu3  ;;  %v3821_v49 = vld [vmem:[%s7140_s4 + $0x5f8] sm:$0xf0] }
  0xdc   :  { %2140 = vmatpush.bf16.msra.mxu1 %v3312_v55  ;;  %2153 = vmatpush.bf16.msra.mxu2 %v3440_v58  ;;  %v1826_v50 = vpop.f32.mrf.mxu0  ;;  %v1838_v55 = vadd.f32 %v1837_v28, %v1825_v59  ;;  %v4346_v58 = vld [vmem:[%s7140_s4 + $0x4c] sm:$0xf]  ;;  %v3472_v59 = vor.u32 %v4438_v17, %v3469_v18  ;;  %v3949_v51 = vld [vmem:[%s7140_s4 + $0x6f8] sm:$0xf0] }
  0xdd   :  { %2166 = vmatpush.bf16.msra.mxu3 %v3568_v24  ;;  %2128 = vmatpush.bf16.msra.mxu0 %v3168_v4  ;;  %v3101_v24 = vld [vmem:[%s7140_s4 + $0x58] sm:$0xf0]  ;;  %v4442_v4 = vld [vmem:[%s7140_s4 + $0x34c] sm:$0xf] }
  0xde   :  { %2122 = vmatmul.bf16.vlgmr.msrb.gmra.mxu3 %v5480_v25  ;;  %v1851_v40 = vadd.f32 %v1850_v31, %v1838_v55  ;;  %v3104_v36 = vor.u32 %v4346_v58, %v3101_v24  ;;  %v4370_v28 = vld [vmem:[%s7140_s4 + $0x10c] sm:$0xf]  ;;  %v3917_v22 = vld [vmem:[%s7140_s4 + $0x6b8] sm:$0xf0] }
  0xdf   :  { %v4494_v31 = vld [vmem:[%s7140_s4 + $0x4ec] sm:$0xf]  ;;  %v3200_v0 = vor.u32 %v4370_v28, %v3197_v29  ;;  %v4045_v29 = vld [vmem:[%s7140_s4 + $0x7b8] sm:$0xf0] }
  0xe0   :  { %2141 = vmatpush.bf16.msra.mxu1 %v3296_v5  ;;  %2154 = vmatpush.bf16.msra.mxu2 %v3424_v6  ;;  %v1839_v63 = vpop.f32.mrf.mxu1  ;;  %v3485_v5 = vld [vmem:[%s7140_s4 + $0x358] sm:$0xf0]  ;;  %v4558_v50 = vld [vmem:[%s7140_s4 + $0x6ec] sm:$0xf] }
  0xe1   :  { %2167 = vmatpush.bf16.msra.mxu3 %v3552_v41  ;;  %2129 = vmatpush.bf16.msra.mxu0 %v3152_v14  ;;  %v3232_v41 = vor.u32 %v4378_v45, %v3229_v61  ;;  %v3488_v35 = vor.u32 %v4442_v4, %v3485_v5  ;;  %v4406_v14 = vld [vmem:[%s7140_s4 + $0x22c] sm:$0xf]  ;;  %v3677_v45 = vld [vmem:[%s7140_s4 + $0x4d8] sm:$0xf0]  ;;  %v3952_v62 = vor.u32 %v4558_v50, %v3949_v51 }
  0xe2   :  { %v1852_v6 = vpop.f32.mrf.mxu2  ;;  %v4590_v55 = vld [vmem:[%s7140_s4 + $0x7ec] sm:$0xf]  ;;  %v3805_v5 = vld [vmem:[%s7140_s4 + $0x5d8] sm:$0xf0] }
  0xe3   :  { %v1865_v32 = vpop.f32.mrf.mxu3  ;;  %v4490_v24 = vld [vmem:[%s7140_s4 + $0x4cc] sm:$0xf] }
  0xe4   :  { %2142 = vmatpush.bf16.msra.mxu1 %v3280_v39  ;;  %2155 = vmatpush.bf16.msra.mxu2 %v3408_v19  ;;  %v3341_v39 = vld [vmem:[%s7140_s4 + $0x238] sm:$0xf0]  ;;  %v1864_v19 = vadd.f32 %v1863_v16, %v1851_v40  ;;  %v4522_v63 = vld [vmem:[%s7140_s4 + $0x5cc] sm:$0xf] }
  0xe5   :  { %2168 = vmatpush.bf16.msra.mxu3 %v3536_v20  ;;  %2130 = vmatpush.bf16.msra.mxu0 %v3136_v7  ;;  %v3088_v20 = vor.u32 %v4342_v8, %v3085_v11  ;;  %v3344_v37 = vor.u32 %v4406_v14, %v3341_v39  ;;  %v3325_v7 = vld [vmem:[%s7140_s4 + $0x218] sm:$0xf0]  ;;  %v4554_v40 = vld [vmem:[%s7140_s4 + $0x6cc] sm:$0xf]  ;;  %v3808_v43 = vor.u32 %v4522_v63, %v3805_v5 }
  0xe6   :  { %v3453_v16 = vld [vmem:[%s7140_s4 + $0x318] sm:$0xf0]  ;;  %v4586_v8 = vld [vmem:[%s7140_s4 + $0x7cc] sm:$0xf] }
  0xe7   :  { %v3456_v58 = vor.u32 %v4434_v15, %v3453_v16  ;;  %v4061_v11 = vld [vmem:[%s7140_s4 + $0x7d8] sm:$0xf0]  ;;  %v4518_v39 = vld [vmem:[%s7140_s4 + $0x5ac] sm:$0xf] }
  0xe8   :  { %2143 = vmatpush.bf16.msra.mxu1 %v3264_v38  ;;  %2156 = vmatpush.bf16.msra.mxu2 %v3392_v27  ;;  %v3693_v38 = vld [vmem:[%s7140_s4 + $0x4f8] sm:$0xf0]  ;;  %v1876_v42 = vpop.f32.mrf.mxu0  ;;  %v4526_v27 = vld [vmem:[%s7140_s4 + $0x5ec] sm:$0xf] }
  0xe9   :  { %2169 = vmatpush.bf16.msra.mxu3 %v3520_v44  ;;  %2131 = vmatpush.bf16.msra.mxu0 %v3120_v56  ;;  %v6344_v44 = vpop.eup %4664  ;;  %v1877_v46 = vadd.f32 %v1876_v42, %v1864_v19  ;;  %v3696_v53 = vor.u32 %v4494_v31, %v3693_v38  ;;  %v4077_v56 = vld [vmem:[%s7140_s4 + $0x7f8] sm:$0xf0]  ;;  %v3824_v61 = vor.u32 %v4526_v27, %v3821_v49  ;;  %v4582_v28 = vld [vmem:[%s7140_s4 + $0x7ac] sm:$0xf] }
  0xea   :  { %v4080_v4 = vor.u32 %v4590_v55, %v4077_v56  ;;  %v4064_v19 = vor.u32 %v4586_v8, %v4061_v11  ;;  %v4514_v31 = vld [vmem:[%s7140_s4 + $0x58c] sm:$0xf]  ;;  %v4048_v38 = vor.u32 %v4582_v28, %v4045_v29  ;;  %v3773_v42 = vld [vmem:[%s7140_s4 + $0x598] sm:$0xf0]  ;;  %vm2265_vm1 = vweird.f32 %v6344_v44 }
  0xeb   :  { %v4546_v15 = vld [vmem:[%s7140_s4 + $0x68c] sm:$0xf]  ;;  %v3901_v16 = vld [vmem:[%s7140_s4 + $0x698] sm:$0xf0]  ;;  %v3776_v56 = vor.u32 %v4514_v31, %v3773_v42 }
  0xec   :  { %2144 = vmatpush.bf16.msra.mxu1 %v3248_v57  ;;  %2157 = vmatpush.bf16.msra.mxu2 %v3376_v3  ;;  %v3328_v57 = vor.u32 %v4402_v34, %v3325_v7  ;;  %v1889_v3 = vpop.f32.mrf.mxu1  ;;  %v3920_v7 = vor.u32 %v4550_v21, %v3917_v22  ;;  %v4029_v49 = vld [vmem:[%s7140_s4 + $0x798] sm:$0xf0]  ;;  %v4478_v51 = vld [vmem:[%s7140_s4 + $0x46c] sm:$0xf]  ;;  %v524_v21 = vperm.slane %v6160_v52, 4 }
  0xed   :  { %2170 = vmatpush.bf16.msra.mxu3 %v3504_v60  ;;  %2132 = vmatpush.bf16.msra.mxu0 %v3104_v36  ;;  %v2261_v60 = vmul.f32 2.0, %v6344_v44  ;;  %v1890_v2 = vadd.f32 %v1889_v3, %v1877_v46  ;;  %v3933_v36 = vld [vmem:[%s7140_s4 + $0x6d8] sm:$0xf0]  ;;  %v1902_v6 = vpop.f32.mrf.mxu2  ;;  %v4506_v11 = vld [vmem:[%s7140_s4 + $0x54c] sm:$0xf] }
  0xee   :  { %v1915_v12 = vpop.f32.mrf.mxu3  ;;  %v3936_v14 = vor.u32 %v4554_v40, %v3933_v36  ;;  %v3757_v3 = vld [vmem:[%s7140_s4 + $0x578] sm:$0xf0]  ;;  %v4474_v40 = vld [vmem:[%s7140_s4 + $0x44c] sm:$0xf] }
  0xef   :  { %v1903_v32 = vadd.f32 %v1902_v6, %v1890_v2  ;;  %v2262_v33 = vsub.f32 1.0, %v2261_v60  ;;  %v4542_v60 = vld [vmem:[%s7140_s4 + $0x66c] sm:$0xf]  ;;  %v4013_v5 = vld [vmem:[%s7140_s4 + $0x778] sm:$0xf0] }
  0xf0   :  { %2145 = vmatpush.bf16.msra.mxu1 %v3232_v41  ;;  %2158 = vmatpush.bf16.msra.mxu2 %v3360_v30  ;;  %v3680_v41 = vor.u32 %v4490_v24, %v3677_v45  ;;  %v4486_v30 = vld [vmem:[%s7140_s4 + $0x4ac] sm:$0xf]  ;;  %v1878_v17 = vpop.f32.mrf.mxu0  ;;  %v3613_v36 = vld [vmem:[%s7140_s4 + $0x458] sm:$0xf0] }
  0xf1   :  { %2171 = vmatpush.bf16.msra.mxu3 %v3488_v35  ;;  %2133 = vmatpush.bf16.msra.mxu0 %v3088_v20  ;;  %v3661_v35 = vld [vmem:[%s7140_s4 + $0x4b8] sm:$0xf0]  ;;  %v6395_v18 = vadd.f32 %v1915_v12, %v1903_v32 }
  0xf2   :  { %v3789_v20 = vld [vmem:[%s7140_s4 + $0x5b8] sm:$0xf0] }
  0xf3   :  { %v2232_v34 = vsel %vm2231_vm0, %v6395_v18, 0.0  ;;  %v3997_v17 = vld [vmem:[%s7140_s4 + $0x758] sm:$0xf0] }
  0xf4   :  { %2146 = vmatpush.bf16.msra.mxu1 %v3216_v23  ;;  %2159 = vmatpush.bf16.msra.mxu2 %v3344_v37  ;;  %v3664_v23 = vor.u32 %v4486_v30, %v3661_v35  ;;  %v2233_v37 = vrot.slane %v2232_v34, 4  ;;  %v3741_v30 = vld [vmem:[%s7140_s4 + $0x558] sm:$0xf0]  ;;  %v4538_v35 = vld [vmem:[%s7140_s4 + $0x64c] sm:$0xf] }
  0xf5   :  { %2172 = vmatpush.bf16.msra.mxu3 %v3472_v59  ;;  %2134 = vmatpush.bf16.msra.mxu0 %v3072_v47  ;;  %v3792_v59 = vor.u32 %v4518_v39, %v3789_v20  ;;  %v4578_v47 = vld [vmem:[%s7140_s4 + $0x78c] sm:$0xf]  ;;  %v1904_v50 = vpop.f32.mrf.mxu2  ;;  %v3597_v20 = vld [vmem:[%s7140_s4 + $0x438] sm:$0xf0]  ;;  %v3744_v28 = vor.u32 %v4506_v11, %v3741_v30 }
  0xf6   :  { %v2234_v27 = vadd.f32 %v2233_v37, %v2232_v34  ;;  %v4032_v45 = vor.u32 %v4578_v47, %v4029_v49  ;;  %v4570_v39 = vld [vmem:[%s7140_s4 + $0x74c] sm:$0xf]  ;;  %v3725_v37 = vld [vmem:[%s7140_s4 + $0x538] sm:$0xf0]  ;;  %v4139_v50 = vld [vmem:[%s7146_s6 + $0x70] sm:$0xf] }
  0xf7   :  { %v4502_v34 = vld [vmem:[%s7140_s4 + $0x52c] sm:$0xf]  ;;  %v3981_v42 = vld [vmem:[%s7140_s4 + $0x738] sm:$0xf0] }
  0xf8   :  { %2147 = vmatpush.bf16.msra.mxu1 %v3200_v0  ;;  %2160 = vmatpush.bf16.msra.mxu2 %v3328_v57  ;;  %v3629_v0 = vld [vmem:[%s7140_s4 + $0x478] sm:$0xf0]  ;;  %v2235_v55 = vrot.slane %v2234_v27, 2  ;;  %v3904_v57 = vor.u32 %v4546_v15, %v3901_v16  ;;  %v532_v15 = vperm.slane %v524_v21, 0  ;;  %v4466_v16 = vld [vmem:[%s7140_s4 + $0x40c] sm:$0xf] }
  0xf9   :  { %2179 = vmatpush.bf16.msrb.mxu0 %v3696_v53  ;;  %2173 = vmatpush.bf16.msra.mxu3 %v3456_v58  ;;  %v1917_v53 = vpop.f32.mrf.mxu3  ;;  %v4510_v58 = vld [vmem:[%s7140_s4 + $0x56c] sm:$0xf]  ;;  %v3632_v2 = vor.u32 %v4478_v51, %v3629_v0  ;;  %v4608_v51 = vld [vmem:[%s7146_s6 + $0x74] sm:$0xf0] }
  0xfa   :  { %2135 = vmatmul.bf16.vlgmr.msra.gmra.mxu0 %v5336_v10  ;;  %v3645_v10 = vld [vmem:[%s7140_s4 + $0x498] sm:$0xf0]  ;;  %v2236_v63 = vadd.f32 %v2235_v55, %v2234_v27  ;;  %v4498_v49 = vld [vmem:[%s7140_s4 + $0x50c] sm:$0xf]  ;;  %v4600_v21 = vld [vmem:[%s7146_s6 + $0x34] sm:$0xf0] }
  0xfb   :  { %2161 = vmatmul.bf16.vlgmr.msra.gmra.mxu2 %v5334_v9  ;;  %2148 = vmatmul.bf16.vlgmr.msra.gmra.mxu1 %v5397_v26  ;;  %v4482_v9 = vld [vmem:[%s7140_s4 + $0x48c] sm:$0xf]  ;;  %v2263_v26 = vmul.f32 %v6344_v44, %v2262_v33  ;;  %v3869_v33 = vld [vmem:[%s7140_s4 + $0x658] sm:$0xf0] }
  0xfc   :  { %2192 = vmatpush.bf16.msrb.mxu1 %v3824_v61  ;;  %2205 = vmatpush.bf16.msrb.mxu2 %v3952_v62  ;;  %v3648_v46 = vor.u32 %v4482_v9, %v3645_v10  ;;  %v3885_v61 = vld [vmem:[%s7140_s4 + $0x678] sm:$0xf0]  ;;  %v6462_v62 = vpop.f32.mrf.mxu0  ;;  %v2237_v6 = vrot.slane %v2236_v63, 1  ;;  %v3872_v29 = vor.u32 %v4538_v35, %v3869_v33  ;;  %v4000_v10 = vor.u32 %v4570_v39, %v3997_v17  ;;  %v4530_v55 = vld [vmem:[%s7140_s4 + $0x60c] sm:$0xf] }
  0xfd   :  { %2218 = vmatpush.bf16.msrb.mxu3 %v4080_v4  ;;  %2180 = vmatpush.bf16.msrb.mxu0 %v3680_v41  ;;  %v2264_v24 = vadd.f32 %v6344_v44, %v2263_v26  ;;  %v4574_v4 = vld [vmem:[%s7140_s4 + $0x76c] sm:$0xf]  ;;  %v3760_v41 = vor.u32 %v4510_v58, %v3757_v3  ;;  %v3888_v8 = vor.u32 %v4542_v60, %v3885_v61  ;;  %v3709_v53 = vld [vmem:[%s7140_s4 + $0x518] sm:$0xf0]  ;;  %v4123_v35 = vld [vmem:[%s7146_s6 + $0x50] sm:$0xf] }
  0xfe   :  { %2174 = vmatmul.bf16.vlgmr.msra.gmra.mxu3 %v5359_v13  ;;  %v1891_v13 = vpop.f32.mrf.mxu1  ;;  %v4016_v12 = vor.u32 %v4574_v4, %v4013_v5  ;;  %v6507_v22 = vpop.f32.mrf.mxu2  ;;  %v3965_v3 = vld [vmem:[%s7140_s4 + $0x718] sm:$0xf0]  ;;  %v1929_v61 = vadd.f32 %v6462_v62, %v532_v15  ;;  %v3712_v4 = vor.u32 %v4498_v49, %v3709_v53  ;;  %v4604_v33 = vld [vmem:[%s7146_s6 + $0x54] sm:$0xf0]  ;;  %v4115_v39 = vld [vmem:[%s7146_s6 + $0x40] sm:$0xf] }
  0xff   :  { %v6481_v32 = vsel %vm2265_vm1, %v6344_v44, %v2264_v24  ;;  %v3616_v44 = vor.u32 %v4474_v40, %v3613_v36  ;;  %v4602_v17 = vld [vmem:[%s7146_s6 + $0x44] sm:$0xf0] }
 0x100   :  { %2193 = vmatpush.bf16.msrb.mxu1 %v3808_v43  ;;  %2206 = vmatpush.bf16.msrb.mxu2 %v3936_v14  ;;  %v2238_v14 = vadd.f32 %v2237_v6, %v2236_v63  ;;  %v4140_v63 = vor.u32 %v4608_v51, %v4139_v50  ;;  %v4083_v51 = vld [vmem:[%s7146_s6] sm:$0xf] }
 0x101   :  { %2219 = vmatpush.bf16.msrb.mxu3 %v4064_v19  ;;  %2181 = vmatpush.bf16.msrb.mxu0 %v3664_v23  ;;  %v4470_v19 = vld [vmem:[%s7140_s4 + $0x42c] sm:$0xf]  ;;  %v6513_v9 = vpop.f32.mrf.mxu3 }
 0x102   :  { %v2267_v23 = vmul.f32 %v6481_v32, %v2238_v14  ;;  %v3600_v26 = vor.u32 %v4470_v19, %v3597_v20 }
 0x104   :  { %2194 = vmatpush.bf16.msrb.mxu1 %v3792_v59  ;;  %2207 = vmatpush.bf16.msrb.mxu2 %v3920_v7  ;;  %v4534_v59 = vld [vmem:[%s7140_s4 + $0x62c] sm:$0xf]  ;;  %v3853_v7 = vld [vmem:[%s7140_s4 + $0x638] sm:$0xf0]  ;;  %v1930_v31 = vpop.f32.mrf.mxu0  ;;  %v6525_v13 = vsub.f32 %v6395_v18, %v2267_v23 }
 0x105   :  { %2220 = vmatpush.bf16.msrb.mxu3 %v4048_v38  ;;  %2182 = vmatpush.bf16.msrb.mxu0 %v3648_v46  ;;  %v4566_v38 = vld [vmem:[%s7140_s4 + $0x72c] sm:$0xf]  ;;  %v3581_v18 = vld [vmem:[%s7140_s4 + $0x418] sm:$0xf0]  ;;  %v3728_v46 = vor.u32 %v4502_v34, %v3725_v37  ;;  %v3856_v47 = vor.u32 %v4534_v59, %v3853_v7  ;;  %v4598_v34 = vld [vmem:[%s7146_s6 + $0x24] sm:$0xf0] }
 0x106   :  { %v6492_v43 = vpop.f32.mrf.mxu1  ;;  %v2275_v27 = vmul.f32 %v6525_v13, %v6525_v13  ;;  %v3984_v0 = vor.u32 %v4566_v38, %v3981_v42  ;;  %v3584_v24 = vor.u32 %v4466_v16, %v3581_v18  ;;  %v4091_v38 = vld [vmem:[%s7146_s6 + $0x10] sm:$0xf]  ;;  %v4596_v42 = vld [vmem:[%s7146_s6 + $0x14] sm:$0xf0] }
 0x107   :  { %v1942_v11 = vadd.f32 %v6492_v43, %v1929_v61  ;;  %v4124_v43 = vor.u32 %v4604_v33, %v4123_v35  ;;  %v4203_v18 = vld [vmem:[%s7146_s6 + $0xf0] sm:$0xf]  ;;  %v4092_v50 = vor.u32 %v4596_v42, %v4091_v38  ;;  %v4109_v42 = vld [vmem:[%s7146_s6 + $0x38] sm:$0xf0] }
 0x108   :  { %2195 = vmatpush.bf16.msrb.mxu1 %v3776_v56  ;;  %2208 = vmatpush.bf16.msrb.mxu2 %v3904_v57  ;;  %v3837_v56 = vld [vmem:[%s7140_s4 + $0x618] sm:$0xf0]  ;;  %v2279_v58 = vsel %vm2231_vm0, %v2275_v27, 0.0  ;;  %v4624_v27 = vld [vmem:[%s7146_s6 + $0xf4] sm:$0xf0] }
 0x109   :  { %2221 = vmatpush.bf16.msrb.mxu3 %v4032_v45  ;;  %2183 = vmatpush.bf16.msrb.mxu0 %v3632_v2  ;;  %v4562_v45 = vld [vmem:[%s7140_s4 + $0x70c] sm:$0xf]  ;;  %v2280_v60 = vrot.slane %v2279_v58, 4  ;;  %v1956_v2 = vpop.f32.mrf.mxu2  ;;  %v3840_v5 = vor.u32 %v4530_v55, %v3837_v56  ;;  %v1969_v40 = vpop.f32.mrf.mxu3  ;;  %v4607_v55 = vld [vmem:[%s7146_s6 + $0x74] sm:$0xf] }
 0x10a   :  { %v3968_v6 = vor.u32 %v4562_v45, %v3965_v3  ;;  %v4141_v56 = vld [vmem:[%s7146_s6 + $0x78] sm:$0xf0]  ;;  %v4195_v45 = vld [vmem:[%s7146_s6 + $0xe0] sm:$0xf]  ;;  %v4622_v3 = vld [vmem:[%s7146_s6 + $0xe4] sm:$0xf0] }
 0x10b   :  { %v2281_v36 = vadd.f32 %v2280_v60, %v2279_v58  ;;  %v2359_v60 = vperm.slane %v6160_v52, 1  ;;  %v4196_v61 = vor.u32 %v4622_v3, %v4195_v45  ;;  %v4144_v40 = vor.u32 %v4607_v55, %v4141_v56  ;;  %v4612_v55 = vld [vmem:[%s7146_s6 + $0x94] sm:$0xf0]  ;;  %v4093_v45 = vld [vmem:[%s7146_s6 + $0x18] sm:$0xf0] }
 0x10c   :  { %2196 = vmatpush.bf16.msrb.mxu1 %v3760_v41  ;;  %2209 = vmatpush.bf16.msrb.mxu2 %v3888_v8  ;;  %v4131_v41 = vld [vmem:[%s7146_s6 + $0x60] sm:$0xf]  ;;  %v4606_v8 = vld [vmem:[%s7146_s6 + $0x64] sm:$0xf0] }
 0x10d   :  { %2222 = vmatpush.bf16.msrb.mxu3 %v4016_v12  ;;  %2184 = vmatpush.bf16.msrb.mxu0 %v3616_v44  ;;  %v2282_v62 = vrot.slane %v2281_v36, 2  ;;  %v4132_v12 = vor.u32 %v4606_v8, %v4131_v41  ;;  %v1955_v44 = vadd.f32 %v6507_v22, %v1942_v11  ;;  %v4133_v41 = vld [vmem:[%s7146_s6 + $0x68] sm:$0xf0] }
 0x10e   :  { %v1943_v57 = vpop.f32.mrf.mxu1 }
 0x10f   :  { %v2283_v30 = vadd.f32 %v2282_v62, %v2281_v36  ;;  %v1968_v20 = vadd.f32 %v6513_v9, %v1955_v44  ;;  %v2375_v36 = vperm.slane %v6160_v52, 2  ;;  %v4620_v52 = vld [vmem:[%s7146_s6 + $0xd4] sm:$0xf0] }
 0x110   :  { %2197 = vmatpush.bf16.msrb.mxu1 %v3744_v28  ;;  %2210 = vmatpush.bf16.msrb.mxu2 %v3872_v29  ;;  %v4099_v29 = vld [vmem:[%s7146_s6 + $0x20] sm:$0xf] }
 0x111   :  { %2223 = vmatpush.bf16.msrb.mxu3 %v4000_v10  ;;  %2185 = vmatpush.bf16.msrb.mxu0 %v3600_v26  ;;  %v2284_v14 = vrot.slane %v2283_v30, 1  ;;  %v4100_v59 = vor.u32 %v4598_v34, %v4099_v29  ;;  %v4117_v29 = vld [vmem:[%s7146_s6 + $0x48] sm:$0xf0]  ;;  %v4171_v34 = vld [vmem:[%s7146_s6 + $0xb0] sm:$0xf] }
 0x114   :  { %2198 = vmatpush.bf16.msrb.mxu1 %v3728_v46  ;;  %2211 = vmatpush.bf16.msrb.mxu2 %v3856_v47  ;;  %v4204_v47 = vor.u32 %v4624_v27, %v4203_v18 }
 0x115   :  { %2224 = vmatpush.bf16.msrb.mxu3 %v3984_v0  ;;  %2186 = vmatpush.bf16.msrb.mxu0 %v3584_v24  ;;  %v4594_v0 = vld [vmem:[%s7146_s6 + $0x4] sm:$0xf0] }
 0x117   :  { %v1980_v22 = vpop.f32.mrf.mxu0 }
 0x118   :  { %2199 = vmatpush.bf16.msrb.mxu1 %v3712_v4  ;;  %2212 = vmatpush.bf16.msrb.mxu2 %v3840_v5  ;;  %v1981_v23 = vadd.f32 %v1980_v22, %v1968_v20  ;;  %v1993_v9 = vpop.f32.mrf.mxu1  ;;  %v4084_v4 = vor.u32 %v4594_v0, %v4083_v51  ;;  %v4179_v20 = vld [vmem:[%s7146_s6 + $0xc0] sm:$0xf]  ;;  %v4101_v0 = vld [vmem:[%s7146_s6 + $0x28] sm:$0xf0] }
 0x119   :  { %2791 = vmatpush.bf16.msra.mxu0 %v4140_v63  ;;  %2225 = vmatpush.bf16.msrb.mxu3 %v3968_v6  ;;  %v4605_v6 = vld [vmem:[%s7146_s6 + $0x64] sm:$0xf] }
 0x11a   :  { %2187 = vmatmul.bf16.vlgmr.msrb.gmra.mxu0 %v5469_v48  ;;  %v2285_v48 = vadd.f32 %v2284_v14, %v2283_v30  ;;  %v1994_v10 = vadd.f32 %v1993_v9, %v1981_v23  ;;  %v2367_v30 = vperm.slane %v2359_v60, 1  ;;  %v4601_v23 = vld [vmem:[%s7146_s6 + $0x44] sm:$0xf]  ;;  %v4616_v9 = vld [vmem:[%s7146_s6 + $0xb4] sm:$0xf0] }
 0x11b   :  { %2200 = vmatmul.bf16.vlgmr.msrb.gmra.mxu1 %v5500_v1  ;;  %2213 = vmatmul.bf16.vlgmr.msrb.gmra.mxu2 %v5467_v54  ;;  %v4116_v1 = vor.u32 %v4602_v17, %v4115_v39  ;;  %v4603_v39 = vld [vmem:[%s7146_s6 + $0x54] sm:$0xf]  ;;  %v4125_v17 = vld [vmem:[%s7146_s6 + $0x58] sm:$0xf0] }
 0x11c   :  { %2226 = vmatmul.bf16.vlgmr.msrb.gmra.mxu3 %v5480_v25  ;;  %v2307_v19 = vmul.f32 %v2285_v48, %v6481_v32  ;;  %v4107_v25 = vld [vmem:[%s7146_s6 + $0x30] sm:$0xf]  ;;  %2804 = vmatpush.bf16.msra.mxu1 %v4204_v47  ;;  %v4136_v48 = vor.u32 %v4605_v6, %v4133_v41  ;;  %v4128_v22 = vor.u32 %v4603_v39, %v4125_v17 }
 0x11d   :  { %2792 = vmatpush.bf16.msra.mxu0 %v4132_v12  ;;  %v4108_v28 = vor.u32 %v4600_v21, %v4107_v25  ;;  %v4187_v12 = vld [vmem:[%s7146_s6 + $0xd0] sm:$0xf] }
 0x11e   :  { %v2311_v54 = vadd.f32 1e-05, %v2307_v19  ;;  %v2006_v37 = vpop.f32.mrf.mxu2  ;;  %v4188_v35 = vor.u32 %v4620_v52, %v4187_v12  ;;  %v4197_v12 = vld [vmem:[%s7146_s6 + $0xe8] sm:$0xf0] }
 0x11f   :  { %v2007_v31 = vadd.f32 %v2006_v37, %v1994_v10  ;;  %v1982_v16 = vpop.f32.mrf.mxu0  ;;  %v4172_v37 = vor.u32 %v4616_v9, %v4171_v34 }
 0x120   :  { %4666 = vrsqrt.f32 %v2311_v54  ;;  %v1995_v24 = vpop.f32.mrf.mxu1  ;;  %2805 = vmatpush.bf16.msra.mxu1 %v4196_v61  ;;  %vm2321_vm3 = vweird.f32 %v2311_v54  ;;  %v4614_v16 = vld [vmem:[%s7146_s6 + $0xa4] sm:$0xf0]  ;;  %v4147_v61 = vld [vmem:[%s7146_s6 + $0x80] sm:$0xf] }
 0x121   :  { %2793 = vmatpush.bf16.msra.mxu0 %v4124_v43  ;;  %v2019_v26 = vpop.f32.mrf.mxu3  ;;  %v2383_v43 = vperm.slane %v2375_v36, 2  ;;  %v4595_v24 = vld [vmem:[%s7146_s6 + $0x14] sm:$0xf]  ;;  %v4205_v36 = vld [vmem:[%s7146_s6 + $0xf8] sm:$0xf0] }
 0x122   :  { %v6617_v46 = vadd.f32 %v2019_v26, %v2007_v31  ;;  %v4120_v31 = vor.u32 %v4601_v23, %v4117_v29  ;;  %v4599_v26 = vld [vmem:[%s7146_s6 + $0x34] sm:$0xf]  ;;  %v4617_v23 = vld [vmem:[%s7146_s6 + $0xc4] sm:$0xf] }
 0x124   :  { %v2239_v53 = vsel %vm2231_vm0, %v6617_v46, 0.0  ;;  %2806 = vmatpush.bf16.msra.mxu1 %v4188_v35 }
 0x125   :  { %2794 = vmatpush.bf16.msra.mxu0 %v4116_v1  ;;  %v2240_v58 = vrot.slane %v2239_v53, 4 }
 0x126   :  { %v4667_v7 = vpop.eup %4666  ;;  %v2008_v5 = vpop.f32.mrf.mxu2 }
 0x127   :  { %v2316_v15 = vmul.f32 %v4667_v7, %v2311_v54  ;;  %vm2322_vm2 = vweird.f32 %v4667_v7  ;;  %v2241_v2 = vadd.f32 %v2240_v58, %v2239_v53  ;;  %v4155_v53 = vld [vmem:[%s7146_s6 + $0x90] sm:$0xf] }
 0x128   :  { %vm2323_vm4 = vmor %vm2321_vm3, %vm2322_vm2  ;;  %v4156_v58 = vor.u32 %v4612_v55, %v4155_v53  ;;  %v4157_v53 = vld [vmem:[%s7146_s6 + $0x98] sm:$0xf0] }
 0x129   :  { %2795 = vmatpush.bf16.msra.mxu0 %v4108_v28  ;;  %v2317_v49 = vmul.f32 %v4667_v7, %v2316_v15  ;;  %v2021_v8 = vpop.f32.mrf.mxu3  ;;  %v2242_v11 = vrot.slane %v2241_v2, 2  ;;  %v4163_v15 = vld [vmem:[%s7146_s6 + $0xa0] sm:$0xf] }
 0x12a   :  { %v4164_v27 = vor.u32 %v4614_v16, %v4163_v15  ;;  %v4165_v15 = vld [vmem:[%s7146_s6 + $0xa8] sm:$0xf0] }
 0x12b   :  { %v2318_v57 = vmul.f32 0.5, %v2317_v49  ;;  %v2243_v14 = vadd.f32 %v2242_v11, %v2241_v2  ;;  %v4112_v49 = vor.u32 %v4599_v26, %v4109_v42  ;;  %v4621_v11 = vld [vmem:[%s7146_s6 + $0xe4] sm:$0xf] }
 0x12d   :  { %2796 = vmatpush.bf16.msra.mxu0 %v4100_v59  ;;  %v2319_v63 = vsub.f32 1.5, %v2318_v57  ;;  %v2244_v19 = vrot.slane %v2243_v14, 1  ;;  %v6716_v57 = vld [vmem:[%s7145_s5 + $0x8] sm:$0x77] }
 0x12e   :  { %v525_v2 = vperm.slane %v6716_v57, 0 }
 0x12f   :  { %v2320_v62 = vmul.f32 %v4667_v7, %v2319_v63  ;;  %v2245_v25 = vadd.f32 %v2244_v19, %v2243_v14  ;;  %v4610_v63 = vld [vmem:[%s7146_s6 + $0x84] sm:$0xf0]  ;;  %v4593_v14 = vld [vmem:[%s7146_s6 + $0x4] sm:$0xf] }
 0x130   :  { %v4148_v5 = vor.u32 %v4610_v63, %v4147_v61 }
 0x131   :  { %2797 = vmatpush.bf16.msra.mxu0 %v4092_v50  ;;  %v2324_v33 = vsel %vm2323_vm4, %v4667_v7, %v2320_v62  ;;  %v2268_v28 = vmul.f32 %v6481_v32, %v2245_v25  ;;  %v4597_v50 = vld [vmem:[%s7146_s6 + $0x24] sm:$0xf]  ;;  %v4189_v25 = vld [vmem:[%s7146_s6 + $0xd8] sm:$0xf0]  ;;  %vm3049_vm4 = vcmask 66560  }
 0x132   :  { %v2355_v44 = vmul.f32 %v2324_v33, %v6525_v13  ;;  %v4618_v13 = vld [vmem:[%s7146_s6 + $0xc4] sm:$0xf0]  ;;  %v4104_v60 = vor.u32 %v4597_v50, %v4101_v0  ;;  %v533_v33 = vperm.slane %v525_v2, 0  ;;  %v4611_v0 = vld [vmem:[%s7146_s6 + $0x94] sm:$0xf] }
 0x133   :  { %v4180_v54 = vor.u32 %v4618_v13, %v4179_v20  ;;  %v6681_v59 = vsub.f32 %v6617_v46, %v2268_v28  ;;  %v4181_v28 = vld [vmem:[%s7146_s6 + $0xc8] sm:$0xf0]  ;;  %v4609_v2 = vld [vmem:[%s7146_s6 + $0x84] sm:$0xf] }
 0x134   :  { %v2371_v1 = vmul.f32 %v2367_v30, %v2355_v44  ;;  %v4096_v30 = vor.u32 %v4595_v24, %v4093_v45  ;;  %v4085_v44 = vld [vmem:[%s7146_s6 + $0x8] sm:$0xf0]  ;;  %v4184_v29 = vor.u32 %v4617_v23, %v4181_v28 }
 0x135   :  { %2798 = vmatpush.bf16.msra.mxu0 %v4084_v4  ;;  %2807 = vmatpush.bf16.msra.mxu1 %v4180_v54  ;;  %v2276_v38 = vmul.f32 %v6681_v59, %v6681_v59  ;;  %v4088_v17 = vor.u32 %v4593_v14, %v4085_v44  ;;  %v4619_v54 = vld [vmem:[%s7146_s6 + $0xd4] sm:$0xf] }
 0x136   :  { %v2387_v21 = vadd.f32 %v2383_v43, %v2371_v1  ;;  %v4200_v43 = vor.u32 %v4621_v11, %v4197_v12 }
 0x137   :  { %v2032_v18 = vpop.f32.mrf.mxu0  ;;  %v2286_v46 = vsel %vm2231_vm0, %v2276_v38, 0.0 }
 0x138   :  { %v2391_v10 = vmax.f32 %v2387_v21, 0.0  ;;  %v2287_v47 = vrot.slane %v2286_v46, 4  ;;  %v2045_v51 = vpop.f32.mrf.mxu1  ;;  %v2033_v19 = vadd.f32 %v2032_v18, %v533_v33  ;;  %v4192_v21 = vor.u32 %v4619_v54, %v4189_v25 }
 0x139   :  { %2843 = vmatpush.bf16.msrb.mxu0 %v4144_v40  ;;  %2808 = vmatpush.bf16.msra.mxu1 %v4172_v37  ;;  %v4623_v40 = vld [vmem:[%s7146_s6 + $0xf4] sm:$0xf]  ;;  %v4173_v37 = vld [vmem:[%s7146_s6 + $0xb8] sm:$0xf0] }
 0x13a   :  { %v6683_v7 = vpack.c.bf16 %v2391_v10, %v2391_v10  ;;  %v2288_v56 = vadd.f32 %v2287_v47, %v2286_v46  ;;  %v4208_v62 = vor.u32 %v4623_v40, %v4205_v36  ;;  %v4615_v10 = vld [vmem:[%s7146_s6 + $0xb4] sm:$0xf] }
 0x13b   :  { %v4176_v26 = vor.u32 %v4615_v10, %v4173_v37 }
 0x13c   :  { %2799 = vmatmul.bf16.vlgmr.msra.gmra.mxu0 %v6683_v7  ;;  %v2289_v3 = vrot.slane %v2288_v56, 2 }
 0x13d   :  { %2844 = vmatpush.bf16.msrb.mxu0 %v4136_v48  ;;  %2809 = vmatpush.bf16.msra.mxu1 %v4164_v27  ;;  %v4678_v27 = vld [vmem:[%s7145_s5] sm:$0x77] }
 0x13e   :  { %v2058_v4 = vpop.f32.mrf.mxu2  ;;  %v2290_v6 = vadd.f32 %v2289_v3, %v2288_v56  ;;  %v2360_v46 = vperm.slane %v4678_v27, 5  ;;  %v4160_v56 = vor.u32 %v4611_v0, %v4157_v53  ;;  %v4211_v0 = vld [vmem:[%s7146_s6 + $0x100] sm:$0xf]  ;;  %v4626_v53 = vld [vmem:[%s7146_s6 + $0x104] sm:$0xf0] }
 0x13f   :  { %v2034_v8 = vpop.f32.mrf.mxu0 }
 0x140   :  { %v2291_v52 = vrot.slane %v2290_v6, 1  ;;  %v2047_v35 = vpop.f32.mrf.mxu1 }
 0x141   :  { %2845 = vmatpush.bf16.msrb.mxu0 %v4128_v22  ;;  %2810 = vmatpush.bf16.msra.mxu1 %v4156_v58  ;;  %v2071_v41 = vpop.f32.mrf.mxu3  ;;  %v2046_v22 = vadd.f32 %v2045_v51, %v2033_v19  ;;  %v2376_v51 = vperm.slane %v4678_v27, 6  ;;  %v2368_v58 = vperm.slane %v2360_v46, 1  ;;  %v4638_v35 = vld [vmem:[%s7146_s6 + $0x164] sm:$0xf0]  ;;  %v4219_v46 = vld [vmem:[%s7146_s6 + $0x110] sm:$0xf] }
 0x142   :  { %v2292_v48 = vadd.f32 %v2291_v52, %v2290_v6  ;;  %v4267_v6 = vld [vmem:[%s7146_s6 + $0x170] sm:$0xf] }
 0x143   :  { %v2059_v34 = vadd.f32 %v2058_v4, %v2046_v22  ;;  %v2384_v63 = vperm.slane %v2376_v51, 2  ;;  %v4149_v4 = vld [vmem:[%s7146_s6 + $0x88] sm:$0xf0]  ;;  %v4634_v22 = vld [vmem:[%s7146_s6 + $0x144] sm:$0xf0] }
 0x144   :  { %v2308_v39 = vmul.f32 %v2292_v48, %v6481_v32  ;;  %v4152_v36 = vor.u32 %v4609_v2, %v4149_v4 }
 0x145   :  { %2846 = vmatpush.bf16.msrb.mxu0 %v4120_v31  ;;  %2811 = vmatpush.bf16.msra.mxu1 %v4148_v5  ;;  %v2072_v42 = vadd.f32 %v2071_v41, %v2059_v34  ;;  %v4235_v34 = vld [vmem:[%s7146_s6 + $0x130] sm:$0xf] }
 0x146   :  { %v2060_v20 = vpop.f32.mrf.mxu2  ;;  %v2312_v13 = vadd.f32 1e-05, %v2308_v39 }
 0x147   :  { %v4251_v20 = vld [vmem:[%s7146_s6 + $0x150] sm:$0xf] }
 0x148   :  { %4668 = vrsqrt.f32 %v2312_v13  ;;  %vm2331_vm6 = vweird.f32 %v2312_v13 }
 0x149   :  { %2847 = vmatpush.bf16.msrb.mxu0 %v4112_v49  ;;  %2856 = vmatpush.bf16.msrb.mxu1 %v4208_v62  ;;  %v2073_v1 = vpop.f32.mrf.mxu3 }
 0x14d   :  { %2848 = vmatpush.bf16.msrb.mxu0 %v4104_v60  ;;  %2857 = vmatpush.bf16.msrb.mxu1 %v4200_v43 }
 0x14e   :  { %v4669_v9 = vpop.eup %4668 }
 0x14f   :  { %v2326_v31 = vmul.f32 %v4669_v9, %v2312_v13  ;;  %vm2332_vm5 = vweird.f32 %v4669_v9  ;;  %v4636_v13 = vld [vmem:[%s7146_s6 + $0x154] sm:$0xf0] }
 0x150   :  { %vm2333_vm7 = vmor %vm2331_vm6, %vm2332_vm5  ;;  %v4252_v54 = vor.u32 %v4636_v13, %v4251_v20 }
 0x151   :  { %2849 = vmatpush.bf16.msrb.mxu0 %v4096_v30  ;;  %2858 = vmatpush.bf16.msrb.mxu1 %v4192_v21  ;;  %v2327_v38 = vmul.f32 %v4669_v9, %v2326_v31  ;;  %v4259_v30 = vld [vmem:[%s7146_s6 + $0x160] sm:$0xf] }
 0x152   :  { %v4260_v43 = vor.u32 %v4638_v35, %v4259_v30  ;;  %v4243_v21 = vld [vmem:[%s7146_s6 + $0x140] sm:$0xf] }
 0x153   :  { %v2328_v16 = vmul.f32 0.5, %v2327_v38  ;;  %v4244_v28 = vor.u32 %v4634_v22, %v4243_v21  ;;  %v4630_v38 = vld [vmem:[%s7146_s6 + $0x124] sm:$0xf0] }
 0x155   :  { %2850 = vmatpush.bf16.msrb.mxu0 %v4088_v17  ;;  %2859 = vmatpush.bf16.msrb.mxu1 %v4184_v29  ;;  %v2329_v49 = vsub.f32 1.5, %v2328_v16 }
 0x157   :  { %v2084_v47 = vpop.f32.mrf.mxu0  ;;  %v2330_v55 = vmul.f32 %v4669_v9, %v2329_v49 }
 0x158   :  { %2851 = vmatmul.bf16.vlgmr.msrb.gmra.mxu0 %v6683_v7  ;;  %v4613_v7 = vld [vmem:[%s7146_s6 + $0xa4] sm:$0xf]  ;;  %v2085_v50 = vadd.f32 %v2084_v47, %v2072_v42  ;;  %v2097_v24 = vpop.f32.mrf.mxu1  ;;  %v4628_v47 = vld [vmem:[%s7146_s6 + $0x114] sm:$0xf0] }
 0x159   :  { %2860 = vmatpush.bf16.msrb.mxu1 %v4176_v26  ;;  %v4168_v18 = vor.u32 %v4613_v7, %v4165_v15  ;;  %v2334_v45 = vsel %vm2333_vm7, %v4669_v9, %v2330_v55  ;;  %v4632_v9 = vld [vmem:[%s7146_s6 + $0x134] sm:$0xf0]  ;;  %v4227_v26 = vld [vmem:[%s7146_s6 + $0x120] sm:$0xf]  ;;  %v4220_v49 = vor.u32 %v4628_v47, %v4219_v46  ;;  %v4213_v46 = vld [vmem:[%s7146_s6 + $0x108] sm:$0xf0] }
 0x15a   :  { %v2098_v3 = vadd.f32 %v2097_v24, %v2085_v50  ;;  %v2356_v60 = vmul.f32 %v2334_v45, %v6681_v59  ;;  %v4640_v59 = vld [vmem:[%s7146_s6 + $0x174] sm:$0xf0]  ;;  %v4236_v37 = vor.u32 %v4632_v9, %v4235_v34  ;;  %v4228_v7 = vor.u32 %v4630_v38, %v4227_v26  ;;  %v4269_v24 = vld [vmem:[%s7146_s6 + $0x178] sm:$0xf0] }
 0x15b   :  { %v4268_v62 = vor.u32 %v4640_v59, %v4267_v6  ;;  %v4221_v26 = vld [vmem:[%s7146_s6 + $0x118] sm:$0xf0]  ;;  %v2377_v38 = vperm.slane %v6716_v57, 2 }
 0x15c   :  { %v2372_v41 = vmul.f32 %v2368_v58, %v2356_v60  ;;  %v4639_v58 = vld [vmem:[%s7146_s6 + $0x174] sm:$0xf] }
 0x15d   :  { %2861 = vmatpush.bf16.msrb.mxu1 %v4168_v18  ;;  %2817 = vmatpush.bf16.msra.mxu2 %v4268_v62  ;;  %v4635_v62 = vld [vmem:[%s7146_s6 + $0x154] sm:$0xf] }
 0x15e   :  { %v2110_v61 = vpop.f32.mrf.mxu2  ;;  %v2388_v12 = vadd.f32 %v2384_v63, %v2372_v41  ;;  %v526_v63 = vperm.slane %v6716_v57, 4 }
 0x15f   :  { %v2111_v5 = vadd.f32 %v2110_v61, %v2098_v3  ;;  %v2086_v8 = vpop.f32.mrf.mxu0  ;;  %v4272_v61 = vor.u32 %v4639_v58, %v4269_v24 }
 0x160   :  { %v2392_v14 = vmax.f32 %v2388_v12, 0.0  ;;  %v2099_v44 = vpop.f32.mrf.mxu1  ;;  %v534_v59 = vperm.slane %v526_v63, 0  ;;  %v4654_v63 = vld [vmem:[%s7146_s6 + $0x1e4] sm:$0xf0] }
 0x161   :  { %2862 = vmatpush.bf16.msrb.mxu1 %v4160_v56  ;;  %v2123_v40 = vpop.f32.mrf.mxu3  ;;  %2818 = vmatpush.bf16.msra.mxu2 %v4260_v43  ;;  %v4212_v56 = vor.u32 %v4626_v53, %v4211_v0  ;;  %v4331_v53 = vld [vmem:[%s7146_s6 + $0x1f0] sm:$0xf] }
 0x162   :  { %v2124_v11 = vadd.f32 %v2123_v40, %v2111_v5  ;;  %v2397_v39 = vpack.c.bf16 %v2392_v14, %v2392_v14  ;;  %v4637_v5 = vld [vmem:[%s7146_s6 + $0x164] sm:$0xf]  ;;  %v4261_v40 = vld [vmem:[%s7146_s6 + $0x168] sm:$0xf0] }
 0x163   :  { %v4264_v6 = vor.u32 %v4637_v5, %v4261_v40  ;;  %v4245_v14 = vld [vmem:[%s7146_s6 + $0x148] sm:$0xf0] }
 0x164   :  { %v2246_v52 = vsel %vm2231_vm0, %v2124_v11, 0.0  ;;  %2812 = vmatmul.bf16.vlgmr.msra.gmra.mxu1 %v2397_v39 }
 0x165   :  { %2863 = vmatpush.bf16.msrb.mxu1 %v4152_v36  ;;  %v2247_v33 = vrot.slane %v2246_v52, 4  ;;  %2819 = vmatpush.bf16.msra.mxu2 %v4252_v54  ;;  %v4629_v54 = vld [vmem:[%s7146_s6 + $0x124] sm:$0xf] }
 0x166   :  { %v2112_v17 = vpop.f32.mrf.mxu2 }
 0x167   :  { %v2248_v48 = vadd.f32 %v2247_v33, %v2246_v52  ;;  %v4633_v33 = vld [vmem:[%s7146_s6 + $0x144] sm:$0xf] }
 0x168   :  { %v4248_v44 = vor.u32 %v4633_v33, %v4245_v14 }
 0x169   :  { %v2125_v19 = vpop.f32.mrf.mxu3  ;;  %v2249_v1 = vrot.slane %v2248_v48, 2  ;;  %2820 = vmatpush.bf16.msra.mxu2 %v4244_v28 }
 0x16b   :  { %v2250_v25 = vadd.f32 %v2249_v1, %v2248_v48  ;;  %v4631_v48 = vld [vmem:[%s7146_s6 + $0x134] sm:$0xf] }
 0x16d   :  { %v2251_v23 = vrot.slane %v2250_v25, 1  ;;  %2821 = vmatpush.bf16.msra.mxu2 %v4236_v37  ;;  %v4627_v37 = vld [vmem:[%s7146_s6 + $0x114] sm:$0xf] }
 0x16f   :  { %v2252_v29 = vadd.f32 %v2251_v23, %v2250_v25  ;;  %v4229_v25 = vld [vmem:[%s7146_s6 + $0x128] sm:$0xf0] }
 0x170   :  { %v4232_v22 = vor.u32 %v4629_v54, %v4229_v25 }
 0x171   :  { %v2269_v10 = vmul.f32 %v6481_v32, %v2252_v29  ;;  %2822 = vmatpush.bf16.msra.mxu2 %v4228_v7  ;;  %v2361_v29 = vperm.slane %v6716_v57, 1 }
 0x173   :  { %v6823_v31 = vsub.f32 %v2124_v11, %v2269_v10  ;;  %v4253_v11 = vld [vmem:[%s7146_s6 + $0x158] sm:$0xf0] }
 0x174   :  { %2864 = vmatmul.bf16.vlgmr.msrb.gmra.mxu1 %v2397_v39  ;;  %v4256_v30 = vor.u32 %v4635_v62, %v4253_v11  ;;  %v4237_v39 = vld [vmem:[%s7146_s6 + $0x138] sm:$0xf0] }
 0x175   :  { %v2277_v42 = vmul.f32 %v6823_v31, %v6823_v31  ;;  %2823 = vmatpush.bf16.msra.mxu2 %v4220_v49  ;;  %v4240_v19 = vor.u32 %v4631_v48, %v4237_v39  ;;  %v4648_v48 = vld [vmem:[%s7146_s6 + $0x1b4] sm:$0xf0] }
 0x177   :  { %v2136_v15 = vpop.f32.mrf.mxu0  ;;  %v2293_v16 = vsel %vm2231_vm0, %v2277_v42, 0.0  ;;  %v4224_v42 = vor.u32 %v4627_v37, %v4221_v26  ;;  %v4655_v26 = vld [vmem:[%s7146_s6 + $0x1f4] sm:$0xf] }
 0x178   :  { %v2294_v18 = vrot.slane %v2293_v16, 4  ;;  %v2149_v27 = vpop.f32.mrf.mxu1  ;;  %v2137_v35 = vadd.f32 %v2136_v15, %v534_v59  ;;  %v2369_v15 = vperm.slane %v2361_v29, 1 }
 0x179   :  { %2824 = vmatpush.bf16.msra.mxu2 %v4212_v56 }
 0x17a   :  { %v2295_v50 = vadd.f32 %v2294_v18, %v2293_v16  ;;  %v2150_v43 = vadd.f32 %v2149_v27, %v2137_v35  ;;  %v4625_v27 = vld [vmem:[%s7146_s6 + $0x104] sm:$0xf]  ;;  %v4650_v35 = vld [vmem:[%s7146_s6 + $0x1c4] sm:$0xf0] }
 0x17b   :  { %v4216_v0 = vor.u32 %v4625_v27, %v4213_v46 }
 0x17c   :  { %v2296_v51 = vrot.slane %v2295_v50, 2 }
 0x17d   :  { %2869 = vmatpush.bf16.msrb.mxu2 %v4272_v61  ;;  %v4323_v61 = vld [vmem:[%s7146_s6 + $0x1e0] sm:$0xf] }
 0x17e   :  { %v2162_v55 = vpop.f32.mrf.mxu2  ;;  %v2297_v45 = vadd.f32 %v2296_v51, %v2295_v50  ;;  %v2385_v51 = vperm.slane %v2377_v38, 2 }
 0x17f   :  { %v2138_v60 = vpop.f32.mrf.mxu0  ;;  %v2163_v13 = vadd.f32 %v2162_v55, %v2150_v43  ;;  %v4656_v55 = vld [vmem:[%s7146_s6 + $0x1f4] sm:$0xf0]  ;;  %v4299_v43 = vld [vmem:[%s7146_s6 + $0x1b0] sm:$0xf] }
 0x180   :  { %v2298_v2 = vrot.slane %v2297_v45, 1  ;;  %v2151_v4 = vpop.f32.mrf.mxu1  ;;  %v4332_v24 = vor.u32 %v4656_v55, %v4331_v53  ;;  %v4300_v39 = vor.u32 %v4648_v48, %v4299_v43  ;;  %v4649_v55 = vld [vmem:[%s7146_s6 + $0x1c4] sm:$0xf] }
 0x181   :  { %v2175_v3 = vpop.f32.mrf.mxu3  ;;  %2870 = vmatpush.bf16.msrb.mxu2 %v4264_v6  ;;  %v4324_v4 = vor.u32 %v4654_v63, %v4323_v61  ;;  %v4293_v61 = vld [vmem:[%s7146_s6 + $0x1a8] sm:$0xf0] }
 0x182   :  { %v2299_v36 = vadd.f32 %v2298_v2, %v2297_v45  ;;  %v2176_v28 = vadd.f32 %v2175_v3, %v2163_v13  ;;  %2830 = vmatpush.bf16.msra.mxu3 %v4332_v24  ;;  %v4646_v13 = vld [vmem:[%s7146_s6 + $0x1a4] sm:$0xf0] }
 0x184   :  { %v2309_v41 = vmul.f32 %v2299_v36, %v6481_v32 }
 0x185   :  { %2871 = vmatpush.bf16.msrb.mxu2 %v4256_v30  ;;  %v4307_v30 = vld [vmem:[%s7146_s6 + $0x1c0] sm:$0xf] }
 0x186   :  { %v2164_v8 = vpop.f32.mrf.mxu2  ;;  %v2313_v12 = vadd.f32 1e-05, %v2309_v41  ;;  %2831 = vmatpush.bf16.msra.mxu3 %v4324_v4  ;;  %v4315_v41 = vld [vmem:[%s7146_s6 + $0x1d0] sm:$0xf]  ;;  %v4308_v33 = vor.u32 %v4650_v35, %v4307_v30 }
 0x187   :  { %v4652_v8 = vld [vmem:[%s7146_s6 + $0x1d4] sm:$0xf0] }
 0x188   :  { %4670 = vrsqrt.f32 %v2313_v12  ;;  %vm2341_vm9 = vweird.f32 %v2313_v12  ;;  %v4316_v11 = vor.u32 %v4652_v8, %v4315_v41  ;;  %v2362_v41 = vperm.slane %v6716_v57, 5 }
 0x189   :  { %v2177_v52 = vpop.f32.mrf.mxu3  ;;  %2872 = vmatpush.bf16.msrb.mxu2 %v4248_v44 }
 0x18a   :  { %2832 = vmatpush.bf16.msra.mxu3 %v4316_v11  ;;  %v4641_v11 = vld [vmem:[%s7146_s6 + $0x184] sm:$0xf]  ;;  %v2370_v35 = vperm.slane %v2362_v41, 1 }
 0x18d   :  { %2873 = vmatpush.bf16.msrb.mxu2 %v4240_v19 }
 0x18e   :  { %v4671_v17 = vpop.eup %4670  ;;  %2833 = vmatpush.bf16.msra.mxu3 %v4308_v33 }
 0x18f   :  { %v2336_v20 = vmul.f32 %v4671_v17, %v2313_v12  ;;  %vm2342_vm8 = vweird.f32 %v4671_v17 }
 0x190   :  { %vm2343_vm10 = vmor %vm2341_vm9, %vm2342_vm8 }
 0x191   :  { %v2337_v1 = vmul.f32 %v4671_v17, %v2336_v20  ;;  %2874 = vmatpush.bf16.msrb.mxu2 %v4232_v22  ;;  %v4291_v20 = vld [vmem:[%s7146_s6 + $0x1a0] sm:$0xf]  ;;  %v4644_v22 = vld [vmem:[%s7146_s6 + $0x194] sm:$0xf0] }
 0x192   :  { %2834 = vmatpush.bf16.msra.mxu3 %v4300_v39 }
 0x193   :  { %v2338_v23 = vmul.f32 0.5, %v2337_v1  ;;  %v4292_v1 = vor.u32 %v4646_v13, %v4291_v20  ;;  %v7011_v20 = vld [vmem:[%s7147_s7] sm:$0x77] }
 0x194   :  { %v2465_v13 = vperm.slane %v7011_v20, 0 }
 0x195   :  { %v2339_v9 = vsub.f32 1.5, %v2338_v23  ;;  %2875 = vmatpush.bf16.msrb.mxu2 %v4224_v42  ;;  %v4333_v42 = vld [vmem:[%s7146_s6 + $0x1f8] sm:$0xf0] }
 0x196   :  { %2835 = vmatpush.bf16.msra.mxu3 %v4292_v1 }
 0x197   :  { %v2188_v21 = vpop.f32.mrf.mxu0  ;;  %v2340_v7 = vmul.f32 %v4671_v17, %v2339_v9  ;;  %v4642_v9 = vld [vmem:[%s7146_s6 + $0x184] sm:$0xf0] }
 0x198   :  { %v2201_v34 = vpop.f32.mrf.mxu1  ;;  %v2189_v10 = vadd.f32 %v2188_v21, %v2176_v28  ;;  %v4283_v21 = vld [vmem:[%s7146_s6 + $0x190] sm:$0xf] }
 0x199   :  { %v2344_v16 = vsel %vm2343_vm10, %v4671_v17, %v2340_v7  ;;  %2876 = vmatpush.bf16.msrb.mxu2 %v4216_v0  ;;  %v4284_v28 = vor.u32 %v4644_v22, %v4283_v21  ;;  %v4653_v7 = vld [vmem:[%s7146_s6 + $0x1e4] sm:$0xf]  ;;  %v2466_v22 = vperm.slane %v7011_v20, 4 }
 0x19a   :  { %v2202_v18 = vadd.f32 %v2201_v34, %v2189_v10  ;;  %v2357_v47 = vmul.f32 %v2344_v16, %v6823_v31  ;;  %v4275_v34 = vld [vmem:[%s7146_s6 + $0x180] sm:$0xf] }
 0x19b   :  { %2836 = vmatpush.bf16.msra.mxu3 %v4284_v28  ;;  %v4276_v37 = vor.u32 %v4642_v9, %v4275_v34  ;;  %v2470_v28 = vperm.slane %v2466_v22, 0  ;;  %v2976_v22 = vld [vmem:[%s7149_s8 + $0x18] sm:$0xff] }
 0x19c   :  { %v2373_v45 = vmul.f32 %v2369_v15, %v2357_v47  ;;  %v4325_v15 = vld [vmem:[%s7146_s6 + $0x1e8] sm:$0xf0]  ;;  %v4651_v47 = vld [vmem:[%s7146_s6 + $0x1d4] sm:$0xf] }
 0x19d   :  { %v4328_v46 = vor.u32 %v4653_v7, %v4325_v15 }
 0x19e   :  { %v2214_v49 = vpop.f32.mrf.mxu2  ;;  %v2389_v31 = vadd.f32 %v2385_v51, %v2373_v45  ;;  %v4647_v45 = vld [vmem:[%s7146_s6 + $0x1b4] sm:$0xf] }
 0x19f   :  { %v2190_v50 = vpop.f32.mrf.mxu0  ;;  %v2215_v56 = vadd.f32 %v2214_v49, %v2202_v18  ;;  %v2227_v58 = vpop.f32.mrf.mxu3  ;;  %2837 = vmatpush.bf16.msra.mxu3 %v4276_v37  ;;  %v4336_v18 = vor.u32 %v4655_v26, %v4333_v42  ;;  %v4317_v49 = vld [vmem:[%s7146_s6 + $0x1d8] sm:$0xf0] }
 0x1a0   :  { %v2203_v3 = vpop.f32.mrf.mxu1  ;;  %v2393_v40 = vmax.f32 %v2389_v31, 0.0  ;;  %v4320_v0 = vor.u32 %v4651_v47, %v4317_v49  ;;  %v4645_v31 = vld [vmem:[%s7146_s6 + $0x1a4] sm:$0xf] }
 0x1a1   :  { %v2228_v60 = vadd.f32 %v2227_v58, %v2215_v56  ;;  %v4309_v56 = vld [vmem:[%s7146_s6 + $0x1c8] sm:$0xf0]  ;;  %v4301_v3 = vld [vmem:[%s7146_s6 + $0x1b8] sm:$0xf0]  ;;  %v4296_v4 = vor.u32 %v4645_v31, %v4293_v61 }
 0x1a2   :  { %v2398_v59 = vpack.c.bf16 %v2393_v40, %v2393_v40  ;;  %v4312_v24 = vor.u32 %v4649_v55, %v4309_v56  ;;  %v4643_v40 = vld [vmem:[%s7146_s6 + $0x194] sm:$0xf] }
 0x1a3   :  { %v2253_v2 = vsel %vm2231_vm0, %v2228_v60, 0.0  ;;  %2882 = vmatpush.bf16.msrb.mxu3 %v4336_v18 }
 0x1a4   :  { %v2254_v5 = vrot.slane %v2253_v2, 4  ;;  %2825 = vmatmul.bf16.vlgmr.msra.gmra.mxu2 %v2398_v59 }
 0x1a6   :  { %v2255_v36 = vadd.f32 %v2254_v5, %v2253_v2  ;;  %v2216_v6 = vpop.f32.mrf.mxu2 }
 0x1a7   :  { %v2229_v62 = vpop.f32.mrf.mxu3  ;;  %2883 = vmatpush.bf16.msrb.mxu3 %v4328_v46 }
 0x1a8   :  { %v2256_v12 = vrot.slane %v2255_v36, 2 }
 0x1aa   :  { %v2257_v52 = vadd.f32 %v2256_v12, %v2255_v36  ;;  %v4285_v36 = vld [vmem:[%s7146_s6 + $0x198] sm:$0xf0]  ;;  %v4277_v12 = vld [vmem:[%s7146_s6 + $0x188] sm:$0xf0] }
 0x1ab   :  { %2884 = vmatpush.bf16.msrb.mxu3 %v4320_v0  ;;  %v4288_v8 = vor.u32 %v4643_v40, %v4285_v36  ;;  %v4280_v33 = vor.u32 %v4641_v11, %v4277_v12  ;;  %v2981_v11 = vld [vmem:[%s7149_s8 + $0x40] sm:$0xff] }
 0x1ac   :  { %v2258_v14 = vrot.slane %v2257_v52, 1 }
 0x1ae   :  { %v2259_v44 = vadd.f32 %v2258_v14, %v2257_v52  ;;  %v2378_v52 = vperm.slane %v6716_v57, 6 }
 0x1af   :  { %2885 = vmatpush.bf16.msrb.mxu3 %v4312_v24 }
 0x1b0   :  { %v2270_v17 = vmul.f32 %v6481_v32, %v2259_v44  ;;  %v2386_v48 = vperm.slane %v2378_v52, 2 }
 0x1b2   :  { %v6931_v19 = vsub.f32 %v2228_v60, %v2270_v17  ;;  %v4304_v60 = vor.u32 %v4647_v45, %v4301_v3 }
 0x1b4   :  { %v2278_v54 = vmul.f32 %v6931_v19, %v6931_v19  ;;  %2877 = vmatmul.bf16.vlgmr.msrb.gmra.mxu2 %v2398_v59  ;;  %2886 = vmatpush.bf16.msrb.mxu3 %v4304_v60  ;;  %v2985_v60 = vld [vmem:[%s7149_s8 + $0x60] sm:$0xff] }
 0x1b6   :  { %v2300_v25 = vsel %vm2231_vm0, %v2278_v54, 0.0  ;;  %v2469_v54 = vperm.slane %v2465_v13, 0 }
 0x1b7   :  { %v2301_v23 = vrot.slane %v2300_v25, 4 }
 0x1b8   :  { %2887 = vmatpush.bf16.msrb.mxu3 %v4296_v4 }
 0x1b9   :  { %v2302_v29 = vadd.f32 %v2301_v23, %v2300_v25  ;;  %v6957_v38 = vpop.f32.mrf.mxu0 }
 0x1ba   :  { %v2801_v25 = vadd.f32 %v6957_v38, %v2469_v54  ;;  %v2977_v54 = vld [vmem:[%s7149_s8 + $0x20] sm:$0xff] }
 0x1bb   :  { %v2303_v10 = vrot.slane %v2302_v29, 2 }
 0x1bc   :  { %2888 = vmatpush.bf16.msrb.mxu3 %v4288_v8 }
 0x1bd   :  { %v2304_v16 = vadd.f32 %v2303_v10, %v2302_v29 }
 0x1bf   :  { %v2305_v27 = vrot.slane %v2304_v16, 1 }
 0x1c0   :  { %2889 = vmatpush.bf16.msrb.mxu3 %v4280_v33 }
 0x1c1   :  { %v2306_v50 = vadd.f32 %v2305_v27, %v2304_v16  ;;  %v2802_v53 = vpop.f32.mrf.mxu0 }
 0x1c2   :  { %v2987_v53 = vld [vmem:[%s7149_s8 + $0x70] sm:$0xff] }
 0x1c3   :  { %v2310_v51 = vmul.f32 %v2306_v50, %v6481_v32 }
 0x1c5   :  { %v2314_v58 = vadd.f32 1e-05, %v2310_v51  ;;  %v2988_v51 = vld [vmem:[%s7149_s8 + $0x78] sm:$0xff] }
 0x1c6   :  { %3009 = vmatpush.msra.mxu0 %v2988_v51 }
 0x1c7   :  { %4672 = vrsqrt.f32 %v2314_v58  ;;  %vm2351_vm12 = vweird.f32 %v2314_v58 }
 0x1c8   :  { %3010 = vmatpush.msra.mxu0 %v2987_v53 }
 0x1cd   :  { %v4673_v63 = vpop.eup %4672 }
 0x1ce   :  { %v2346_v2 = vmul.f32 %v4673_v63, %v2314_v58  ;;  %vm2352_vm11 = vweird.f32 %v4673_v63  ;;  %v2986_v58 = vld [vmem:[%s7149_s8 + $0x68] sm:$0xff] }
 0x1cf   :  { %vm2353_vm13 = vmor %vm2351_vm12, %vm2352_vm11  ;;  %3011 = vmatpush.msra.mxu0 %v2986_v58 }
 0x1d0   :  { %v2347_v5 = vmul.f32 %v4673_v63, %v2346_v2 }
 0x1d1   :  { %3012 = vmatpush.msra.mxu0 %v2985_v60 }
 0x1d2   :  { %v2348_v59 = vmul.f32 0.5, %v2347_v5  ;;  %v2983_v5 = vld [vmem:[%s7149_s8 + $0x50] sm:$0xff] }
 0x1d4   :  { %v2349_v62 = vsub.f32 1.5, %v2348_v59  ;;  %v2982_v59 = vld [vmem:[%s7149_s8 + $0x48] sm:$0xff] }
 0x1d5   :  { %v2852_v6 = vpop.f32.mrf.mxu0 }
 0x1d6   :  { %v2350_v30 = vmul.f32 %v4673_v63, %v2349_v62  ;;  %v2853_v29 = vadd.f32 %v2852_v6, %v2470_v28 }
 0x1d8   :  { %v2354_v14 = vsel %vm2353_vm13, %v4673_v63, %v2350_v30  ;;  %v2984_v63 = vld [vmem:[%s7149_s8 + $0x58] sm:$0xff] }
 0x1d9   :  { %v2358_v44 = vmul.f32 %v2354_v14, %v6931_v19  ;;  %3013 = vmatpush.msra.mxu0 %v2984_v63  ;;  %v2980_v30 = vld [vmem:[%s7149_s8 + $0x38] sm:$0xff]  ;;  %v2963_v63 = vperm.slane %v7011_v20, 2 }
 0x1db   :  { %v2374_v39 = vmul.f32 %v2370_v35, %v2358_v44  ;;  %3014 = vmatpush.msra.mxu0 %v2983_v5  ;;  %v3004_v35 = vld [vmem:[%s7149_s8 + $0xf8] sm:$0xff]  ;;  %v2979_v44 = vld [vmem:[%s7149_s8 + $0x30] sm:$0xff] }
 0x1dc   :  { %3029 = vmatpush.msra.mxu1 %v3004_v35 }
 0x1dd   :  { %v2854_v43 = vpop.f32.mrf.mxu0  ;;  %v2390_v17 = vadd.f32 %v2386_v48, %v2374_v39  ;;  %3015 = vmatpush.msra.mxu0 %v2982_v59 }
 0x1de   :  { %v3003_v43 = vld [vmem:[%s7149_s8 + $0xf0] sm:$0xff] }
 0x1df   :  { %v2394_v57 = vmax.f32 %v2390_v17, 0.0  ;;  %3016 = vmatpush.msra.mxu0 %v2981_v11  ;;  %3030 = vmatpush.msra.mxu1 %v3003_v43  ;;  %v2978_v17 = vld [vmem:[%s7149_s8 + $0x28] sm:$0xff] }
 0x1e1   :  { %v2399_v1 = vpack.c.bf16 %v2394_v57, %v2394_v57  ;;  %v2813_v21 = vpop.f32.mrf.mxu1  ;;  %3017 = vmatpush.msra.mxu0 %v2980_v30  ;;  %v3002_v57 = vld [vmem:[%s7149_s8 + $0xe8] sm:$0xff]  ;;  %v2956_v30 = vperm.slane %v7011_v20, 5 }
 0x1e2   :  { %v2814_v19 = vadd.f32 %v2813_v21, %v2801_v25  ;;  %3031 = vmatpush.msra.mxu1 %v3002_v57  ;;  %v3001_v25 = vld [vmem:[%s7149_s8 + $0xe0] sm:$0xff] }
 0x1e3   :  { %2838 = vmatmul.bf16.vlgmr.msra.gmra.mxu3 %v2399_v1  ;;  %3018 = vmatpush.msra.mxu0 %v2979_v44 }
 0x1e4   :  { %3032 = vmatpush.msra.mxu1 %v3001_v25 }
 0x1e5   :  { %3019 = vmatpush.msra.mxu0 %v2978_v17 }
 0x1e7   :  { %3020 = vmatpush.msra.mxu0 %v2977_v54 }
 0x1e9   :  { %v2815_v23 = vpop.f32.mrf.mxu1  ;;  %3021 = vmatpush.msra.mxu0 %v2976_v22 }
 0x1ea   :  { %v3000_v23 = vld [vmem:[%s7149_s8 + $0xd8] sm:$0xff] }
 0x1eb   :  { %3033 = vmatpush.msra.mxu1 %v3000_v23 }
 0x1f1   :  { %v2865_v34 = vpop.f32.mrf.mxu1 }
 0x1f2   :  { %v2866_v9 = vadd.f32 %v2865_v34, %v2853_v29  ;;  %v2975_v34 = vld [vmem:[%s7149_s8 + $0x10] sm:$0xff] }
 0x1f3   :  { %2890 = vmatmul.bf16.vlgmr.msrb.gmra.mxu3 %v2399_v1  ;;  %3022 = vmatpush.msra.mxu0 %v2975_v34 }
 0x1f9   :  { %v2867_v10 = vpop.f32.mrf.mxu1 }
 0x227   :  { %v2826_v37 = vpop.f32.mrf.mxu2 }
 0x228   :  { %v2827_v15 = vadd.f32 %v2826_v37, %v2814_v19 }
 0x22f   :  { %v2828_v26 = vpop.f32.mrf.mxu2 }
 0x230   :  { %v2974_v26 = vld [vmem:[%s7149_s8 + $0x8] sm:$0xff] }
 0x231   :  { %3023 = vmatpush.msra.mxu0 %v2974_v26 }
 0x237   :  { %v2878_v42 = vpop.f32.mrf.mxu2 }
 0x238   :  { %v2879_v56 = vadd.f32 %v2878_v42, %v2866_v9  ;;  %v2999_v9 = vld [vmem:[%s7149_s8 + $0xd0] sm:$0xff]  ;;  %v2998_v42 = vld [vmem:[%s7149_s8 + $0xc8] sm:$0xff] }
 0x239   :  { %3034 = vmatpush.msra.mxu1 %v2999_v9 }
 0x23b   :  { %3035 = vmatpush.msra.mxu1 %v2998_v42 }
 0x23f   :  { %v2880_v7 = vpop.f32.mrf.mxu2 }
 0x266   :  { %v2839_v16 = vpop.f32.mrf.mxu3 }
 0x267   :  { %v2840_v18 = vadd.f32 %v2839_v16, %v2827_v15  ;;  %v2973_v15 = vld [vmem:[%s7149_s8] sm:$0xff] }
 0x268   :  { %v2997_v16 = vld [vmem:[%s7149_s8 + $0xc0] sm:$0xff]  ;;  %3024 = vmatpush.msra.mxu0 %v2973_v15 }
 0x269   :  { %v2895_v38 = vsel %vm2231_vm0, %v2840_v18, 0.0  ;;  %3036 = vmatpush.msra.mxu1 %v2997_v16 }
 0x26a   :  { %v2896_v27 = vrot.slane %v2895_v38, 4 }
 0x26c   :  { %v2897_v46 = vadd.f32 %v2896_v27, %v2895_v38  ;;  %v2996_v38 = vld [vmem:[%s7149_s8 + $0xb8] sm:$0xff]  ;;  %v2995_v27 = vld [vmem:[%s7149_s8 + $0xb0] sm:$0xff] }
 0x26d   :  { %3037 = vmatpush.msra.mxu1 %v2996_v38 }
 0x26e   :  { %v2898_v47 = vrot.slane %v2897_v46, 2  ;;  %v2841_v49 = vpop.f32.mrf.mxu3 }
 0x26f   :  { %v2994_v49 = vld [vmem:[%s7149_s8 + $0xa8] sm:$0xff]  ;;  %3038 = vmatpush.msra.mxu1 %v2995_v27 }
 0x270   :  { %v2899_v50 = vadd.f32 %v2898_v47, %v2897_v46 }
 0x271   :  { %3039 = vmatpush.msra.mxu1 %v2994_v49 }
 0x272   :  { %v2900_v0 = vrot.slane %v2899_v50, 1 }
 0x274   :  { %v2901_v55 = vadd.f32 %v2900_v0, %v2899_v50  ;;  %v2993_v0 = vld [vmem:[%s7149_s8 + $0xa0] sm:$0xff] }
 0x275   :  { %3040 = vmatpush.msra.mxu1 %v2993_v0 }
 0x276   :  { %v2909_v24 = vmul.f32 %v2901_v55, %v6481_v32  ;;  %v2891_v45 = vpop.f32.mrf.mxu3 }
 0x277   :  { %v2892_v3 = vadd.f32 %v2891_v45, %v2879_v56  ;;  %v2992_v56 = vld [vmem:[%s7149_s8 + $0x98] sm:$0xff] }
 0x278   :  { %v7030_v31 = vsub.f32 %v2840_v18, %v2909_v24  ;;  %v2955_v24 = vperm.slane %v7011_v20, 1  ;;  %3041 = vmatpush.msra.mxu1 %v2992_v56 }
 0x279   :  { %v2902_v61 = vsel %vm2231_vm0, %v2892_v3, 0.0 }
 0x27a   :  { %v2913_v2 = vmul.f32 %v7030_v31, %v7030_v31  ;;  %v2903_v4 = vrot.slane %v2902_v61, 4  ;;  %v2959_v5 = vperm.slane %v2955_v24, 1 }
 0x27c   :  { %v2915_v40 = vsel %vm2231_vm0, %v2913_v2, 0.0  ;;  %v2904_v36 = vadd.f32 %v2903_v4, %v2902_v61  ;;  %v2990_v2 = vld [vmem:[%s7149_s8 + $0x88] sm:$0xff] }
 0x27d   :  { %v2916_v6 = vrot.slane %v2915_v40, 4 }
 0x27e   :  { %v2905_v41 = vrot.slane %v2904_v36, 2  ;;  %v2893_v8 = vpop.f32.mrf.mxu3 }
 0x27f   :  { %v2917_v62 = vadd.f32 %v2916_v6, %v2915_v40  ;;  %v2967_v6 = vperm.slane %v2963_v63, 2 }
 0x280   :  { %v2906_v12 = vadd.f32 %v2905_v41, %v2904_v36 }
 0x281   :  { %v2918_v52 = vrot.slane %v2917_v62, 2 }
 0x282   :  { %v2907_v33 = vrot.slane %v2906_v12, 1 }
 0x283   :  { %v2919_v14 = vadd.f32 %v2918_v52, %v2917_v62 }
 0x284   :  { %v2908_v48 = vadd.f32 %v2907_v33, %v2906_v12  ;;  %v2964_v33 = vperm.slane %v7011_v20, 6 }
 0x285   :  { %v2920_v39 = vrot.slane %v2919_v14, 1 }
 0x286   :  { %v2910_v13 = vmul.f32 %v2908_v48, %v6481_v32  ;;  %v2968_v48 = vperm.slane %v2964_v33, 2 }
 0x287   :  { %v2921_v1 = vadd.f32 %v2920_v39, %v2919_v14 }
 0x288   :  { %v7073_v21 = vsub.f32 %v2892_v3, %v2910_v13  ;;  %v2991_v3 = vld [vmem:[%s7149_s8 + $0x90] sm:$0xff]  ;;  %v4659_v13 = vld [vmem:[%s7148_s9] ss:$0 sm:$0xff] }
 0x289   :  { %v2929_v19 = vmul.f32 %v2921_v1, %v6481_v32  ;;  %3042 = vmatpush.msra.mxu1 %v2991_v3 }
 0x28a   :  { %v2914_v28 = vmul.f32 %v7073_v21, %v7073_v21 }
 0x28b   :  { %v2931_v29 = vadd.f32 1e-05, %v2929_v19  ;;  %3043 = vmatpush.msra.mxu1 %v2990_v2 }
 0x28c   :  { %v2922_v10 = vsel %vm2231_vm0, %v2914_v28, 0.0 }
 0x28d   :  { %4674 = vrsqrt.f32 %v2931_v29  ;;  %v2923_v37 = vrot.slane %v2922_v10, 4  ;;  %vm2939_vm15 = vweird.f32 %v2931_v29 }
 0x28f   :  { %v2924_v7 = vadd.f32 %v2923_v37, %v2922_v10 }
 0x291   :  { %v2925_v18 = vrot.slane %v2924_v7, 2 }
 0x293   :  { %v4675_v46 = vpop.eup %4674  ;;  %v2926_v47 = vadd.f32 %v2925_v18, %v2924_v7 }
 0x294   :  { %v2934_v50 = vmul.f32 %v4675_v46, %v2931_v29  ;;  %vm2940_vm14 = vweird.f32 %v4675_v46 }
 0x295   :  { %v2927_v51 = vrot.slane %v2926_v47, 1  ;;  %vm2941_vm0 = vmor %vm2939_vm15, %vm2940_vm14 }
 0x296   :  { %v2935_v53 = vmul.f32 %v4675_v46, %v2934_v50 }
 0x297   :  { %v2928_v55 = vadd.f32 %v2927_v51, %v2926_v47 }
 0x298   :  { %v2936_v58 = vmul.f32 0.5, %v2935_v53 }
 0x299   :  { %v2930_v45 = vmul.f32 %v2928_v55, %v6481_v32  ;;  %v2989_v32 = vld [vmem:[%s7149_s8 + $0x80] sm:$0xff] }
 0x29a   :  { %v2937_v60 = vsub.f32 1.5, %v2936_v58  ;;  %3044 = vmatpush.msra.mxu1 %v2989_v32 }
 0x29b   :  { %v2932_v61 = vadd.f32 1e-05, %v2930_v45 }
 0x29c   :  { %v2938_v4 = vmul.f32 %v4675_v46, %v2937_v60 }
 0x29d   :  { %4676 = vrsqrt.f32 %v2932_v61  ;;  %vm2949_vm2 = vweird.f32 %v2932_v61 }
 0x29e   :  { %v2942_v40 = vsel %vm2941_vm0, %v4675_v46, %v2938_v4 }
 0x29f   :  { %v2953_v36 = vmul.f32 %v2942_v40, %v7030_v31  ;;  %v2960_v31 = vperm.slane %v2956_v30, 1 }
 0x2a1   :  { %v2961_v59 = vmul.f32 %v2959_v5, %v2953_v36 }
 0x2a3   :  { %v4677_v41 = vpop.eup %4676  ;;  %v2969_v8 = vadd.f32 %v2967_v6, %v2961_v59 }
 0x2a4   :  { %v2944_v62 = vmul.f32 %v4677_v41, %v2932_v61  ;;  %vm2950_vm1 = vweird.f32 %v4677_v41 }
 0x2a5   :  { %v2971_v11 = vmax.f32 %v2969_v8, 0.0  ;;  %vm2951_vm3 = vmor %vm2949_vm2, %vm2950_vm1 }
 0x2a6   :  { %v2945_v12 = vmul.f32 %v4677_v41, %v2944_v62 }
 0x2a7   :  { %3025 = vmatmul.f32.vlgmr.msra.gmra.mxu0 %v2971_v11 }
 0x2a8   :  { %v2946_v52 = vmul.f32 0.5, %v2945_v12 }
 0x2aa   :  { %v2947_v35 = vsub.f32 1.5, %v2946_v52 }
 0x2ac   :  { %v2948_v14 = vmul.f32 %v4677_v41, %v2947_v35 }
 0x2ae   :  { %v2952_v44 = vsel %vm2951_vm3, %v4677_v41, %v2948_v14 }
 0x2af   :  { %v2954_v43 = vmul.f32 %v2952_v44, %v7073_v21 }
 0x2b1   :  { %v2962_v39 = vmul.f32 %v2960_v31, %v2954_v43 }
 0x2b3   :  { %v2970_v17 = vadd.f32 %v2968_v48, %v2962_v39 }
 0x2b5   :  { %v2972_v57 = vmax.f32 %v2970_v17, 0.0 }
 0x2b7   :  { %3045 = vmatmul.f32.vlgmr.msra.gmra.mxu1 %v2972_v57 }
 0x324   :  { %v3026_v1 = vpop.f32.mrf.mxu0 }
 0x325   :  { %v3027_v54 = vadd.f32 %v4659_v13, %v3026_v1 }
 0x334   :  { %v3046_v25 = vpop.f32.mrf.mxu1 }
 0x335   :  { %v3047_v20 = vadd.f32 %v3046_v25, %v3027_v54 }
 0x337   :  { %3050 = vst.msk [vmem:[%s7150_s10] sm:$0x3] %vm3049_vm4, %v3047_v20 }

</bundles_post_ra>
